<compile_context>
chip_gen: v6e
topology: v6e:2x2x1
jax: 0.10.0
libtpu: 0.0.40
codegen_flags: <defaults>
</compile_context>

<pallas_src>
import math

import jax
import jax.numpy as jnp
from jax import lax
from jax.experimental import pallas as pl
from jax.experimental.pallas import tpu as pltpu


# ----------------------------- model constants ------------------------------

IMG_SIZE = 64
PATCH = 16
IN_CH = 3
NUM_PATCHES = (IMG_SIZE // PATCH) ** 2          # 16
SEQ_LEN = NUM_PATCHES + 1                       # 17 (CLS + patches)
EMBED = 128                                     # stand-in for 768 (lane-dense)
NUM_HEADS = 4                                   # stand-in for 12
NUM_LAYERS = 4                                  # stand-in for 12
INTER = 4 * EMBED                               # 512
OUT_DIM = 128                                   # stand-in for 512
K_TOP = 8                                       # SelectivePoolingLayer k


# ----------------------------- in-kernel helpers -----------------------------

def _layernorm(x, g, b, eps):
    mu = jnp.mean(x, axis=-1, keepdims=True)
    d = x - mu
    var = jnp.mean(d * d, axis=-1, keepdims=True)
    return d * lax.rsqrt(var + eps) * g + b


def _mha(x, wqkv, bqkv, wo, bo, num_heads):
    """Multi-head self-attention (eval mode) with fused QKV / out-proj dots."""
    Lx, E = x.shape
    dh = E // num_heads
    scale = 1.0 / math.sqrt(dh)

    xb = x.astype(jnp.bfloat16)
    qkv = jnp.dot(xb, wqkv, preferred_element_type=jnp.float32) + bqkv   # (Lx, 3E)

    heads_out = []
    for h in range(num_heads):                      # static unroll (4 heads)
        qh = qkv[:, h * dh:(h + 1) * dh] * scale
        kh = qkv[:, E + h * dh:E + (h + 1) * dh]
        vh = qkv[:, 2 * E + h * dh:2 * E + (h + 1) * dh]
        s = jnp.einsum('ld,md->lm', qh.astype(jnp.bfloat16),
                       kh.astype(jnp.bfloat16),
                       preferred_element_type=jnp.float32)
        s = s - jnp.max(s, axis=-1, keepdims=True)
        p = jnp.exp(s)
        p = p / jnp.sum(p, axis=-1, keepdims=True)
        # TODO(synk): attention dropout (p=0.1) omitted -- eval-mode semantics.
        heads_out.append(jnp.einsum('lm,md->ld', p.astype(jnp.bfloat16),
                                    vh.astype(jnp.bfloat16),
                                    preferred_element_type=jnp.float32))
    concat = jnp.concatenate(heads_out, axis=-1)                          # (Lx, E)
    return jnp.dot(concat.astype(jnp.bfloat16), wo,
                   preferred_element_type=jnp.float32) + bo


# ------------------------------- Pallas kernels ------------------------------

def _embed_kernel(p_ref, w_ref, b_ref, cls_ref, pos_ref, o_ref):
    """Patch-embedding matmul + CLS token + position embeddings (one batch elem)."""
    patches = p_ref[0].astype(jnp.bfloat16)                 # (Np, p*p*C)
    emb = jnp.dot(patches, w_ref[...],
                  preferred_element_type=jnp.float32) + b_ref[...]        # (Np, E)
    seq = jnp.concatenate([cls_ref[...], emb], axis=0)      # (L, E)
    o_ref[0] = seq + pos_ref[...]


def _vit_layer_kernel(x_ref, ln1g_ref, ln1b_ref, wqkv_ref, bqkv_ref, wo_ref,
                      bo_ref, ln2g_ref, ln2b_ref, w1_ref, b1_ref, w2_ref,
                      b2_ref, o_ref):
    """One pre-LN ViT encoder layer; sequence carried in the resident output
    block across the (arbitrary) layer grid axis."""
    @pl.when(pl.program_id(1) == 0)
    def _():
        o_ref[...] = x_ref[...]

    x = o_ref[0]                                            # (L, E) f32 carry
    xn = _layernorm(x, ln1g_ref[0], ln1b_ref[0], 1e-12)
    h = x + _mha(xn, wqkv_ref[0], bqkv_ref[0], wo_ref[0], bo_ref[0], NUM_HEADS)

    hn = _layernorm(h, ln2g_ref[0], ln2b_ref[0], 1e-12)
    m = jnp.dot(hn.astype(jnp.bfloat16), w1_ref[0],
                preferred_element_type=jnp.float32) + b1_ref[0]
    # NOTE: tanh-approx GELU (HF ViT uses exact erf GELU; numerically very close).
    m = jax.nn.gelu(m, approximate=True)
    m = jnp.dot(m.astype(jnp.bfloat16), w2_ref[0],
                preferred_element_type=jnp.float32) + b2_ref[0]
    o_ref[0] = h + m


def _head_kernel(x_ref, lnfg_ref, lnfb_ref, wqkv_ref, bqkv_ref, wo_ref, bo_ref,
                 wsc_ref, bsc_ref, wfc_ref, bfc_ref, lng_ref, lnb_ref,
                 wlfc_ref, blfc_ref, xg_ref, xl_ref):
    """Fused tail: final ViT LayerNorm -> global mean pool, and
    SelectivePoolingLayer (MHA + scorer + top-k + fc) -> local_fc."""
    x = x_ref[0]                                            # (L, E)
    y = _layernorm(x, lnfg_ref[...], lnfb_ref[...], 1e-12)  # last_hidden_state

    # Global head: AdaptiveAvgPool1d(1) over the sequence == mean over tokens.
    xg_ref[0] = jnp.mean(y, axis=0, keepdims=True)          # (1, E)

    # Local head operates on patch tokens only (drop CLS).
    xp = y[1:, :]                                           # (Lp, E)
    attn = _mha(xp, wqkv_ref[...], bqkv_ref[...], wo_ref[...], bo_ref[...],
                NUM_HEADS)
    logits = jnp.sum(attn * wsc_ref[...], axis=-1, keepdims=True) + bsc_ref[...]
    scores = jax.nn.sigmoid(logits)                         # (Lp, 1)

    # TODO(synk): PerturbedTopK Gaussian perturbation (sigma, num_samples) omitted;
    # its deterministic zero-noise limit (hard top-k indicators) is used instead.
    Lp = xp.shape[0]
    iota = lax.broadcasted_iota(jnp.int32, (Lp, 1), 0)
    s = scores
    w_sel = jnp.zeros((Lp, 1), jnp.float32)
    for _ in range(K_TOP):                                  # static unroll (k=8)
        m = jnp.max(s, axis=0, keepdims=True)
        sel = jnp.min(jnp.where(s >= m, iota, Lp), axis=0, keepdims=True)
        onehot = (iota == sel).astype(jnp.float32)
        w_sel = w_sel + onehot
        s = jnp.where(onehot > 0.0, -1e30, s)
    topk_feats = jnp.sum(w_sel * xp, axis=0, keepdims=True) * (1.0 / K_TOP)  # (1,E)

    loc = jnp.dot(topk_feats.astype(jnp.bfloat16), wfc_ref[...],
                  preferred_element_type=jnp.float32) + bfc_ref[...]         # (1,Eo)
    locn = _layernorm(loc, lng_ref[...], lnb_ref[...], 1e-5)
    xl_ref[0] = jnp.dot(locn.astype(jnp.bfloat16), wlfc_ref[...],
                        preferred_element_type=jnp.float32) + blfc_ref[...]


# --------------------------------- wrappers ----------------------------------

def extract_patches(x_nchw):
    """Non-overlapping ViT patch extraction: pure reshape/transpose (no blow-up)."""
    B, C, H, W = x_nchw.shape
    hp, wp = H // PATCH, W // PATCH
    x = x_nchw.reshape(B, C, hp, PATCH, wp, PATCH)
    x = jnp.transpose(x, (0, 2, 4, 3, 5, 1))                # (B, hp, wp, p, p, C)
    return x.reshape(B, hp * wp, PATCH * PATCH * C)


def embed_call(patches, p):
    B = patches.shape[0]
    kd = patches.shape[2]
    return pl.pallas_call(
        _embed_kernel,
        out_shape=jax.ShapeDtypeStruct((B, SEQ_LEN, EMBED), jnp.float32),
        grid=(B,),
        in_specs=[pl.BlockSpec((1, NUM_PATCHES, kd), lambda b: (b, 0, 0)),
                  pl.BlockSpec((kd, EMBED), lambda b: (0, 0)),
                  pl.BlockSpec((1, EMBED), lambda b: (0, 0)),
                  pl.BlockSpec((1, EMBED), lambda b: (0, 0)),
                  pl.BlockSpec((SEQ_LEN, EMBED), lambda b: (0, 0))],
        out_specs=pl.BlockSpec((1, SEQ_LEN, EMBED), lambda b: (b, 0, 0)),
        compiler_params=pltpu.CompilerParams(dimension_semantics=("parallel",)),
    )(patches, p['w_patch'], p['b_patch'], p['cls'], p['pos'])


def encoder_call(x, p):
    """All encoder layers in a single pallas_call (stacked per-layer weights)."""
    B, L, E = x.shape
    args = (x, p['ln1_g'], p['ln1_b'], p['wqkv'], p['bqkv'], p['wo'], p['bo'],
            p['ln2_g'], p['ln2_b'], p['w1'], p['b1'], p['w2'], p['b2'])

    def xmap(b, l):
        return (b, 0, 0)

    def wmap(b, l):
        return (l, 0, 0)

    in_specs = [pl.BlockSpec((1, L, E), xmap)]
    for a in args[1:]:
        in_specs.append(pl.BlockSpec((1,) + a.shape[1:], wmap))

    return pl.pallas_call(
        _vit_layer_kernel,
        out_shape=jax.ShapeDtypeStruct((B, L, E), jnp.float32),
        grid=(B, NUM_LAYERS),
        in_specs=in_specs,
        out_specs=pl.BlockSpec((1, L, E), xmap),
        compiler_params=pltpu.CompilerParams(
            dimension_semantics=("parallel", "arbitrary")),
    )(*args)


def head_call(x, p):
    B, L, E = x.shape
    args = (x, p['lnf_g'], p['lnf_b'], p['wqkv'], p['bqkv'], p['wo'], p['bo'],
            p['wsc'], p['bsc'], p['wfc'], p['bfc'], p['lfc_g'], p['lfc_b'],
            p['wlfc'], p['blfc'])
    in_specs = [pl.BlockSpec((1, L, E), lambda b: (b, 0, 0))]
    for a in args[1:]:
        in_specs.append(
            pl.BlockSpec(a.shape, lambda b, _n=len(a.shape): (0,) * _n))
    return pl.pallas_call(
        _head_kernel,
        out_shape=(jax.ShapeDtypeStruct((B, 1, EMBED), jnp.float32),
                   jax.ShapeDtypeStruct((B, 1, OUT_DIM), jnp.float32)),
        grid=(B,),
        in_specs=in_specs,
        out_specs=[pl.BlockSpec((1, 1, EMBED), lambda b: (b, 0, 0)),
                   pl.BlockSpec((1, 1, OUT_DIM), lambda b: (b, 0, 0))],
        compiler_params=pltpu.CompilerParams(dimension_semantics=("parallel",)),
    )(*args)


# -------------------------------- parameters ---------------------------------

def init_params(key):
    f32, bf16 = jnp.float32, jnp.bfloat16

    def nrm(k, shape, scale, dtype=jnp.float32):
        return (scale * jax.random.normal(k, shape, f32)).astype(dtype)

    keys = jax.random.split(key, 6)
    kd = PATCH * PATCH * IN_CH
    sd = 1.0 / math.sqrt(EMBED)

    embed = {
        'w_patch': nrm(keys[0], (kd, EMBED), math.sqrt(2.0 / kd), bf16),
        'b_patch': nrm(keys[1], (1, EMBED), 0.01),
        'cls': nrm(keys[2], (1, EMBED), 0.02),
        'pos': nrm(keys[3], (SEQ_LEN, EMBED), 0.02),
    }

    ks = jax.random.split(keys[4], 12)
    layers = {
        'ln1_g': 1.0 + nrm(ks[0], (NUM_LAYERS, 1, EMBED), 0.02),
        'ln1_b': nrm(ks[1], (NUM_LAYERS, 1, EMBED), 0.02),
        'wqkv': nrm(ks[2], (NUM_LAYERS, EMBED, 3 * EMBED), sd, bf16),
        'bqkv': nrm(ks[3], (NUM_LAYERS, 1, 3 * EMBED), 0.01),
        'wo': nrm(ks[4], (NUM_LAYERS, EMBED, EMBED), sd, bf16),
        'bo': nrm(ks[5], (NUM_LAYERS, 1, EMBED), 0.01),
        'ln2_g': 1.0 + nrm(ks[6], (NUM_LAYERS, 1, EMBED), 0.02),
        'ln2_b': nrm(ks[7], (NUM_LAYERS, 1, EMBED), 0.02),
        'w1': nrm(ks[8], (NUM_LAYERS, EMBED, INTER), math.sqrt(2.0 / EMBED), bf16),
        'b1': nrm(ks[9], (NUM_LAYERS, 1, INTER), 0.01),
        'w2': nrm(ks[10], (NUM_LAYERS, INTER, EMBED), 1.0 / math.sqrt(INTER), bf16),
        'b2': nrm(ks[11], (NUM_LAYERS, 1, EMBED), 0.01),
    }

    kh = jax.random.split(keys[5], 14)
    head = {
        'lnf_g': 1.0 + nrm(kh[0], (1, EMBED), 0.02),
        'lnf_b': nrm(kh[1], (1, EMBED), 0.02),
        'wqkv': nrm(kh[2], (EMBED, 3 * EMBED), sd, bf16),
        'bqkv': nrm(kh[3], (1, 3 * EMBED), 0.01),
        'wo': nrm(kh[4], (EMBED, EMBED), sd, bf16),
        'bo': nrm(kh[5], (1, EMBED), 0.01),
        'wsc': nrm(kh[6], (1, EMBED), sd),
        'bsc': nrm(kh[7], (1, 1), 0.01),
        'wfc': nrm(kh[8], (EMBED, OUT_DIM), sd, bf16),
        'bfc': nrm(kh[9], (1, OUT_DIM), 0.01),
        'lfc_g': 1.0 + nrm(kh[10], (1, OUT_DIM), 0.02),
        'lfc_b': nrm(kh[11], (1, OUT_DIM), 0.02),
        'wlfc': nrm(kh[12], (OUT_DIM, OUT_DIM), 1.0 / math.sqrt(OUT_DIM), bf16),
        'blfc': nrm(kh[13], (1, OUT_DIM), 0.01),
    }

    return {'embed': embed, 'layers': layers, 'head': head}


# --------------------------------- forward -----------------------------------

def vit_encoder_forward(x_nchw, params):
    B = x_nchw.shape[0]
    patches = extract_patches(x_nchw.astype(jnp.float32))   # layout plumbing
    seq = embed_call(patches, params['embed'])              # (B, L, E)
    seq = encoder_call(seq, params['layers'])               # (B, L, E)
    xg, xl = head_call(seq, params['head'])                 # (B,1,E), (B,1,Eo)
    return xg.reshape(B, EMBED), xl.reshape(B, OUT_DIM)


# ----------------------------------- main -------------------------------------

if __name__ == "__main__":
    key = jax.random.PRNGKey(0)
    pkey, xkey = jax.random.split(key)
    params = init_params(pkey)

    # NCHW pixel values, like the PyTorch module.
    x = jax.random.normal(xkey, (2, IN_CH, IMG_SIZE, IMG_SIZE), jnp.float32)

    fwd = jax.jit(vit_encoder_forward)
    x_global, x_local = fwd(x, params)
    jax.block_until_ready((x_global, x_local))

    assert x_global.shape == (2, EMBED), x_global.shape
    assert x_local.shape == (2, OUT_DIM), x_local.shape
    assert bool(jnp.isfinite(x_global).all())
    assert bool(jnp.isfinite(x_local).all())
    print("KERNEL_OK")
</pallas_src>

<mosaic_0001>
module attributes {stable_mosaic.version = 11 : i64} {
  func.func @_embed_kernel(%arg0: i32, %arg1: memref<1x16x768xf32, #tpu.memory_space<vmem>>, %arg2: memref<768x128xbf16, #tpu.memory_space<vmem>>, %arg3: memref<1x128xf32, #tpu.memory_space<vmem>>, %arg4: memref<1x128xf32, #tpu.memory_space<vmem>>, %arg5: memref<17x128xf32, #tpu.memory_space<vmem>>, %arg6: memref<1x17x128xf32, #tpu.memory_space<vmem>>) attributes {dimension_semantics = [#tpu.dimension_semantics<parallel>], iteration_bounds = array<i64: 2>, scalar_prefetch = 0 : i64, scratch_operands = 0 : i64, tpu.core_type = #tpu.core_type<tc>, window_params = [{transform_indices = @transform_0, window_bounds = array<i64: 1, 16, 768>}, {pipeline_mode = #tpu.pipeline_mode<synchronous>, transform_indices = @transform_1, window_bounds = array<i64: 768, 128>}, {pipeline_mode = #tpu.pipeline_mode<synchronous>, transform_indices = @transform_2, window_bounds = array<i64: 1, 128>}, {pipeline_mode = #tpu.pipeline_mode<synchronous>, transform_indices = @transform_3, window_bounds = array<i64: 1, 128>}, {pipeline_mode = #tpu.pipeline_mode<synchronous>, transform_indices = @transform_4, window_bounds = array<i64: 17, 128>}, {transform_indices = @transform_5, window_bounds = array<i64: 1, 17, 128>}]} {
    %c0 = arith.constant 0 : index
    %c0_0 = arith.constant 0 : index
    %c0_1 = arith.constant 0 : index
    %0 = vector.load %arg1[%c0, %c0_0, %c0_1] : memref<1x16x768xf32, #tpu.memory_space<vmem>>, vector<1x16x768xf32>
    %1 = vector.shape_cast %0 : vector<1x16x768xf32> to vector<16x768xf32>
    %2 = arith.truncf %1 : vector<16x768xf32> to vector<16x768xbf16>
    %c0_2 = arith.constant 0 : index
    %c0_3 = arith.constant 0 : index
    %3 = vector.load %arg2[%c0_2, %c0_3] : memref<768x128xbf16, #tpu.memory_space<vmem>>, vector<768x128xbf16>
    %cst = arith.constant dense<0.000000e+00> : vector<16x128xf32>
    %4 = tpu.matmul %2, %3, %cst {dimension_numbers = #tpu.dot_dimension_numbers<[1], [0], [0], [1], [0, 0, 1, 1], [], []>} : vector<16x768xbf16>, vector<768x128xbf16>, vector<16x128xf32> -> vector<16x128xf32>
    %c0_4 = arith.constant 0 : index
    %c0_5 = arith.constant 0 : index
    %5 = vector.load %arg3[%c0_4, %c0_5] : memref<1x128xf32, #tpu.memory_space<vmem>>, vector<1x128xf32>
    %6 = vector.broadcast %5 : vector<1x128xf32> to vector<16x128xf32>
    %7 = arith.addf %4, %6 : vector<16x128xf32>
    %c0_6 = arith.constant 0 : index
    %c0_7 = arith.constant 0 : index
    %8 = vector.load %arg4[%c0_6, %c0_7] : memref<1x128xf32, #tpu.memory_space<vmem>>, vector<1x128xf32>
    %9 = tpu.concatenate %8, %7 in 0 : vector<1x128xf32>, vector<16x128xf32> -> vector<17x128xf32>
    %c0_8 = arith.constant 0 : index
    %c0_9 = arith.constant 0 : index
    %10 = vector.load %arg5[%c0_8, %c0_9] : memref<17x128xf32, #tpu.memory_space<vmem>>, vector<17x128xf32>
    %11 = arith.addf %9, %10 : vector<17x128xf32>
    %c0_10 = arith.constant 0 : index
    %c0_11 = arith.constant 0 : index
    %c0_12 = arith.constant 0 : index
    %12 = vector.load %arg6[%c0_10, %c0_11, %c0_12] : memref<1x17x128xf32, #tpu.memory_space<vmem>>, vector<1x17x128xf32>
    %13 = vector.shape_cast %12 : vector<1x17x128xf32> to vector<17x128xf32>
    %14 = vector.shape_cast %11 : vector<17x128xf32> to vector<1x17x128xf32>
    tpu.vector_store %arg6[%c0_10, %c0_11, %c0_12], %14 {strides = array<i32>} : memref<1x17x128xf32, #tpu.memory_space<vmem>>, vector<1x17x128xf32>,
    return
  }
  func.func @transform_0(%arg0: i32) -> (i32, i32, i32) {
    %c0_i32 = arith.constant 0 : i32
    %c0_i32_0 = arith.constant 0 : i32
    %c0_i32_1 = arith.constant 0 : i32
    return %arg0, %c0_i32, %c0_i32_0 : i32, i32, i32
  }
  func.func @transform_1(%arg0: i32) -> (i32, i32) {
    %c0_i32 = arith.constant 0 : i32
    %c0_i32_0 = arith.constant 0 : i32
    %c0_i32_1 = arith.constant 0 : i32
    return %c0_i32, %c0_i32_0 : i32, i32
  }
  func.func @transform_2(%arg0: i32) -> (i32, i32) {
    %c0_i32 = arith.constant 0 : i32
    %c0_i32_0 = arith.constant 0 : i32
    %c0_i32_1 = arith.constant 0 : i32
    return %c0_i32, %c0_i32_0 : i32, i32
  }
  func.func @transform_3(%arg0: i32) -> (i32, i32) {
    %c0_i32 = arith.constant 0 : i32
    %c0_i32_0 = arith.constant 0 : i32
    %c0_i32_1 = arith.constant 0 : i32
    return %c0_i32, %c0_i32_0 : i32, i32
  }
  func.func @transform_4(%arg0: i32) -> (i32, i32) {
    %c0_i32 = arith.constant 0 : i32
    %c0_i32_0 = arith.constant 0 : i32
    %c0_i32_1 = arith.constant 0 : i32
    return %c0_i32, %c0_i32_0 : i32, i32
  }
  func.func @transform_5(%arg0: i32) -> (i32, i32, i32) {
    %c0_i32 = arith.constant 0 : i32
    %c0_i32_0 = arith.constant 0 : i32
    %c0_i32_1 = arith.constant 0 : i32
    return %arg0, %c0_i32, %c0_i32_0 : i32, i32, i32
  }
}

module attributes {stable_mosaic.version = 11 : i64} {
  func.func @_vit_layer_kernel(%arg0: i32, %arg1: i32, %arg2: memref<1x17x128xf32, #tpu.memory_space<vmem>>, %arg3: memref<1x1x128xf32, #tpu.memory_space<vmem>>, %arg4: memref<1x1x128xf32, #tpu.memory_space<vmem>>, %arg5: memref<1x128x384xbf16, #tpu.memory_space<vmem>>, %arg6: memref<1x1x384xf32, #tpu.memory_space<vmem>>, %arg7: memref<1x128x128xbf16, #tpu.memory_space<vmem>>, %arg8: memref<1x1x128xf32, #tpu.memory_space<vmem>>, %arg9: memref<1x1x128xf32, #tpu.memory_space<vmem>>, %arg10: memref<1x1x128xf32, #tpu.memory_space<vmem>>, %arg11: memref<1x128x512xbf16, #tpu.memory_space<vmem>>, %arg12: memref<1x1x512xf32, #tpu.memory_space<vmem>>, %arg13: memref<1x512x128xbf16, #tpu.memory_space<vmem>>, %arg14: memref<1x1x128xf32, #tpu.memory_space<vmem>>, %arg15: memref<1x17x128xf32, #tpu.memory_space<vmem>>) attributes {dimension_semantics = [#tpu.dimension_semantics<parallel>, #tpu.dimension_semantics<arbitrary>], iteration_bounds = array<i64: 2, 4>, scalar_prefetch = 0 : i64, scratch_operands = 0 : i64, tpu.core_type = #tpu.core_type<tc>, window_params = [{transform_indices = @transform_0, window_bounds = array<i64: 1, 17, 128>}, {transform_indices = @transform_1, window_bounds = array<i64: 1, 1, 128>}, {transform_indices = @transform_2, window_bounds = array<i64: 1, 1, 128>}, {transform_indices = @transform_3, window_bounds = array<i64: 1, 128, 384>}, {transform_indices = @transform_4, window_bounds = array<i64: 1, 1, 384>}, {transform_indices = @transform_5, window_bounds = array<i64: 1, 128, 128>}, {transform_indices = @transform_6, window_bounds = array<i64: 1, 1, 128>}, {transform_indices = @transform_7, window_bounds = array<i64: 1, 1, 128>}, {transform_indices = @transform_8, window_bounds = array<i64: 1, 1, 128>}, {transform_indices = @transform_9, window_bounds = array<i64: 1, 128, 512>}, {transform_indices = @transform_10, window_bounds = array<i64: 1, 1, 512>}, {transform_indices = @transform_11, window_bounds = array<i64: 1, 512, 128>}, {transform_indices = @transform_12, window_bounds = array<i64: 1, 1, 128>}, {transform_indices = @transform_13, window_bounds = array<i64: 1, 17, 128>}]} {
    %c0_i32 = arith.constant 0 : i32
    %0 = arith.cmpi eq, %arg1, %c0_i32 : i32
    %1 = arith.extui %0 : i1 to i32
    %c0_i32_0 = arith.constant 0 : i32
    %2 = arith.cmpi ne, %1, %c0_i32_0 : i32
    scf.if %2 {
      %c0_79 = arith.constant 0 : index
      %c0_80 = arith.constant 0 : index
      %c0_81 = arith.constant 0 : index
      %184 = vector.load %arg2[%c0_79, %c0_80, %c0_81] : memref<1x17x128xf32, #tpu.memory_space<vmem>>, vector<1x17x128xf32>
      %c0_82 = arith.constant 0 : index
      %c0_83 = arith.constant 0 : index
      %c0_84 = arith.constant 0 : index
      %185 = vector.load %arg15[%c0_82, %c0_83, %c0_84] : memref<1x17x128xf32, #tpu.memory_space<vmem>>, vector<1x17x128xf32>
      tpu.vector_store %arg15[%c0_82, %c0_83, %c0_84], %184 {strides = array<i32>} : memref<1x17x128xf32, #tpu.memory_space<vmem>>, vector<1x17x128xf32>,
    } else {
    }
    %c0 = arith.constant 0 : index
    %c0_1 = arith.constant 0 : index
    %c0_2 = arith.constant 0 : index
    %3 = vector.load %arg15[%c0, %c0_1, %c0_2] : memref<1x17x128xf32, #tpu.memory_space<vmem>>, vector<1x17x128xf32>
    %4 = vector.shape_cast %3 : vector<1x17x128xf32> to vector<17x128xf32>
    %c0_3 = arith.constant 0 : index
    %c0_4 = arith.constant 0 : index
    %c0_5 = arith.constant 0 : index
    %5 = vector.load %arg3[%c0_3, %c0_4, %c0_5] : memref<1x1x128xf32, #tpu.memory_space<vmem>>, vector<1x1x128xf32>
    %6 = vector.shape_cast %5 : vector<1x1x128xf32> to vector<1x128xf32>
    %c0_6 = arith.constant 0 : index
    %c0_7 = arith.constant 0 : index
    %c0_8 = arith.constant 0 : index
    %7 = vector.load %arg4[%c0_6, %c0_7, %c0_8] : memref<1x1x128xf32, #tpu.memory_space<vmem>>, vector<1x1x128xf32>
    %8 = vector.shape_cast %7 : vector<1x1x128xf32> to vector<1x128xf32>
    %cst = arith.constant dense<0.000000e+00> : vector<17xf32>
    %9 = vector.multi_reduction <add>, %4, %cst [1] : vector<17x128xf32> to vector<17xf32>
    %10 = vector.shape_cast %9 : vector<17xf32> to vector<17x1xf32>
    %cst_9 = arith.constant 1.280000e+02 : f32
    %11 = vector.broadcast %cst_9 : f32 to vector<17x1xf32>
    %12 = arith.divf %10, %11 : vector<17x1xf32>
    %13 = vector.broadcast %12 : vector<17x1xf32> to vector<17x128xf32>
    %14 = arith.subf %4, %13 : vector<17x128xf32>
    %15 = arith.mulf %14, %14 : vector<17x128xf32>
    %cst_10 = arith.constant dense<0.000000e+00> : vector<17xf32>
    %16 = vector.multi_reduction <add>, %15, %cst_10 [1] : vector<17x128xf32> to vector<17xf32>
    %17 = vector.shape_cast %16 : vector<17xf32> to vector<17x1xf32>
    %cst_11 = arith.constant 1.280000e+02 : f32
    %18 = vector.broadcast %cst_11 : f32 to vector<17x1xf32>
    %19 = arith.divf %17, %18 : vector<17x1xf32>
    %cst_12 = arith.constant 9.99999996E-13 : f32
    %20 = vector.broadcast %cst_12 : f32 to vector<17x1xf32>
    %21 = arith.addf %19, %20 : vector<17x1xf32>
    %22 = math.rsqrt %21 : vector<17x1xf32>
    %23 = vector.broadcast %22 : vector<17x1xf32> to vector<17x128xf32>
    %24 = arith.mulf %14, %23 : vector<17x128xf32>
    %25 = vector.broadcast %6 : vector<1x128xf32> to vector<17x128xf32>
    %26 = arith.mulf %24, %25 : vector<17x128xf32>
    %27 = vector.broadcast %8 : vector<1x128xf32> to vector<17x128xf32>
    %28 = arith.addf %26, %27 : vector<17x128xf32>
    %c0_13 = arith.constant 0 : index
    %c0_14 = arith.constant 0 : index
    %c0_15 = arith.constant 0 : index
    %29 = vector.load %arg5[%c0_13, %c0_14, %c0_15] : memref<1x128x384xbf16, #tpu.memory_space<vmem>>, vector<1x128x384xbf16>
    %30 = vector.shape_cast %29 : vector<1x128x384xbf16> to vector<128x384xbf16>
    %c0_16 = arith.constant 0 : index
    %c0_17 = arith.constant 0 : index
    %c0_18 = arith.constant 0 : index
    %31 = vector.load %arg6[%c0_16, %c0_17, %c0_18] : memref<1x1x384xf32, #tpu.memory_space<vmem>>, vector<1x1x384xf32>
    %32 = vector.shape_cast %31 : vector<1x1x384xf32> to vector<1x384xf32>
    %c0_19 = arith.constant 0 : index
    %c0_20 = arith.constant 0 : index
    %c0_21 = arith.constant 0 : index
    %33 = vector.load %arg7[%c0_19, %c0_20, %c0_21] : memref<1x128x128xbf16, #tpu.memory_space<vmem>>, vector<1x128x128xbf16>
    %34 = vector.shape_cast %33 : vector<1x128x128xbf16> to vector<128x128xbf16>
    %c0_22 = arith.constant 0 : index
    %c0_23 = arith.constant 0 : index
    %c0_24 = arith.constant 0 : index
    %35 = vector.load %arg8[%c0_22, %c0_23, %c0_24] : memref<1x1x128xf32, #tpu.memory_space<vmem>>, vector<1x1x128xf32>
    %36 = vector.shape_cast %35 : vector<1x1x128xf32> to vector<1x128xf32>
    %37 = arith.truncf %28 : vector<17x128xf32> to vector<17x128xbf16>
    %cst_25 = arith.constant dense<0.000000e+00> : vector<17x384xf32>
    %38 = tpu.matmul %37, %30, %cst_25 {dimension_numbers = #tpu.dot_dimension_numbers<[1], [0], [0], [1], [0, 0, 1, 1], [], []>} : vector<17x128xbf16>, vector<128x384xbf16>, vector<17x384xf32> -> vector<17x384xf32>
    %39 = vector.broadcast %32 : vector<1x384xf32> to vector<17x384xf32>
    %40 = arith.addf %38, %39 : vector<17x384xf32>
    %41 = vector.extract_strided_slice %40 {offsets = [0, 0], sizes = [17, 32], strides = [1, 1]} : vector<17x384xf32> to vector<17x32xf32>
    %cst_26 = arith.constant 0.176776692 : f32
    %42 = vector.broadcast %cst_26 : f32 to vector<17x32xf32>
    %43 = arith.mulf %41, %42 : vector<17x32xf32>
    %44 = vector.extract_strided_slice %40 {offsets = [0, 128], sizes = [17, 32], strides = [1, 1]} : vector<17x384xf32> to vector<17x32xf32>
    %45 = vector.extract_strided_slice %40 {offsets = [0, 256], sizes = [17, 32], strides = [1, 1]} : vector<17x384xf32> to vector<17x32xf32>
    %46 = arith.truncf %43 : vector<17x32xf32> to vector<17x32xbf16>
    %47 = arith.truncf %44 : vector<17x32xf32> to vector<17x32xbf16>
    "tpu.trace_start"() <{level = 10 : i32, message = "ld,md->lm"}> : () -> ()
    %cst_27 = arith.constant dense<0.000000e+00> : vector<17x17xf32>
    %48 = tpu.matmul %46, %47, %cst_27 {dimension_numbers = #tpu.dot_dimension_numbers<[1], [1], [0], [0], [0, 0, 1, 0], [], []>} : vector<17x32xbf16>, vector<17x32xbf16>, vector<17x17xf32> -> vector<17x17xf32>
    "tpu.trace_stop"() : () -> ()
    %cst_28 = arith.constant dense<0xFF800000> : vector<17xf32>
    %49 = vector.multi_reduction <maximumf>, %48, %cst_28 [1] : vector<17x17xf32> to vector<17xf32>
    %50 = vector.shape_cast %49 : vector<17xf32> to vector<17x1xf32>
    %51 = vector.broadcast %50 : vector<17x1xf32> to vector<17x17xf32>
    %52 = arith.subf %48, %51 : vector<17x17xf32>
    %53 = math.exp %52 : vector<17x17xf32>
    %cst_29 = arith.constant dense<0.000000e+00> : vector<17xf32>
    %54 = vector.multi_reduction <add>, %53, %cst_29 [1] : vector<17x17xf32> to vector<17xf32>
    %55 = vector.shape_cast %54 : vector<17xf32> to vector<17x1xf32>
    %56 = vector.broadcast %55 : vector<17x1xf32> to vector<17x17xf32>
    %57 = arith.divf %53, %56 : vector<17x17xf32>
    %58 = arith.truncf %57 : vector<17x17xf32> to vector<17x17xbf16>
    %59 = arith.truncf %45 : vector<17x32xf32> to vector<17x32xbf16>
    "tpu.trace_start"() <{level = 10 : i32, message = "lm,md->ld"}> : () -> ()
    %cst_30 = arith.constant dense<0.000000e+00> : vector<17x32xf32>
    %60 = tpu.matmul %58, %59, %cst_30 {dimension_numbers = #tpu.dot_dimension_numbers<[1], [0], [0], [1], [0, 0, 1, 1], [], []>} : vector<17x17xbf16>, vector<17x32xbf16>, vector<17x32xf32> -> vector<17x32xf32>
    "tpu.trace_stop"() : () -> ()
    %61 = vector.extract_strided_slice %40 {offsets = [0, 32], sizes = [17, 32], strides = [1, 1]} : vector<17x384xf32> to vector<17x32xf32>
    %cst_31 = arith.constant 0.176776692 : f32
    %62 = vector.broadcast %cst_31 : f32 to vector<17x32xf32>
    %63 = arith.mulf %61, %62 : vector<17x32xf32>
    %64 = vector.extract_strided_slice %40 {offsets = [0, 160], sizes = [17, 32], strides = [1, 1]} : vector<17x384xf32> to vector<17x32xf32>
    %65 = vector.extract_strided_slice %40 {offsets = [0, 288], sizes = [17, 32], strides = [1, 1]} : vector<17x384xf32> to vector<17x32xf32>
    %66 = arith.truncf %63 : vector<17x32xf32> to vector<17x32xbf16>
    %67 = arith.truncf %64 : vector<17x32xf32> to vector<17x32xbf16>
    "tpu.trace_start"() <{level = 10 : i32, message = "ld,md->lm"}> : () -> ()
    %cst_32 = arith.constant dense<0.000000e+00> : vector<17x17xf32>
    %68 = tpu.matmul %66, %67, %cst_32 {dimension_numbers = #tpu.dot_dimension_numbers<[1], [1], [0], [0], [0, 0, 1, 0], [], []>} : vector<17x32xbf16>, vector<17x32xbf16>, vector<17x17xf32> -> vector<17x17xf32>
    "tpu.trace_stop"() : () -> ()
    %cst_33 = arith.constant dense<0xFF800000> : vector<17xf32>
    %69 = vector.multi_reduction <maximumf>, %68, %cst_33 [1] : vector<17x17xf32> to vector<17xf32>
    %70 = vector.shape_cast %69 : vector<17xf32> to vector<17x1xf32>
    %71 = vector.broadcast %70 : vector<17x1xf32> to vector<17x17xf32>
    %72 = arith.subf %68, %71 : vector<17x17xf32>
    %73 = math.exp %72 : vector<17x17xf32>
    %cst_34 = arith.constant dense<0.000000e+00> : vector<17xf32>
    %74 = vector.multi_reduction <add>, %73, %cst_34 [1] : vector<17x17xf32> to vector<17xf32>
    %75 = vector.shape_cast %74 : vector<17xf32> to vector<17x1xf32>
    %76 = vector.broadcast %75 : vector<17x1xf32> to vector<17x17xf32>
    %77 = arith.divf %73, %76 : vector<17x17xf32>
    %78 = arith.truncf %77 : vector<17x17xf32> to vector<17x17xbf16>
    %79 = arith.truncf %65 : vector<17x32xf32> to vector<17x32xbf16>
    "tpu.trace_start"() <{level = 10 : i32, message = "lm,md->ld"}> : () -> ()
    %cst_35 = arith.constant dense<0.000000e+00> : vector<17x32xf32>
    %80 = tpu.matmul %78, %79, %cst_35 {dimension_numbers = #tpu.dot_dimension_numbers<[1], [0], [0], [1], [0, 0, 1, 1], [], []>} : vector<17x17xbf16>, vector<17x32xbf16>, vector<17x32xf32> -> vector<17x32xf32>
    "tpu.trace_stop"() : () -> ()
    %81 = vector.extract_strided_slice %40 {offsets = [0, 64], sizes = [17, 32], strides = [1, 1]} : vector<17x384xf32> to vector<17x32xf32>
    %cst_36 = arith.constant 0.176776692 : f32
    %82 = vector.broadcast %cst_36 : f32 to vector<17x32xf32>
    %83 = arith.mulf %81, %82 : vector<17x32xf32>
    %84 = vector.extract_strided_slice %40 {offsets = [0, 192], sizes = [17, 32], strides = [1, 1]} : vector<17x384xf32> to vector<17x32xf32>
    %85 = vector.extract_strided_slice %40 {offsets = [0, 320], sizes = [17, 32], strides = [1, 1]} : vector<17x384xf32> to vector<17x32xf32>
    %86 = arith.truncf %83 : vector<17x32xf32> to vector<17x32xbf16>
    %87 = arith.truncf %84 : vector<17x32xf32> to vector<17x32xbf16>
    "tpu.trace_start"() <{level = 10 : i32, message = "ld,md->lm"}> : () -> ()
    %cst_37 = arith.constant dense<0.000000e+00> : vector<17x17xf32>
    %88 = tpu.matmul %86, %87, %cst_37 {dimension_numbers = #tpu.dot_dimension_numbers<[1], [1], [0], [0], [0, 0, 1, 0], [], []>} : vector<17x32xbf16>, vector<17x32xbf16>, vector<17x17xf32> -> vector<17x17xf32>
    "tpu.trace_stop"() : () -> ()
    %cst_38 = arith.constant dense<0xFF800000> : vector<17xf32>
    %89 = vector.multi_reduction <maximumf>, %88, %cst_38 [1] : vector<17x17xf32> to vector<17xf32>
    %90 = vector.shape_cast %89 : vector<17xf32> to vector<17x1xf32>
    %91 = vector.broadcast %90 : vector<17x1xf32> to vector<17x17xf32>
    %92 = arith.subf %88, %91 : vector<17x17xf32>
    %93 = math.exp %92 : vector<17x17xf32>
    %cst_39 = arith.constant dense<0.000000e+00> : vector<17xf32>
    %94 = vector.multi_reduction <add>, %93, %cst_39 [1] : vector<17x17xf32> to vector<17xf32>
    %95 = vector.shape_cast %94 : vector<17xf32> to vector<17x1xf32>
    %96 = vector.broadcast %95 : vector<17x1xf32> to vector<17x17xf32>
    %97 = arith.divf %93, %96 : vector<17x17xf32>
    %98 = arith.truncf %97 : vector<17x17xf32> to vector<17x17xbf16>
    %99 = arith.truncf %85 : vector<17x32xf32> to vector<17x32xbf16>
    "tpu.trace_start"() <{level = 10 : i32, message = "lm,md->ld"}> : () -> ()
    %cst_40 = arith.constant dense<0.000000e+00> : vector<17x32xf32>
    %100 = tpu.matmul %98, %99, %cst_40 {dimension_numbers = #tpu.dot_dimension_numbers<[1], [0], [0], [1], [0, 0, 1, 1], [], []>} : vector<17x17xbf16>, vector<17x32xbf16>, vector<17x32xf32> -> vector<17x32xf32>
    "tpu.trace_stop"() : () -> ()
    %101 = vector.extract_strided_slice %40 {offsets = [0, 96], sizes = [17, 32], strides = [1, 1]} : vector<17x384xf32> to vector<17x32xf32>
    %cst_41 = arith.constant 0.176776692 : f32
    %102 = vector.broadcast %cst_41 : f32 to vector<17x32xf32>
    %103 = arith.mulf %101, %102 : vector<17x32xf32>
    %104 = vector.extract_strided_slice %40 {offsets = [0, 224], sizes = [17, 32], strides = [1, 1]} : vector<17x384xf32> to vector<17x32xf32>
    %105 = vector.extract_strided_slice %40 {offsets = [0, 352], sizes = [17, 32], strides = [1, 1]} : vector<17x384xf32> to vector<17x32xf32>
    %106 = arith.truncf %103 : vector<17x32xf32> to vector<17x32xbf16>
    %107 = arith.truncf %104 : vector<17x32xf32> to vector<17x32xbf16>
    "tpu.trace_start"() <{level = 10 : i32, message = "ld,md->lm"}> : () -> ()
    %cst_42 = arith.constant dense<0.000000e+00> : vector<17x17xf32>
    %108 = tpu.matmul %106, %107, %cst_42 {dimension_numbers = #tpu.dot_dimension_numbers<[1], [1], [0], [0], [0, 0, 1, 0], [], []>} : vector<17x32xbf16>, vector<17x32xbf16>, vector<17x17xf32> -> vector<17x17xf32>
    "tpu.trace_stop"() : () -> ()
    %cst_43 = arith.constant dense<0xFF800000> : vector<17xf32>
    %109 = vector.multi_reduction <maximumf>, %108, %cst_43 [1] : vector<17x17xf32> to vector<17xf32>
    %110 = vector.shape_cast %109 : vector<17xf32> to vector<17x1xf32>
    %111 = vector.broadcast %110 : vector<17x1xf32> to vector<17x17xf32>
    %112 = arith.subf %108, %111 : vector<17x17xf32>
    %113 = math.exp %112 : vector<17x17xf32>
    %cst_44 = arith.constant dense<0.000000e+00> : vector<17xf32>
    %114 = vector.multi_reduction <add>, %113, %cst_44 [1] : vector<17x17xf32> to vector<17xf32>
    %115 = vector.shape_cast %114 : vector<17xf32> to vector<17x1xf32>
    %116 = vector.broadcast %115 : vector<17x1xf32> to vector<17x17xf32>
    %117 = arith.divf %113, %116 : vector<17x17xf32>
    %118 = arith.truncf %117 : vector<17x17xf32> to vector<17x17xbf16>
    %119 = arith.truncf %105 : vector<17x32xf32> to vector<17x32xbf16>
    "tpu.trace_start"() <{level = 10 : i32, message = "lm,md->ld"}> : () -> ()
    %cst_45 = arith.constant dense<0.000000e+00> : vector<17x32xf32>
    %120 = tpu.matmul %118, %119, %cst_45 {dimension_numbers = #tpu.dot_dimension_numbers<[1], [0], [0], [1], [0, 0, 1, 1], [], []>} : vector<17x17xbf16>, vector<17x32xbf16>, vector<17x32xf32> -> vector<17x32xf32>
    "tpu.trace_stop"() : () -> ()
    %121 = tpu.concatenate %60, %80, %100, %120 in 1 : vector<17x32xf32>, vector<17x32xf32>, vector<17x32xf32>, vector<17x32xf32> -> vector<17x128xf32>
    %122 = arith.truncf %121 : vector<17x128xf32> to vector<17x128xbf16>
    %cst_46 = arith.constant dense<0.000000e+00> : vector<17x128xf32>
    %123 = tpu.matmul %122, %34, %cst_46 {dimension_numbers = #tpu.dot_dimension_numbers<[1], [0], [0], [1], [0, 0, 1, 1], [], []>} : vector<17x128xbf16>, vector<128x128xbf16>, vector<17x128xf32> -> vector<17x128xf32>
    %124 = vector.broadcast %36 : vector<1x128xf32> to vector<17x128xf32>
    %125 = arith.addf %123, %124 : vector<17x128xf32>
    %126 = arith.addf %4, %125 : vector<17x128xf32>
    %c0_47 = arith.constant 0 : index
    %c0_48 = arith.constant 0 : index
    %c0_49 = arith.constant 0 : index
    %127 = vector.load %arg9[%c0_47, %c0_48, %c0_49] : memref<1x1x128xf32, #tpu.memory_space<vmem>>, vector<1x1x128xf32>
    %128 = vector.shape_cast %127 : vector<1x1x128xf32> to vector<1x128xf32>
    %c0_50 = arith.constant 0 : index
    %c0_51 = arith.constant 0 : index
    %c0_52 = arith.constant 0 : index
    %129 = vector.load %arg10[%c0_50, %c0_51, %c0_52] : memref<1x1x128xf32, #tpu.memory_space<vmem>>, vector<1x1x128xf32>
    %130 = vector.shape_cast %129 : vector<1x1x128xf32> to vector<1x128xf32>
    %cst_53 = arith.constant dense<0.000000e+00> : vector<17xf32>
    %131 = vector.multi_reduction <add>, %126, %cst_53 [1] : vector<17x128xf32> to vector<17xf32>
    %132 = vector.shape_cast %131 : vector<17xf32> to vector<17x1xf32>
    %cst_54 = arith.constant 1.280000e+02 : f32
    %133 = vector.broadcast %cst_54 : f32 to vector<17x1xf32>
    %134 = arith.divf %132, %133 : vector<17x1xf32>
    %135 = vector.broadcast %134 : vector<17x1xf32> to vector<17x128xf32>
    %136 = arith.subf %126, %135 : vector<17x128xf32>
    %137 = arith.mulf %136, %136 : vector<17x128xf32>
    %cst_55 = arith.constant dense<0.000000e+00> : vector<17xf32>
    %138 = vector.multi_reduction <add>, %137, %cst_55 [1] : vector<17x128xf32> to vector<17xf32>
    %139 = vector.shape_cast %138 : vector<17xf32> to vector<17x1xf32>
    %cst_56 = arith.constant 1.280000e+02 : f32
    %140 = vector.broadcast %cst_56 : f32 to vector<17x1xf32>
    %141 = arith.divf %139, %140 : vector<17x1xf32>
    %cst_57 = arith.constant 9.99999996E-13 : f32
    %142 = vector.broadcast %cst_57 : f32 to vector<17x1xf32>
    %143 = arith.addf %141, %142 : vector<17x1xf32>
    %144 = math.rsqrt %143 : vector<17x1xf32>
    %145 = vector.broadcast %144 : vector<17x1xf32> to vector<17x128xf32>
    %146 = arith.mulf %136, %145 : vector<17x128xf32>
    %147 = vector.broadcast %128 : vector<1x128xf32> to vector<17x128xf32>
    %148 = arith.mulf %146, %147 : vector<17x128xf32>
    %149 = vector.broadcast %130 : vector<1x128xf32> to vector<17x128xf32>
    %150 = arith.addf %148, %149 : vector<17x128xf32>
    %151 = arith.truncf %150 : vector<17x128xf32> to vector<17x128xbf16>
    %c0_58 = arith.constant 0 : index
    %c0_59 = arith.constant 0 : index
    %c0_60 = arith.constant 0 : index
    %152 = vector.load %arg11[%c0_58, %c0_59, %c0_60] : memref<1x128x512xbf16, #tpu.memory_space<vmem>>, vector<1x128x512xbf16>
    %153 = vector.shape_cast %152 : vector<1x128x512xbf16> to vector<128x512xbf16>
    %cst_61 = arith.constant dense<0.000000e+00> : vector<17x512xf32>
    %154 = tpu.matmul %151, %153, %cst_61 {dimension_numbers = #tpu.dot_dimension_numbers<[1], [0], [0], [1], [0, 0, 1, 1], [], []>} : vector<17x128xbf16>, vector<128x512xbf16>, vector<17x512xf32> -> vector<17x512xf32>
    %c0_62 = arith.constant 0 : index
    %c0_63 = arith.constant 0 : index
    %c0_64 = arith.constant 0 : index
    %155 = vector.load %arg12[%c0_62, %c0_63, %c0_64] : memref<1x1x512xf32, #tpu.memory_space<vmem>>, vector<1x1x512xf32>
    %156 = vector.shape_cast %155 : vector<1x1x512xf32> to vector<1x512xf32>
    %157 = vector.broadcast %156 : vector<1x512xf32> to vector<17x512xf32>
    %158 = arith.addf %154, %157 : vector<17x512xf32>
    %159 = arith.mulf %158, %158 : vector<17x512xf32>
    %160 = arith.mulf %158, %159 : vector<17x512xf32>
    %cst_65 = arith.constant 4.471500e-02 : f32
    %161 = vector.broadcast %cst_65 : f32 to vector<17x512xf32>
    %162 = arith.mulf %161, %160 : vector<17x512xf32>
    %163 = arith.addf %158, %162 : vector<17x512xf32>
    %cst_66 = arith.constant 0.797884583 : f32
    %164 = vector.broadcast %cst_66 : f32 to vector<17x512xf32>
    %165 = arith.mulf %164, %163 : vector<17x512xf32>
    %166 = math.tanh %165 : vector<17x512xf32>
    %cst_67 = arith.constant 1.000000e+00 : f32
    %167 = vector.broadcast %cst_67 : f32 to vector<17x512xf32>
    %168 = arith.addf %167, %166 : vector<17x512xf32>
    %cst_68 = arith.constant 5.000000e-01 : f32
    %169 = vector.broadcast %cst_68 : f32 to vector<17x512xf32>
    %170 = arith.mulf %169, %168 : vector<17x512xf32>
    %171 = arith.mulf %158, %170 : vector<17x512xf32>
    %172 = arith.truncf %171 : vector<17x512xf32> to vector<17x512xbf16>
    %c0_69 = arith.constant 0 : index
    %c0_70 = arith.constant 0 : index
    %c0_71 = arith.constant 0 : index
    %173 = vector.load %arg13[%c0_69, %c0_70, %c0_71] : memref<1x512x128xbf16, #tpu.memory_space<vmem>>, vector<1x512x128xbf16>
    %174 = vector.shape_cast %173 : vector<1x512x128xbf16> to vector<512x128xbf16>
    %cst_72 = arith.constant dense<0.000000e+00> : vector<17x128xf32>
    %175 = tpu.matmul %172, %174, %cst_72 {dimension_numbers = #tpu.dot_dimension_numbers<[1], [0], [0], [1], [0, 0, 1, 1], [], []>} : vector<17x512xbf16>, vector<512x128xbf16>, vector<17x128xf32> -> vector<17x128xf32>
    %c0_73 = arith.constant 0 : index
    %c0_74 = arith.constant 0 : index
    %c0_75 = arith.constant 0 : index
    %176 = vector.load %arg14[%c0_73, %c0_74, %c0_75] : memref<1x1x128xf32, #tpu.memory_space<vmem>>, vector<1x1x128xf32>
    %177 = vector.shape_cast %176 : vector<1x1x128xf32> to vector<1x128xf32>
    %178 = vector.broadcast %177 : vector<1x128xf32> to vector<17x128xf32>
    %179 = arith.addf %175, %178 : vector<17x128xf32>
    %180 = arith.addf %126, %179 : vector<17x128xf32>
    %c0_76 = arith.constant 0 : index
    %c0_77 = arith.constant 0 : index
    %c0_78 = arith.constant 0 : index
    %181 = vector.load %arg15[%c0_76, %c0_77, %c0_78] : memref<1x17x128xf32, #tpu.memory_space<vmem>>, vector<1x17x128xf32>
    %182 = vector.shape_cast %181 : vector<1x17x128xf32> to vector<17x128xf32>
    %183 = vector.shape_cast %180 : vector<17x128xf32> to vector<1x17x128xf32>
    tpu.vector_store %arg15[%c0_76, %c0_77, %c0_78], %183 {strides = array<i32>} : memref<1x17x128xf32, #tpu.memory_space<vmem>>, vector<1x17x128xf32>,
    return
  }
  func.func @transform_0(%arg0: i32, %arg1: i32) -> (i32, i32, i32) {
    %c0_i32 = arith.constant 0 : i32
    %c0_i32_0 = arith.constant 0 : i32
    %c0_i32_1 = arith.constant 0 : i32
    return %arg0, %c0_i32, %c0_i32_0 : i32, i32, i32
  }
  func.func @transform_1(%arg0: i32, %arg1: i32) -> (i32, i32, i32) {
    %c0_i32 = arith.constant 0 : i32
    %c0_i32_0 = arith.constant 0 : i32
    %c0_i32_1 = arith.constant 0 : i32
    return %arg1, %c0_i32, %c0_i32_0 : i32, i32, i32
  }
  func.func @transform_2(%arg0: i32, %arg1: i32) -> (i32, i32, i32) {
    %c0_i32 = arith.constant 0 : i32
    %c0_i32_0 = arith.constant 0 : i32
    %c0_i32_1 = arith.constant 0 : i32
    return %arg1, %c0_i32, %c0_i32_0 : i32, i32, i32
  }
  func.func @transform_3(%arg0: i32, %arg1: i32) -> (i32, i32, i32) {
    %c0_i32 = arith.constant 0 : i32
    %c0_i32_0 = arith.constant 0 : i32
    %c0_i32_1 = arith.constant 0 : i32
    return %arg1, %c0_i32, %c0_i32_0 : i32, i32, i32
  }
  func.func @transform_4(%arg0: i32, %arg1: i32) -> (i32, i32, i32) {
    %c0_i32 = arith.constant 0 : i32
    %c0_i32_0 = arith.constant 0 : i32
    %c0_i32_1 = arith.constant 0 : i32
    return %arg1, %c0_i32, %c0_i32_0 : i32, i32, i32
  }
  func.func @transform_5(%arg0: i32, %arg1: i32) -> (i32, i32, i32) {
    %c0_i32 = arith.constant 0 : i32
    %c0_i32_0 = arith.constant 0 : i32
    %c0_i32_1 = arith.constant 0 : i32
    return %arg1, %c0_i32, %c0_i32_0 : i32, i32, i32
  }
  func.func @transform_6(%arg0: i32, %arg1: i32) -> (i32, i32, i32) {
    %c0_i32 = arith.constant 0 : i32
    %c0_i32_0 = arith.constant 0 : i32
    %c0_i32_1 = arith.constant 0 : i32
    return %arg1, %c0_i32, %c0_i32_0 : i32, i32, i32
  }
  func.func @transform_7(%arg0: i32, %arg1: i32) -> (i32, i32, i32) {
    %c0_i32 = arith.constant 0 : i32
    %c0_i32_0 = arith.constant 0 : i32
    %c0_i32_1 = arith.constant 0 : i32
    return %arg1, %c0_i32, %c0_i32_0 : i32, i32, i32
  }
  func.func @transform_8(%arg0: i32, %arg1: i32) -> (i32, i32, i32) {
    %c0_i32 = arith.constant 0 : i32
    %c0_i32_0 = arith.constant 0 : i32
    %c0_i32_1 = arith.constant 0 : i32
    return %arg1, %c0_i32, %c0_i32_0 : i32, i32, i32
  }
  func.func @transform_9(%arg0: i32, %arg1: i32) -> (i32, i32, i32) {
    %c0_i32 = arith.constant 0 : i32
    %c0_i32_0 = arith.constant 0 : i32
    %c0_i32_1 = arith.constant 0 : i32
    return %arg1, %c0_i32, %c0_i32_0 : i32, i32, i32
  }
  func.func @transform_10(%arg0: i32, %arg1: i32) -> (i32, i32, i32) {
    %c0_i32 = arith.constant 0 : i32
    %c0_i32_0 = arith.constant 0 : i32
    %c0_i32_1 = arith.constant 0 : i32
    return %arg1, %c0_i32, %c0_i32_0 : i32, i32, i32
  }
  func.func @transform_11(%arg0: i32, %arg1: i32) -> (i32, i32, i32) {
    %c0_i32 = arith.constant 0 : i32
    %c0_i32_0 = arith.constant 0 : i32
    %c0_i32_1 = arith.constant 0 : i32
    return %arg1, %c0_i32, %c0_i32_0 : i32, i32, i32
  }
  func.func @transform_12(%arg0: i32, %arg1: i32) -> (i32, i32, i32) {
    %c0_i32 = arith.constant 0 : i32
    %c0_i32_0 = arith.constant 0 : i32
    %c0_i32_1 = arith.constant 0 : i32
    return %arg1, %c0_i32, %c0_i32_0 : i32, i32, i32
  }
  func.func @transform_13(%arg0: i32, %arg1: i32) -> (i32, i32, i32) {
    %c0_i32 = arith.constant 0 : i32
    %c0_i32_0 = arith.constant 0 : i32
    %c0_i32_1 = arith.constant 0 : i32
    return %arg0, %c0_i32, %c0_i32_0 : i32, i32, i32
  }
}

module attributes {stable_mosaic.version = 11 : i64} {
  func.func @_head_kernel(%arg0: i32, %arg1: memref<1x17x128xf32, #tpu.memory_space<vmem>>, %arg2: memref<1x128xf32, #tpu.memory_space<vmem>>, %arg3: memref<1x128xf32, #tpu.memory_space<vmem>>, %arg4: memref<128x384xbf16, #tpu.memory_space<vmem>>, %arg5: memref<1x384xf32, #tpu.memory_space<vmem>>, %arg6: memref<128x128xbf16, #tpu.memory_space<vmem>>, %arg7: memref<1x128xf32, #tpu.memory_space<vmem>>, %arg8: memref<1x128xf32, #tpu.memory_space<vmem>>, %arg9: memref<1x1xf32, #tpu.memory_space<vmem>>, %arg10: memref<128x128xbf16, #tpu.memory_space<vmem>>, %arg11: memref<1x128xf32, #tpu.memory_space<vmem>>, %arg12: memref<1x128xf32, #tpu.memory_space<vmem>>, %arg13: memref<1x128xf32, #tpu.memory_space<vmem>>, %arg14: memref<128x128xbf16, #tpu.memory_space<vmem>>, %arg15: memref<1x128xf32, #tpu.memory_space<vmem>>, %arg16: memref<1x1x128xf32, #tpu.memory_space<vmem>>, %arg17: memref<1x1x128xf32, #tpu.memory_space<vmem>>) attributes {dimension_semantics = [#tpu.dimension_semantics<parallel>], iteration_bounds = array<i64: 2>, scalar_prefetch = 0 : i64, scratch_operands = 0 : i64, tpu.core_type = #tpu.core_type<tc>, window_params = [{transform_indices = @transform_0, window_bounds = array<i64: 1, 17, 128>}, {pipeline_mode = #tpu.pipeline_mode<synchronous>, transform_indices = @transform_1, window_bounds = array<i64: 1, 128>}, {pipeline_mode = #tpu.pipeline_mode<synchronous>, transform_indices = @transform_2, window_bounds = array<i64: 1, 128>}, {pipeline_mode = #tpu.pipeline_mode<synchronous>, transform_indices = @transform_3, window_bounds = array<i64: 128, 384>}, {pipeline_mode = #tpu.pipeline_mode<synchronous>, transform_indices = @transform_4, window_bounds = array<i64: 1, 384>}, {pipeline_mode = #tpu.pipeline_mode<synchronous>, transform_indices = @transform_5, window_bounds = array<i64: 128, 128>}, {pipeline_mode = #tpu.pipeline_mode<synchronous>, transform_indices = @transform_6, window_bounds = array<i64: 1, 128>}, {pipeline_mode = #tpu.pipeline_mode<synchronous>, transform_indices = @transform_7, window_bounds = array<i64: 1, 128>}, {pipeline_mode = #tpu.pipeline_mode<synchronous>, transform_indices = @transform_8, window_bounds = array<i64: 1, 1>}, {pipeline_mode = #tpu.pipeline_mode<synchronous>, transform_indices = @transform_9, window_bounds = array<i64: 128, 128>}, {pipeline_mode = #tpu.pipeline_mode<synchronous>, transform_indices = @transform_10, window_bounds = array<i64: 1, 128>}, {pipeline_mode = #tpu.pipeline_mode<synchronous>, transform_indices = @transform_11, window_bounds = array<i64: 1, 128>}, {pipeline_mode = #tpu.pipeline_mode<synchronous>, transform_indices = @transform_12, window_bounds = array<i64: 1, 128>}, {pipeline_mode = #tpu.pipeline_mode<synchronous>, transform_indices = @transform_13, window_bounds = array<i64: 128, 128>}, {pipeline_mode = #tpu.pipeline_mode<synchronous>, transform_indices = @transform_14, window_bounds = array<i64: 1, 128>}, {transform_indices = @transform_15, window_bounds = array<i64: 1, 1, 128>}, {transform_indices = @transform_16, window_bounds = array<i64: 1, 1, 128>}]} {
    %c0 = arith.constant 0 : index
    %c0_0 = arith.constant 0 : index
    %c0_1 = arith.constant 0 : index
    %0 = vector.load %arg1[%c0, %c0_0, %c0_1] : memref<1x17x128xf32, #tpu.memory_space<vmem>>, vector<1x17x128xf32>
    %1 = vector.shape_cast %0 : vector<1x17x128xf32> to vector<17x128xf32>
    %c0_2 = arith.constant 0 : index
    %c0_3 = arith.constant 0 : index
    %2 = vector.load %arg2[%c0_2, %c0_3] : memref<1x128xf32, #tpu.memory_space<vmem>>, vector<1x128xf32>
    %c0_4 = arith.constant 0 : index
    %c0_5 = arith.constant 0 : index
    %3 = vector.load %arg3[%c0_4, %c0_5] : memref<1x128xf32, #tpu.memory_space<vmem>>, vector<1x128xf32>
    %cst = arith.constant dense<0.000000e+00> : vector<17xf32>
    %4 = vector.multi_reduction <add>, %1, %cst [1] : vector<17x128xf32> to vector<17xf32>
    %5 = vector.shape_cast %4 : vector<17xf32> to vector<17x1xf32>
    %cst_6 = arith.constant 1.280000e+02 : f32
    %6 = vector.broadcast %cst_6 : f32 to vector<17x1xf32>
    %7 = arith.divf %5, %6 : vector<17x1xf32>
    %8 = vector.broadcast %7 : vector<17x1xf32> to vector<17x128xf32>
    %9 = arith.subf %1, %8 : vector<17x128xf32>
    %10 = arith.mulf %9, %9 : vector<17x128xf32>
    %cst_7 = arith.constant dense<0.000000e+00> : vector<17xf32>
    %11 = vector.multi_reduction <add>, %10, %cst_7 [1] : vector<17x128xf32> to vector<17xf32>
    %12 = vector.shape_cast %11 : vector<17xf32> to vector<17x1xf32>
    %cst_8 = arith.constant 1.280000e+02 : f32
    %13 = vector.broadcast %cst_8 : f32 to vector<17x1xf32>
    %14 = arith.divf %12, %13 : vector<17x1xf32>
    %cst_9 = arith.constant 9.99999996E-13 : f32
    %15 = vector.broadcast %cst_9 : f32 to vector<17x1xf32>
    %16 = arith.addf %14, %15 : vector<17x1xf32>
    %17 = math.rsqrt %16 : vector<17x1xf32>
    %18 = vector.broadcast %17 : vector<17x1xf32> to vector<17x128xf32>
    %19 = arith.mulf %9, %18 : vector<17x128xf32>
    %20 = vector.broadcast %2 : vector<1x128xf32> to vector<17x128xf32>
    %21 = arith.mulf %19, %20 : vector<17x128xf32>
    %22 = vector.broadcast %3 : vector<1x128xf32> to vector<17x128xf32>
    %23 = arith.addf %21, %22 : vector<17x128xf32>
    %cst_10 = arith.constant dense<0.000000e+00> : vector<128xf32>
    %24 = vector.multi_reduction <add>, %23, %cst_10 [0] : vector<17x128xf32> to vector<128xf32>
    %25 = vector.shape_cast %24 : vector<128xf32> to vector<1x128xf32>
    %cst_11 = arith.constant 1.700000e+01 : f32
    %26 = vector.broadcast %cst_11 : f32 to vector<1x128xf32>
    %27 = arith.divf %25, %26 : vector<1x128xf32>
    %c0_12 = arith.constant 0 : index
    %c0_13 = arith.constant 0 : index
    %c0_14 = arith.constant 0 : index
    %28 = vector.load %arg16[%c0_12, %c0_13, %c0_14] : memref<1x1x128xf32, #tpu.memory_space<vmem>>, vector<1x1x128xf32>
    %29 = vector.shape_cast %28 : vector<1x1x128xf32> to vector<1x128xf32>
    %30 = vector.shape_cast %27 : vector<1x128xf32> to vector<1x1x128xf32>
    tpu.vector_store %arg16[%c0_12, %c0_13, %c0_14], %30 {strides = array<i32>} : memref<1x1x128xf32, #tpu.memory_space<vmem>>, vector<1x1x128xf32>,
    %31 = vector.extract_strided_slice %23 {offsets = [1, 0], sizes = [16, 128], strides = [1, 1]} : vector<17x128xf32> to vector<16x128xf32>
    %c0_15 = arith.constant 0 : index
    %c0_16 = arith.constant 0 : index
    %32 = vector.load %arg4[%c0_15, %c0_16] : memref<128x384xbf16, #tpu.memory_space<vmem>>, vector<128x384xbf16>
    %c0_17 = arith.constant 0 : index
    %c0_18 = arith.constant 0 : index
    %33 = vector.load %arg5[%c0_17, %c0_18] : memref<1x384xf32, #tpu.memory_space<vmem>>, vector<1x384xf32>
    %c0_19 = arith.constant 0 : index
    %c0_20 = arith.constant 0 : index
    %34 = vector.load %arg6[%c0_19, %c0_20] : memref<128x128xbf16, #tpu.memory_space<vmem>>, vector<128x128xbf16>
    %c0_21 = arith.constant 0 : index
    %c0_22 = arith.constant 0 : index
    %35 = vector.load %arg7[%c0_21, %c0_22] : memref<1x128xf32, #tpu.memory_space<vmem>>, vector<1x128xf32>
    %36 = arith.truncf %31 : vector<16x128xf32> to vector<16x128xbf16>
    %cst_23 = arith.constant dense<0.000000e+00> : vector<16x384xf32>
    %37 = tpu.matmul %36, %32, %cst_23 {dimension_numbers = #tpu.dot_dimension_numbers<[1], [0], [0], [1], [0, 0, 1, 1], [], []>} : vector<16x128xbf16>, vector<128x384xbf16>, vector<16x384xf32> -> vector<16x384xf32>
    %38 = vector.broadcast %33 : vector<1x384xf32> to vector<16x384xf32>
    %39 = arith.addf %37, %38 : vector<16x384xf32>
    %40 = vector.extract_strided_slice %39 {offsets = [0, 0], sizes = [16, 32], strides = [1, 1]} : vector<16x384xf32> to vector<16x32xf32>
    %cst_24 = arith.constant 0.176776692 : f32
    %41 = vector.broadcast %cst_24 : f32 to vector<16x32xf32>
    %42 = arith.mulf %40, %41 : vector<16x32xf32>
    %43 = vector.extract_strided_slice %39 {offsets = [0, 128], sizes = [16, 32], strides = [1, 1]} : vector<16x384xf32> to vector<16x32xf32>
    %44 = vector.extract_strided_slice %39 {offsets = [0, 256], sizes = [16, 32], strides = [1, 1]} : vector<16x384xf32> to vector<16x32xf32>
    %45 = arith.truncf %42 : vector<16x32xf32> to vector<16x32xbf16>
    %46 = arith.truncf %43 : vector<16x32xf32> to vector<16x32xbf16>
    "tpu.trace_start"() <{level = 10 : i32, message = "ld,md->lm"}> : () -> ()
    %cst_25 = arith.constant dense<0.000000e+00> : vector<16x16xf32>
    %47 = tpu.matmul %45, %46, %cst_25 {dimension_numbers = #tpu.dot_dimension_numbers<[1], [1], [0], [0], [0, 0, 1, 0], [], []>} : vector<16x32xbf16>, vector<16x32xbf16>, vector<16x16xf32> -> vector<16x16xf32>
    "tpu.trace_stop"() : () -> ()
    %cst_26 = arith.constant dense<0xFF800000> : vector<16xf32>
    %48 = vector.multi_reduction <maximumf>, %47, %cst_26 [1] : vector<16x16xf32> to vector<16xf32>
    %49 = vector.shape_cast %48 : vector<16xf32> to vector<16x1xf32>
    %50 = vector.broadcast %49 : vector<16x1xf32> to vector<16x16xf32>
    %51 = arith.subf %47, %50 : vector<16x16xf32>
    %52 = math.exp %51 : vector<16x16xf32>
    %cst_27 = arith.constant dense<0.000000e+00> : vector<16xf32>
    %53 = vector.multi_reduction <add>, %52, %cst_27 [1] : vector<16x16xf32> to vector<16xf32>
    %54 = vector.shape_cast %53 : vector<16xf32> to vector<16x1xf32>
    %55 = vector.broadcast %54 : vector<16x1xf32> to vector<16x16xf32>
    %56 = arith.divf %52, %55 : vector<16x16xf32>
    %57 = arith.truncf %56 : vector<16x16xf32> to vector<16x16xbf16>
    %58 = arith.truncf %44 : vector<16x32xf32> to vector<16x32xbf16>
    "tpu.trace_start"() <{level = 10 : i32, message = "lm,md->ld"}> : () -> ()
    %cst_28 = arith.constant dense<0.000000e+00> : vector<16x32xf32>
    %59 = tpu.matmul %57, %58, %cst_28 {dimension_numbers = #tpu.dot_dimension_numbers<[1], [0], [0], [1], [0, 0, 1, 1], [], []>} : vector<16x16xbf16>, vector<16x32xbf16>, vector<16x32xf32> -> vector<16x32xf32>
    "tpu.trace_stop"() : () -> ()
    %60 = vector.extract_strided_slice %39 {offsets = [0, 32], sizes = [16, 32], strides = [1, 1]} : vector<16x384xf32> to vector<16x32xf32>
    %cst_29 = arith.constant 0.176776692 : f32
    %61 = vector.broadcast %cst_29 : f32 to vector<16x32xf32>
    %62 = arith.mulf %60, %61 : vector<16x32xf32>
    %63 = vector.extract_strided_slice %39 {offsets = [0, 160], sizes = [16, 32], strides = [1, 1]} : vector<16x384xf32> to vector<16x32xf32>
    %64 = vector.extract_strided_slice %39 {offsets = [0, 288], sizes = [16, 32], strides = [1, 1]} : vector<16x384xf32> to vector<16x32xf32>
    %65 = arith.truncf %62 : vector<16x32xf32> to vector<16x32xbf16>
    %66 = arith.truncf %63 : vector<16x32xf32> to vector<16x32xbf16>
    "tpu.trace_start"() <{level = 10 : i32, message = "ld,md->lm"}> : () -> ()
    %cst_30 = arith.constant dense<0.000000e+00> : vector<16x16xf32>
    %67 = tpu.matmul %65, %66, %cst_30 {dimension_numbers = #tpu.dot_dimension_numbers<[1], [1], [0], [0], [0, 0, 1, 0], [], []>} : vector<16x32xbf16>, vector<16x32xbf16>, vector<16x16xf32> -> vector<16x16xf32>
    "tpu.trace_stop"() : () -> ()
    %cst_31 = arith.constant dense<0xFF800000> : vector<16xf32>
    %68 = vector.multi_reduction <maximumf>, %67, %cst_31 [1] : vector<16x16xf32> to vector<16xf32>
    %69 = vector.shape_cast %68 : vector<16xf32> to vector<16x1xf32>
    %70 = vector.broadcast %69 : vector<16x1xf32> to vector<16x16xf32>
    %71 = arith.subf %67, %70 : vector<16x16xf32>
    %72 = math.exp %71 : vector<16x16xf32>
    %cst_32 = arith.constant dense<0.000000e+00> : vector<16xf32>
    %73 = vector.multi_reduction <add>, %72, %cst_32 [1] : vector<16x16xf32> to vector<16xf32>
    %74 = vector.shape_cast %73 : vector<16xf32> to vector<16x1xf32>
    %75 = vector.broadcast %74 : vector<16x1xf32> to vector<16x16xf32>
    %76 = arith.divf %72, %75 : vector<16x16xf32>
    %77 = arith.truncf %76 : vector<16x16xf32> to vector<16x16xbf16>
    %78 = arith.truncf %64 : vector<16x32xf32> to vector<16x32xbf16>
    "tpu.trace_start"() <{level = 10 : i32, message = "lm,md->ld"}> : () -> ()
    %cst_33 = arith.constant dense<0.000000e+00> : vector<16x32xf32>
    %79 = tpu.matmul %77, %78, %cst_33 {dimension_numbers = #tpu.dot_dimension_numbers<[1], [0], [0], [1], [0, 0, 1, 1], [], []>} : vector<16x16xbf16>, vector<16x32xbf16>, vector<16x32xf32> -> vector<16x32xf32>
    "tpu.trace_stop"() : () -> ()
    %80 = vector.extract_strided_slice %39 {offsets = [0, 64], sizes = [16, 32], strides = [1, 1]} : vector<16x384xf32> to vector<16x32xf32>
    %cst_34 = arith.constant 0.176776692 : f32
    %81 = vector.broadcast %cst_34 : f32 to vector<16x32xf32>
    %82 = arith.mulf %80, %81 : vector<16x32xf32>
    %83 = vector.extract_strided_slice %39 {offsets = [0, 192], sizes = [16, 32], strides = [1, 1]} : vector<16x384xf32> to vector<16x32xf32>
    %84 = vector.extract_strided_slice %39 {offsets = [0, 320], sizes = [16, 32], strides = [1, 1]} : vector<16x384xf32> to vector<16x32xf32>
    %85 = arith.truncf %82 : vector<16x32xf32> to vector<16x32xbf16>
    %86 = arith.truncf %83 : vector<16x32xf32> to vector<16x32xbf16>
    "tpu.trace_start"() <{level = 10 : i32, message = "ld,md->lm"}> : () -> ()
    %cst_35 = arith.constant dense<0.000000e+00> : vector<16x16xf32>
    %87 = tpu.matmul %85, %86, %cst_35 {dimension_numbers = #tpu.dot_dimension_numbers<[1], [1], [0], [0], [0, 0, 1, 0], [], []>} : vector<16x32xbf16>, vector<16x32xbf16>, vector<16x16xf32> -> vector<16x16xf32>
    "tpu.trace_stop"() : () -> ()
    %cst_36 = arith.constant dense<0xFF800000> : vector<16xf32>
    %88 = vector.multi_reduction <maximumf>, %87, %cst_36 [1] : vector<16x16xf32> to vector<16xf32>
    %89 = vector.shape_cast %88 : vector<16xf32> to vector<16x1xf32>
    %90 = vector.broadcast %89 : vector<16x1xf32> to vector<16x16xf32>
    %91 = arith.subf %87, %90 : vector<16x16xf32>
    %92 = math.exp %91 : vector<16x16xf32>
    %cst_37 = arith.constant dense<0.000000e+00> : vector<16xf32>
    %93 = vector.multi_reduction <add>, %92, %cst_37 [1] : vector<16x16xf32> to vector<16xf32>
    %94 = vector.shape_cast %93 : vector<16xf32> to vector<16x1xf32>
    %95 = vector.broadcast %94 : vector<16x1xf32> to vector<16x16xf32>
    %96 = arith.divf %92, %95 : vector<16x16xf32>
    %97 = arith.truncf %96 : vector<16x16xf32> to vector<16x16xbf16>
    %98 = arith.truncf %84 : vector<16x32xf32> to vector<16x32xbf16>
    "tpu.trace_start"() <{level = 10 : i32, message = "lm,md->ld"}> : () -> ()
    %cst_38 = arith.constant dense<0.000000e+00> : vector<16x32xf32>
    %99 = tpu.matmul %97, %98, %cst_38 {dimension_numbers = #tpu.dot_dimension_numbers<[1], [0], [0], [1], [0, 0, 1, 1], [], []>} : vector<16x16xbf16>, vector<16x32xbf16>, vector<16x32xf32> -> vector<16x32xf32>
    "tpu.trace_stop"() : () -> ()
    %100 = vector.extract_strided_slice %39 {offsets = [0, 96], sizes = [16, 32], strides = [1, 1]} : vector<16x384xf32> to vector<16x32xf32>
    %cst_39 = arith.constant 0.176776692 : f32
    %101 = vector.broadcast %cst_39 : f32 to vector<16x32xf32>
    %102 = arith.mulf %100, %101 : vector<16x32xf32>
    %103 = vector.extract_strided_slice %39 {offsets = [0, 224], sizes = [16, 32], strides = [1, 1]} : vector<16x384xf32> to vector<16x32xf32>
    %104 = vector.extract_strided_slice %39 {offsets = [0, 352], sizes = [16, 32], strides = [1, 1]} : vector<16x384xf32> to vector<16x32xf32>
    %105 = arith.truncf %102 : vector<16x32xf32> to vector<16x32xbf16>
    %106 = arith.truncf %103 : vector<16x32xf32> to vector<16x32xbf16>
    "tpu.trace_start"() <{level = 10 : i32, message = "ld,md->lm"}> : () -> ()
    %cst_40 = arith.constant dense<0.000000e+00> : vector<16x16xf32>
    %107 = tpu.matmul %105, %106, %cst_40 {dimension_numbers = #tpu.dot_dimension_numbers<[1], [1], [0], [0], [0, 0, 1, 0], [], []>} : vector<16x32xbf16>, vector<16x32xbf16>, vector<16x16xf32> -> vector<16x16xf32>
    "tpu.trace_stop"() : () -> ()
    %cst_41 = arith.constant dense<0xFF800000> : vector<16xf32>
    %108 = vector.multi_reduction <maximumf>, %107, %cst_41 [1] : vector<16x16xf32> to vector<16xf32>
    %109 = vector.shape_cast %108 : vector<16xf32> to vector<16x1xf32>
    %110 = vector.broadcast %109 : vector<16x1xf32> to vector<16x16xf32>
    %111 = arith.subf %107, %110 : vector<16x16xf32>
    %112 = math.exp %111 : vector<16x16xf32>
    %cst_42 = arith.constant dense<0.000000e+00> : vector<16xf32>
    %113 = vector.multi_reduction <add>, %112, %cst_42 [1] : vector<16x16xf32> to vector<16xf32>
    %114 = vector.shape_cast %113 : vector<16xf32> to vector<16x1xf32>
    %115 = vector.broadcast %114 : vector<16x1xf32> to vector<16x16xf32>
    %116 = arith.divf %112, %115 : vector<16x16xf32>
    %117 = arith.truncf %116 : vector<16x16xf32> to vector<16x16xbf16>
    %118 = arith.truncf %104 : vector<16x32xf32> to vector<16x32xbf16>
    "tpu.trace_start"() <{level = 10 : i32, message = "lm,md->ld"}> : () -> ()
    %cst_43 = arith.constant dense<0.000000e+00> : vector<16x32xf32>
    %119 = tpu.matmul %117, %118, %cst_43 {dimension_numbers = #tpu.dot_dimension_numbers<[1], [0], [0], [1], [0, 0, 1, 1], [], []>} : vector<16x16xbf16>, vector<16x32xbf16>, vector<16x32xf32> -> vector<16x32xf32>
    "tpu.trace_stop"() : () -> ()
    %120 = tpu.concatenate %59, %79, %99, %119 in 1 : vector<16x32xf32>, vector<16x32xf32>, vector<16x32xf32>, vector<16x32xf32> -> vector<16x128xf32>
    %121 = arith.truncf %120 : vector<16x128xf32> to vector<16x128xbf16>
    %cst_44 = arith.constant dense<0.000000e+00> : vector<16x128xf32>
    %122 = tpu.matmul %121, %34, %cst_44 {dimension_numbers = #tpu.dot_dimension_numbers<[1], [0], [0], [1], [0, 0, 1, 1], [], []>} : vector<16x128xbf16>, vector<128x128xbf16>, vector<16x128xf32> -> vector<16x128xf32>
    %123 = vector.broadcast %35 : vector<1x128xf32> to vector<16x128xf32>
    %124 = arith.addf %122, %123 : vector<16x128xf32>
    %c0_45 = arith.constant 0 : index
    %c0_46 = arith.constant 0 : index
    %125 = vector.load %arg8[%c0_45, %c0_46] : memref<1x128xf32, #tpu.memory_space<vmem>>, vector<1x128xf32>
    %126 = vector.broadcast %125 : vector<1x128xf32> to vector<16x128xf32>
    %127 = arith.mulf %124, %126 : vector<16x128xf32>
    %cst_47 = arith.constant dense<0.000000e+00> : vector<16xf32>
    %128 = vector.multi_reduction <add>, %127, %cst_47 [1] : vector<16x128xf32> to vector<16xf32>
    %129 = vector.shape_cast %128 : vector<16xf32> to vector<16x1xf32>
    %c0_48 = arith.constant 0 : index
    %c0_49 = arith.constant 0 : index
    %130 = vector.load %arg9[%c0_48, %c0_49] : memref<1x1xf32, #tpu.memory_space<vmem>>, vector<1x1xf32>
    %131 = vector.broadcast %130 : vector<1x1xf32> to vector<16x1xf32>
    %132 = arith.addf %129, %131 : vector<16x1xf32>
    %133 = arith.negf %132 : vector<16x1xf32>
    %134 = math.exp %133 : vector<16x1xf32>
    %cst_50 = arith.constant 1.000000e+00 : f32
    %135 = vector.broadcast %cst_50 : f32 to vector<16x1xf32>
    %136 = arith.addf %135, %134 : vector<16x1xf32>
    %137 = arith.divf %135, %136 : vector<16x1xf32>
    %138 = tpu.iota {dimensions = array<i32: 0>} : vector<16x1xi32>
    %cst_51 = arith.constant 0.000000e+00 : f32
    %139 = vector.broadcast %cst_51 : f32 to vector<16x1xf32>
    %cst_52 = arith.constant dense<0xFF800000> : vector<1xf32>
    %140 = vector.multi_reduction <maximumf>, %137, %cst_52 [0] : vector<16x1xf32> to vector<1xf32>
    %141 = vector.shape_cast %140 : vector<1xf32> to vector<1x1xf32>
    %142 = vector.broadcast %141 : vector<1x1xf32> to vector<16x1xf32>
    %143 = arith.cmpf oge, %137, %142 : vector<16x1xf32>
    %c16_i32 = arith.constant 16 : i32
    %144 = vector.broadcast %c16_i32 : i32 to vector<16x1xi32>
    %145 = arith.select %143, %138, %144 : vector<16x1xi1>, vector<16x1xi32>
    %cst_53 = arith.constant dense<2147483647> : vector<1xi32>
    %146 = vector.multi_reduction <minsi>, %145, %cst_53 [0] : vector<16x1xi32> to vector<1xi32>
    %147 = vector.shape_cast %146 : vector<1xi32> to vector<1x1xi32>
    %148 = vector.broadcast %147 : vector<1x1xi32> to vector<16x1xi32>
    %149 = arith.cmpi eq, %138, %148 : vector<16x1xi32>
    %150 = arith.extui %149 : vector<16x1xi1> to vector<16x1xi32>
    %151 = arith.sitofp %150 : vector<16x1xi32> to vector<16x1xf32>
    %152 = arith.addf %139, %151 : vector<16x1xf32>
    %cst_54 = arith.constant 0.000000e+00 : f32
    %153 = vector.broadcast %cst_54 : f32 to vector<16x1xf32>
    %154 = arith.cmpf ogt, %151, %153 : vector<16x1xf32>
    %cst_55 = arith.constant -1.000000e+30 : f32
    %155 = vector.broadcast %cst_55 : f32 to vector<16x1xf32>
    %156 = arith.select %154, %155, %137 : vector<16x1xi1>, vector<16x1xf32>
    %cst_56 = arith.constant dense<0xFF800000> : vector<1xf32>
    %157 = vector.multi_reduction <maximumf>, %156, %cst_56 [0] : vector<16x1xf32> to vector<1xf32>
    %158 = vector.shape_cast %157 : vector<1xf32> to vector<1x1xf32>
    %159 = vector.broadcast %158 : vector<1x1xf32> to vector<16x1xf32>
    %160 = arith.cmpf oge, %156, %159 : vector<16x1xf32>
    %c16_i32_57 = arith.constant 16 : i32
    %161 = vector.broadcast %c16_i32_57 : i32 to vector<16x1xi32>
    %162 = arith.select %160, %138, %161 : vector<16x1xi1>, vector<16x1xi32>
    %cst_58 = arith.constant dense<2147483647> : vector<1xi32>
    %163 = vector.multi_reduction <minsi>, %162, %cst_58 [0] : vector<16x1xi32> to vector<1xi32>
    %164 = vector.shape_cast %163 : vector<1xi32> to vector<1x1xi32>
    %165 = vector.broadcast %164 : vector<1x1xi32> to vector<16x1xi32>
    %166 = arith.cmpi eq, %138, %165 : vector<16x1xi32>
    %167 = arith.extui %166 : vector<16x1xi1> to vector<16x1xi32>
    %168 = arith.sitofp %167 : vector<16x1xi32> to vector<16x1xf32>
    %169 = arith.addf %152, %168 : vector<16x1xf32>
    %cst_59 = arith.constant 0.000000e+00 : f32
    %170 = vector.broadcast %cst_59 : f32 to vector<16x1xf32>
    %171 = arith.cmpf ogt, %168, %170 : vector<16x1xf32>
    %cst_60 = arith.constant -1.000000e+30 : f32
    %172 = vector.broadcast %cst_60 : f32 to vector<16x1xf32>
    %173 = arith.select %171, %172, %156 : vector<16x1xi1>, vector<16x1xf32>
    %cst_61 = arith.constant dense<0xFF800000> : vector<1xf32>
    %174 = vector.multi_reduction <maximumf>, %173, %cst_61 [0] : vector<16x1xf32> to vector<1xf32>
    %175 = vector.shape_cast %174 : vector<1xf32> to vector<1x1xf32>
    %176 = vector.broadcast %175 : vector<1x1xf32> to vector<16x1xf32>
    %177 = arith.cmpf oge, %173, %176 : vector<16x1xf32>
    %c16_i32_62 = arith.constant 16 : i32
    %178 = vector.broadcast %c16_i32_62 : i32 to vector<16x1xi32>
    %179 = arith.select %177, %138, %178 : vector<16x1xi1>, vector<16x1xi32>
    %cst_63 = arith.constant dense<2147483647> : vector<1xi32>
    %180 = vector.multi_reduction <minsi>, %179, %cst_63 [0] : vector<16x1xi32> to vector<1xi32>
    %181 = vector.shape_cast %180 : vector<1xi32> to vector<1x1xi32>
    %182 = vector.broadcast %181 : vector<1x1xi32> to vector<16x1xi32>
    %183 = arith.cmpi eq, %138, %182 : vector<16x1xi32>
    %184 = arith.extui %183 : vector<16x1xi1> to vector<16x1xi32>
    %185 = arith.sitofp %184 : vector<16x1xi32> to vector<16x1xf32>
    %186 = arith.addf %169, %185 : vector<16x1xf32>
    %cst_64 = arith.constant 0.000000e+00 : f32
    %187 = vector.broadcast %cst_64 : f32 to vector<16x1xf32>
    %188 = arith.cmpf ogt, %185, %187 : vector<16x1xf32>
    %cst_65 = arith.constant -1.000000e+30 : f32
    %189 = vector.broadcast %cst_65 : f32 to vector<16x1xf32>
    %190 = arith.select %188, %189, %173 : vector<16x1xi1>, vector<16x1xf32>
    %cst_66 = arith.constant dense<0xFF800000> : vector<1xf32>
    %191 = vector.multi_reduction <maximumf>, %190, %cst_66 [0] : vector<16x1xf32> to vector<1xf32>
    %192 = vector.shape_cast %191 : vector<1xf32> to vector<1x1xf32>
    %193 = vector.broadcast %192 : vector<1x1xf32> to vector<16x1xf32>
    %194 = arith.cmpf oge, %190, %193 : vector<16x1xf32>
    %c16_i32_67 = arith.constant 16 : i32
    %195 = vector.broadcast %c16_i32_67 : i32 to vector<16x1xi32>
    %196 = arith.select %194, %138, %195 : vector<16x1xi1>, vector<16x1xi32>
    %cst_68 = arith.constant dense<2147483647> : vector<1xi32>
    %197 = vector.multi_reduction <minsi>, %196, %cst_68 [0] : vector<16x1xi32> to vector<1xi32>
    %198 = vector.shape_cast %197 : vector<1xi32> to vector<1x1xi32>
    %199 = vector.broadcast %198 : vector<1x1xi32> to vector<16x1xi32>
    %200 = arith.cmpi eq, %138, %199 : vector<16x1xi32>
    %201 = arith.extui %200 : vector<16x1xi1> to vector<16x1xi32>
    %202 = arith.sitofp %201 : vector<16x1xi32> to vector<16x1xf32>
    %203 = arith.addf %186, %202 : vector<16x1xf32>
    %cst_69 = arith.constant 0.000000e+00 : f32
    %204 = vector.broadcast %cst_69 : f32 to vector<16x1xf32>
    %205 = arith.cmpf ogt, %202, %204 : vector<16x1xf32>
    %cst_70 = arith.constant -1.000000e+30 : f32
    %206 = vector.broadcast %cst_70 : f32 to vector<16x1xf32>
    %207 = arith.select %205, %206, %190 : vector<16x1xi1>, vector<16x1xf32>
    %cst_71 = arith.constant dense<0xFF800000> : vector<1xf32>
    %208 = vector.multi_reduction <maximumf>, %207, %cst_71 [0] : vector<16x1xf32> to vector<1xf32>
    %209 = vector.shape_cast %208 : vector<1xf32> to vector<1x1xf32>
    %210 = vector.broadcast %209 : vector<1x1xf32> to vector<16x1xf32>
    %211 = arith.cmpf oge, %207, %210 : vector<16x1xf32>
    %c16_i32_72 = arith.constant 16 : i32
    %212 = vector.broadcast %c16_i32_72 : i32 to vector<16x1xi32>
    %213 = arith.select %211, %138, %212 : vector<16x1xi1>, vector<16x1xi32>
    %cst_73 = arith.constant dense<2147483647> : vector<1xi32>
    %214 = vector.multi_reduction <minsi>, %213, %cst_73 [0] : vector<16x1xi32> to vector<1xi32>
    %215 = vector.shape_cast %214 : vector<1xi32> to vector<1x1xi32>
    %216 = vector.broadcast %215 : vector<1x1xi32> to vector<16x1xi32>
    %217 = arith.cmpi eq, %138, %216 : vector<16x1xi32>
    %218 = arith.extui %217 : vector<16x1xi1> to vector<16x1xi32>
    %219 = arith.sitofp %218 : vector<16x1xi32> to vector<16x1xf32>
    %220 = arith.addf %203, %219 : vector<16x1xf32>
    %cst_74 = arith.constant 0.000000e+00 : f32
    %221 = vector.broadcast %cst_74 : f32 to vector<16x1xf32>
    %222 = arith.cmpf ogt, %219, %221 : vector<16x1xf32>
    %cst_75 = arith.constant -1.000000e+30 : f32
    %223 = vector.broadcast %cst_75 : f32 to vector<16x1xf32>
    %224 = arith.select %222, %223, %207 : vector<16x1xi1>, vector<16x1xf32>
    %cst_76 = arith.constant dense<0xFF800000> : vector<1xf32>
    %225 = vector.multi_reduction <maximumf>, %224, %cst_76 [0] : vector<16x1xf32> to vector<1xf32>
    %226 = vector.shape_cast %225 : vector<1xf32> to vector<1x1xf32>
    %227 = vector.broadcast %226 : vector<1x1xf32> to vector<16x1xf32>
    %228 = arith.cmpf oge, %224, %227 : vector<16x1xf32>
    %c16_i32_77 = arith.constant 16 : i32
    %229 = vector.broadcast %c16_i32_77 : i32 to vector<16x1xi32>
    %230 = arith.select %228, %138, %229 : vector<16x1xi1>, vector<16x1xi32>
    %cst_78 = arith.constant dense<2147483647> : vector<1xi32>
    %231 = vector.multi_reduction <minsi>, %230, %cst_78 [0] : vector<16x1xi32> to vector<1xi32>
    %232 = vector.shape_cast %231 : vector<1xi32> to vector<1x1xi32>
    %233 = vector.broadcast %232 : vector<1x1xi32> to vector<16x1xi32>
    %234 = arith.cmpi eq, %138, %233 : vector<16x1xi32>
    %235 = arith.extui %234 : vector<16x1xi1> to vector<16x1xi32>
    %236 = arith.sitofp %235 : vector<16x1xi32> to vector<16x1xf32>
    %237 = arith.addf %220, %236 : vector<16x1xf32>
    %cst_79 = arith.constant 0.000000e+00 : f32
    %238 = vector.broadcast %cst_79 : f32 to vector<16x1xf32>
    %239 = arith.cmpf ogt, %236, %238 : vector<16x1xf32>
    %cst_80 = arith.constant -1.000000e+30 : f32
    %240 = vector.broadcast %cst_80 : f32 to vector<16x1xf32>
    %241 = arith.select %239, %240, %224 : vector<16x1xi1>, vector<16x1xf32>
    %cst_81 = arith.constant dense<0xFF800000> : vector<1xf32>
    %242 = vector.multi_reduction <maximumf>, %241, %cst_81 [0] : vector<16x1xf32> to vector<1xf32>
    %243 = vector.shape_cast %242 : vector<1xf32> to vector<1x1xf32>
    %244 = vector.broadcast %243 : vector<1x1xf32> to vector<16x1xf32>
    %245 = arith.cmpf oge, %241, %244 : vector<16x1xf32>
    %c16_i32_82 = arith.constant 16 : i32
    %246 = vector.broadcast %c16_i32_82 : i32 to vector<16x1xi32>
    %247 = arith.select %245, %138, %246 : vector<16x1xi1>, vector<16x1xi32>
    %cst_83 = arith.constant dense<2147483647> : vector<1xi32>
    %248 = vector.multi_reduction <minsi>, %247, %cst_83 [0] : vector<16x1xi32> to vector<1xi32>
    %249 = vector.shape_cast %248 : vector<1xi32> to vector<1x1xi32>
    %250 = vector.broadcast %249 : vector<1x1xi32> to vector<16x1xi32>
    %251 = arith.cmpi eq, %138, %250 : vector<16x1xi32>
    %252 = arith.extui %251 : vector<16x1xi1> to vector<16x1xi32>
    %253 = arith.sitofp %252 : vector<16x1xi32> to vector<16x1xf32>
    %254 = arith.addf %237, %253 : vector<16x1xf32>
    %cst_84 = arith.constant 0.000000e+00 : f32
    %255 = vector.broadcast %cst_84 : f32 to vector<16x1xf32>
    %256 = arith.cmpf ogt, %253, %255 : vector<16x1xf32>
    %cst_85 = arith.constant -1.000000e+30 : f32
    %257 = vector.broadcast %cst_85 : f32 to vector<16x1xf32>
    %258 = arith.select %256, %257, %241 : vector<16x1xi1>, vector<16x1xf32>
    %cst_86 = arith.constant dense<0xFF800000> : vector<1xf32>
    %259 = vector.multi_reduction <maximumf>, %258, %cst_86 [0] : vector<16x1xf32> to vector<1xf32>
    %260 = vector.shape_cast %259 : vector<1xf32> to vector<1x1xf32>
    %261 = vector.broadcast %260 : vector<1x1xf32> to vector<16x1xf32>
    %262 = arith.cmpf oge, %258, %261 : vector<16x1xf32>
    %c16_i32_87 = arith.constant 16 : i32
    %263 = vector.broadcast %c16_i32_87 : i32 to vector<16x1xi32>
    %264 = arith.select %262, %138, %263 : vector<16x1xi1>, vector<16x1xi32>
    %cst_88 = arith.constant dense<2147483647> : vector<1xi32>
    %265 = vector.multi_reduction <minsi>, %264, %cst_88 [0] : vector<16x1xi32> to vector<1xi32>
    %266 = vector.shape_cast %265 : vector<1xi32> to vector<1x1xi32>
    %267 = vector.broadcast %266 : vector<1x1xi32> to vector<16x1xi32>
    %268 = arith.cmpi eq, %138, %267 : vector<16x1xi32>
    %269 = arith.extui %268 : vector<16x1xi1> to vector<16x1xi32>
    %270 = arith.sitofp %269 : vector<16x1xi32> to vector<16x1xf32>
    %271 = arith.addf %254, %270 : vector<16x1xf32>
    %272 = vector.broadcast %271 : vector<16x1xf32> to vector<16x128xf32>
    %273 = arith.mulf %272, %31 : vector<16x128xf32>
    %cst_89 = arith.constant dense<0.000000e+00> : vector<128xf32>
    %274 = vector.multi_reduction <add>, %273, %cst_89 [0] : vector<16x128xf32> to vector<128xf32>
    %275 = vector.shape_cast %274 : vector<128xf32> to vector<1x128xf32>
    %cst_90 = arith.constant 1.250000e-01 : f32
    %276 = vector.broadcast %cst_90 : f32 to vector<1x128xf32>
    %277 = arith.mulf %275, %276 : vector<1x128xf32>
    %278 = arith.truncf %277 : vector<1x128xf32> to vector<1x128xbf16>
    %c0_91 = arith.constant 0 : index
    %c0_92 = arith.constant 0 : index
    %279 = vector.load %arg10[%c0_91, %c0_92] : memref<128x128xbf16, #tpu.memory_space<vmem>>, vector<128x128xbf16>
    %cst_93 = arith.constant dense<0.000000e+00> : vector<1x128xf32>
    %280 = tpu.matmul %278, %279, %cst_93 {dimension_numbers = #tpu.dot_dimension_numbers<[1], [0], [0], [1], [0, 0, 1, 1], [], []>} : vector<1x128xbf16>, vector<128x128xbf16>, vector<1x128xf32> -> vector<1x128xf32>
    %c0_94 = arith.constant 0 : index
    %c0_95 = arith.constant 0 : index
    %281 = vector.load %arg11[%c0_94, %c0_95] : memref<1x128xf32, #tpu.memory_space<vmem>>, vector<1x128xf32>
    %282 = arith.addf %280, %281 : vector<1x128xf32>
    %c0_96 = arith.constant 0 : index
    %c0_97 = arith.constant 0 : index
    %283 = vector.load %arg12[%c0_96, %c0_97] : memref<1x128xf32, #tpu.memory_space<vmem>>, vector<1x128xf32>
    %c0_98 = arith.constant 0 : index
    %c0_99 = arith.constant 0 : index
    %284 = vector.load %arg13[%c0_98, %c0_99] : memref<1x128xf32, #tpu.memory_space<vmem>>, vector<1x128xf32>
    %cst_100 = arith.constant dense<0.000000e+00> : vector<1xf32>
    %285 = vector.multi_reduction <add>, %282, %cst_100 [1] : vector<1x128xf32> to vector<1xf32>
    %286 = vector.shape_cast %285 : vector<1xf32> to vector<1x1xf32>
    %cst_101 = arith.constant 1.280000e+02 : f32
    %287 = vector.broadcast %cst_101 : f32 to vector<1x1xf32>
    %288 = arith.divf %286, %287 : vector<1x1xf32>
    %289 = vector.broadcast %288 : vector<1x1xf32> to vector<1x128xf32>
    %290 = arith.subf %282, %289 : vector<1x128xf32>
    %291 = arith.mulf %290, %290 : vector<1x128xf32>
    %cst_102 = arith.constant dense<0.000000e+00> : vector<1xf32>
    %292 = vector.multi_reduction <add>, %291, %cst_102 [1] : vector<1x128xf32> to vector<1xf32>
    %293 = vector.shape_cast %292 : vector<1xf32> to vector<1x1xf32>
    %cst_103 = arith.constant 1.280000e+02 : f32
    %294 = vector.broadcast %cst_103 : f32 to vector<1x1xf32>
    %295 = arith.divf %293, %294 : vector<1x1xf32>
    %cst_104 = arith.constant 9.99999974E-6 : f32
    %296 = vector.broadcast %cst_104 : f32 to vector<1x1xf32>
    %297 = arith.addf %295, %296 : vector<1x1xf32>
    %298 = math.rsqrt %297 : vector<1x1xf32>
    %299 = vector.broadcast %298 : vector<1x1xf32> to vector<1x128xf32>
    %300 = arith.mulf %290, %299 : vector<1x128xf32>
    %301 = arith.mulf %300, %283 : vector<1x128xf32>
    %302 = arith.addf %301, %284 : vector<1x128xf32>
    %303 = arith.truncf %302 : vector<1x128xf32> to vector<1x128xbf16>
    %c0_105 = arith.constant 0 : index
    %c0_106 = arith.constant 0 : index
    %304 = vector.load %arg14[%c0_105, %c0_106] : memref<128x128xbf16, #tpu.memory_space<vmem>>, vector<128x128xbf16>
    %cst_107 = arith.constant dense<0.000000e+00> : vector<1x128xf32>
    %305 = tpu.matmul %303, %304, %cst_107 {dimension_numbers = #tpu.dot_dimension_numbers<[1], [0], [0], [1], [0, 0, 1, 1], [], []>} : vector<1x128xbf16>, vector<128x128xbf16>, vector<1x128xf32> -> vector<1x128xf32>
    %c0_108 = arith.constant 0 : index
    %c0_109 = arith.constant 0 : index
    %306 = vector.load %arg15[%c0_108, %c0_109] : memref<1x128xf32, #tpu.memory_space<vmem>>, vector<1x128xf32>
    %307 = arith.addf %305, %306 : vector<1x128xf32>
    %c0_110 = arith.constant 0 : index
    %c0_111 = arith.constant 0 : index
    %c0_112 = arith.constant 0 : index
    %308 = vector.load %arg17[%c0_110, %c0_111, %c0_112] : memref<1x1x128xf32, #tpu.memory_space<vmem>>, vector<1x1x128xf32>
    %309 = vector.shape_cast %308 : vector<1x1x128xf32> to vector<1x128xf32>
    %310 = vector.shape_cast %307 : vector<1x128xf32> to vector<1x1x128xf32>
    tpu.vector_store %arg17[%c0_110, %c0_111, %c0_112], %310 {strides = array<i32>} : memref<1x1x128xf32, #tpu.memory_space<vmem>>, vector<1x1x128xf32>,
    return
  }
  func.func @transform_0(%arg0: i32) -> (i32, i32, i32) {
    %c0_i32 = arith.constant 0 : i32
    %c0_i32_0 = arith.constant 0 : i32
    %c0_i32_1 = arith.constant 0 : i32
    return %arg0, %c0_i32, %c0_i32_0 : i32, i32, i32
  }
  func.func @transform_1(%arg0: i32) -> (i32, i32) {
    %c0_i32 = arith.constant 0 : i32
    %c0_i32_0 = arith.constant 0 : i32
    %c0_i32_1 = arith.constant 0 : i32
    return %c0_i32, %c0_i32_0 : i32, i32
  }
  func.func @transform_2(%arg0: i32) -> (i32, i32) {
    %c0_i32 = arith.constant 0 : i32
    %c0_i32_0 = arith.constant 0 : i32
    %c0_i32_1 = arith.constant 0 : i32
    return %c0_i32, %c0_i32_0 : i32, i32
  }
  func.func @transform_3(%arg0: i32) -> (i32, i32) {
    %c0_i32 = arith.constant 0 : i32
    %c0_i32_0 = arith.constant 0 : i32
    %c0_i32_1 = arith.constant 0 : i32
    return %c0_i32, %c0_i32_0 : i32, i32
  }
  func.func @transform_4(%arg0: i32) -> (i32, i32) {
    %c0_i32 = arith.constant 0 : i32
    %c0_i32_0 = arith.constant 0 : i32
    %c0_i32_1 = arith.constant 0 : i32
    return %c0_i32, %c0_i32_0 : i32, i32
  }
  func.func @transform_5(%arg0: i32) -> (i32, i32) {
    %c0_i32 = arith.constant 0 : i32
    %c0_i32_0 = arith.constant 0 : i32
    %c0_i32_1 = arith.constant 0 : i32
    return %c0_i32, %c0_i32_0 : i32, i32
  }
  func.func @transform_6(%arg0: i32) -> (i32, i32) {
    %c0_i32 = arith.constant 0 : i32
    %c0_i32_0 = arith.constant 0 : i32
    %c0_i32_1 = arith.constant 0 : i32
    return %c0_i32, %c0_i32_0 : i32, i32
  }
  func.func @transform_7(%arg0: i32) -> (i32, i32) {
    %c0_i32 = arith.constant 0 : i32
    %c0_i32_0 = arith.constant 0 : i32
    %c0_i32_1 = arith.constant 0 : i32
    return %c0_i32, %c0_i32_0 : i32, i32
  }
  func.func @transform_8(%arg0: i32) -> (i32, i32) {
    %c0_i32 = arith.constant 0 : i32
    %c0_i32_0 = arith.constant 0 : i32
    %c0_i32_1 = arith.constant 0 : i32
    return %c0_i32, %c0_i32_0 : i32, i32
  }
  func.func @transform_9(%arg0: i32) -> (i32, i32) {
    %c0_i32 = arith.constant 0 : i32
    %c0_i32_0 = arith.constant 0 : i32
    %c0_i32_1 = arith.constant 0 : i32
    return %c0_i32, %c0_i32_0 : i32, i32
  }
  func.func @transform_10(%arg0: i32) -> (i32, i32) {
    %c0_i32 = arith.constant 0 : i32
    %c0_i32_0 = arith.constant 0 : i32
    %c0_i32_1 = arith.constant 0 : i32
    return %c0_i32, %c0_i32_0 : i32, i32
  }
  func.func @transform_11(%arg0: i32) -> (i32, i32) {
    %c0_i32 = arith.constant 0 : i32
    %c0_i32_0 = arith.constant 0 : i32
    %c0_i32_1 = arith.constant 0 : i32
    return %c0_i32, %c0_i32_0 : i32, i32
  }
  func.func @transform_12(%arg0: i32) -> (i32, i32) {
    %c0_i32 = arith.constant 0 : i32
    %c0_i32_0 = arith.constant 0 : i32
    %c0_i32_1 = arith.constant 0 : i32
    return %c0_i32, %c0_i32_0 : i32, i32
  }
  func.func @transform_13(%arg0: i32) -> (i32, i32) {
    %c0_i32 = arith.constant 0 : i32
    %c0_i32_0 = arith.constant 0 : i32
    %c0_i32_1 = arith.constant 0 : i32
    return %c0_i32, %c0_i32_0 : i32, i32
  }
  func.func @transform_14(%arg0: i32) -> (i32, i32) {
    %c0_i32 = arith.constant 0 : i32
    %c0_i32_0 = arith.constant 0 : i32
    %c0_i32_1 = arith.constant 0 : i32
    return %c0_i32, %c0_i32_0 : i32, i32
  }
  func.func @transform_15(%arg0: i32) -> (i32, i32, i32) {
    %c0_i32 = arith.constant 0 : i32
    %c0_i32_0 = arith.constant 0 : i32
    %c0_i32_1 = arith.constant 0 : i32
    return %arg0, %c0_i32, %c0_i32_0 : i32, i32, i32
  }
  func.func @transform_16(%arg0: i32) -> (i32, i32, i32) {
    %c0_i32 = arith.constant 0 : i32
    %c0_i32_0 = arith.constant 0 : i32
    %c0_i32_1 = arith.constant 0 : i32
    return %arg0, %c0_i32, %c0_i32_0 : i32, i32, i32
  }
}

</mosaic_0001>

<bundles_post_ra>
// kernel: vit_encoder_forward.3
= control target key start
LH: loop header
LB: loop body
LE: loop exit
PB: predicated region body
PF: predicated region fallthrough
CT: control target
= control target key end

     0   :  { %s1053_s18 = smov 0   ;;  %s1251_s0 = inlined_call_operand.vmem [shape: f32[2,16,768], index: 0, kind: input, shape index: {}]   ;;  %s1252_s1 = inlined_call_operand.vmem [shape: bf16[768,128], index: 1, kind: input, shape index: {}]   ;;  %s1253_s2 = inlined_call_operand.vmem [shape: f32[1,128], index: 2, kind: input, shape index: {}]   ;;  %s1254_s3 = inlined_call_operand.vmem [shape: f32[1,128], index: 3, kind: input, shape index: {}]   ;;  %s1255_s4 = inlined_call_operand.vmem [shape: f32[17,128], index: 4, kind: input, shape index: {}]   ;;  %s1256_s5 = inlined_call_operand.vmem [shape: f32[2,17,128], index: 5, kind: output, shape index: {}]  }
   0x1 LB: > { %s833_s19 = sadd.s32 4294967295, %s1021_s18   ;;  %p837_p0 = scmp.ge.s32.totalorder %s1021_s18, 1  ;;  %s1021_s18 = sphi %s1053_s18, %s15_s18  }
   0x2   : > { %p187_p1 = scmp.lt.s32.totalorder %s1021_s18, 3 }
   0x4   : > { %p188_p2 = pnand %p837_p0, %p187_p1 }
   0x5   : > { %p215_p3 = scmp.lt.s32.totalorder (!%p188_p2), %s833_s19, 1 }
   0x6   : > { %191 = sbr.rel (%p188_p2) target bundleno = 285 (0x11d), region = 40 }
   0xb   : > { %v967_v0 = vld [vmem:[%s1252_s1 + $0x78] sm:$0xff]   ;;  %v971_v4 = vld [vmem:[%s1252_s1 + $0x70] sm:$0xff]   ;;  %v975_v8 = vld [vmem:[%s1252_s1 + $0x68] sm:$0xff]   ;;  %s1258_s19 = smov (!%p215_p3, %s833_s19), 1  ;;  %vm761_vm0 = vcmask 1040384  }
   0xc   : > { %v968_v1 = vld [vmem:[%s1252_s1 + $0x38] sm:$0xff]   ;;  %891 = vmatprep.subr.bf16.mxu0 %v967_v0  ;;  %v972_v5 = vld [vmem:[%s1252_s1 + $0x30] sm:$0xff]   ;;  %v976_v9 = vld [vmem:[%s1252_s1 + $0x28] sm:$0xff]   ;;  %s957_s24 = smul.u32 96, %s1258_s19 }
   0xd   : > { %v969_v2 = vld [vmem:[%s1252_s1 + $0xf8] sm:$0xff]   ;;  %892 = vmatpush3.bf16.msra.mxu0 %v968_v1  ;;  %v973_v6 = vld [vmem:[%s1252_s1 + $0xf0] sm:$0xff]   ;;  %v977_v10 = vld [vmem:[%s1252_s1 + $0xe8] sm:$0xff]  }
   0xe   : > { %v970_v3 = vld [vmem:[%s1252_s1 + $0xb8] sm:$0xff]   ;;  %913 = vmatprep.subr.bf16.mxu1 %v969_v2  ;;  %893 = vmatprep.subr.bf16.mxu0 %v971_v4  ;;  %v974_v7 = vld [vmem:[%s1252_s1 + $0xb0] sm:$0xff]   ;;  %v978_v11 = vld [vmem:[%s1252_s1 + $0xa8] sm:$0xff]   ;;  %s1158_s10 = scalar_lea.vmem %s1251_s0, %s957_s24 }
   0xf   : > { %914 = vmatpush3.bf16.msra.mxu1 %v970_v3  ;;  %v979_v12 = vld [vmem:[%s1252_s1 + $0x60] sm:$0xff]   ;;  %v983_v16 = vld [vmem:[%s1252_s1 + $0x58] sm:$0xff]   ;;  %v987_v20 = vld [vmem:[%s1252_s1 + $0x50] sm:$0xff]  }
  0x10   : > { %915 = vmatprep.subr.bf16.mxu1 %v973_v6  ;;  %v980_v13 = vld [vmem:[%s1252_s1 + $0x20] sm:$0xff]   ;;  %v984_v17 = vld [vmem:[%s1252_s1 + $0x18] sm:$0xff]   ;;  %v988_v21 = vld [vmem:[%s1252_s1 + $0x10] sm:$0xff]  }
  0x11   : > { %894 = vmatpush3.bf16.msra.mxu0 %v972_v5  ;;  %v981_v14 = vld [vmem:[%s1252_s1 + $0xe0] sm:$0xff]   ;;  %v985_v18 = vld [vmem:[%s1252_s1 + $0xd8] sm:$0xff]   ;;  %v989_v22 = vld [vmem:[%s1252_s1 + $0xd0] sm:$0xff]  }
  0x12   : > { %895 = vmatprep.subr.bf16.mxu0 %v975_v8  ;;  %v982_v15 = vld [vmem:[%s1252_s1 + $0xa0] sm:$0xff]   ;;  %v986_v19 = vld [vmem:[%s1252_s1 + $0x98] sm:$0xff]   ;;  %v990_v23 = vld [vmem:[%s1252_s1 + $0x90] sm:$0xff]  }
  0x13   : > { %916 = vmatpush3.bf16.msra.mxu1 %v974_v7  ;;  %v991_v24 = vld [vmem:[%s1252_s1 + $0x48] sm:$0xff]   ;;  %v995_v28 = vld [vmem:[%s1252_s1 + $0x40] sm:$0xff]   ;;  %v233_v32 = vld [vmem:[%s1158_s10 + $0x38] sm:$0xff] }
  0x14   : > { %917 = vmatprep.subr.bf16.mxu1 %v977_v10  ;;  %v992_v25 = vld [vmem:[%s1252_s1 + $0x8] sm:$0xff]   ;;  %v996_v29 = vld [vmem:[%s1252_s1] sm:$0xff]   ;;  %v232_v36 = vld [vmem:[%s1158_s10 + $0x30] sm:$0xff] }
  0x15   : > { %896 = vmatpush3.bf16.msra.mxu0 %v976_v9  ;;  %v993_v26 = vld [vmem:[%s1252_s1 + $0xc8] sm:$0xff]   ;;  %v997_v30 = vld [vmem:[%s1252_s1 + $0xc0] sm:$0xff]   ;;  %v999_v38 = vld [vmem:[%s1252_s1 + $0x178] sm:$0xff]  }
  0x16   : > { %897 = vmatprep.subr.bf16.mxu0 %v979_v12  ;;  %v994_v27 = vld [vmem:[%s1252_s1 + $0x88] sm:$0xff]   ;;  %v998_v34 = vld [vmem:[%s1252_s1 + $0x80] sm:$0xff]   ;;  %v229_v39 = vld [vmem:[%s1158_s10 + $0x18] sm:$0xff] }
  0x17   : > { %918 = vmatpush3.bf16.msra.mxu1 %v978_v11  ;;  %v227_v31 = vld [vmem:[%s1158_s10 + $0x8] sm:$0xff]  ;;  %v226_v35 = vld [vmem:[%s1158_s10] sm:$0xff]  ;;  %v1000_v42 = vld [vmem:[%s1252_s1 + $0x138] sm:$0xff]  }
  0x18   : > { %919 = vmatprep.subr.bf16.mxu1 %v981_v14  ;;  %v239_v33 = vpack.c.bf16 %v233_v32, %v227_v31  ;;  %v238_v37 = vpack.c.bf16 %v232_v36, %v226_v35  ;;  %v235_v40 = vld [vmem:[%s1158_s10 + $0x48] sm:$0xff]  ;;  %v228_v43 = vld [vmem:[%s1158_s10 + $0x10] sm:$0xff]  ;;  %v234_v44 = vld [vmem:[%s1158_s10 + $0x40] sm:$0xff] }
  0x19   : > { %898 = vmatpush3.bf16.msra.mxu0 %v980_v13  ;;  %v241_v41 = vpack.c.bf16 %v235_v40, %v229_v39  ;;  %v240_v45 = vpack.c.bf16 %v234_v44, %v228_v43  ;;  %v1001_v46 = vld [vmem:[%s1252_s1 + $0x170] sm:$0xff]   ;;  %v1003_v48 = vld [vmem:[%s1252_s1 + $0x168] sm:$0xff]   ;;  %v1005_v50 = vld [vmem:[%s1252_s1 + $0x160] sm:$0xff]  }
  0x1a   : > { %899 = vmatprep.subr.bf16.mxu0 %v983_v16  ;;  %667 = vmatprep.mubr.bf16.mxu0 %v239_v33  ;;  %v1002_v47 = vld [vmem:[%s1252_s1 + $0x130] sm:$0xff]   ;;  %v1004_v49 = vld [vmem:[%s1252_s1 + $0x128] sm:$0xff]   ;;  %v1006_v51 = vld [vmem:[%s1252_s1 + $0x120] sm:$0xff]  }
  0x1b   : > { %920 = vmatpush3.bf16.msra.mxu1 %v982_v15  ;;  %708 = vmatprep.mubr.bf16.mxu1 %v241_v41  ;;  %v1007_v52 = vld [vmem:[%s1252_s1 + $0x158] sm:$0xff]   ;;  %v1009_v54 = vld [vmem:[%s1252_s1 + $0x150] sm:$0xff]   ;;  %v231_v55 = vld [vmem:[%s1158_s10 + $0x28] sm:$0xff] }
  0x1c   : > { %921 = vmatprep.subr.bf16.mxu1 %v985_v18  ;;  %v1008_v53 = vld [vmem:[%s1252_s1 + $0x118] sm:$0xff]   ;;  %v1010_v58 = vld [vmem:[%s1252_s1 + $0x110] sm:$0xff]   ;;  %v1011_v59 = vld [vmem:[%s1252_s1 + $0x148] sm:$0xff]  }
  0x1d   : > { %900 = vmatpush3.bf16.msra.mxu0 %v984_v17  ;;  %v237_v56 = vld [vmem:[%s1158_s10 + $0x58] sm:$0xff]  ;;  %v1012_v60 = vld [vmem:[%s1252_s1 + $0x108] sm:$0xff]   ;;  %v1013_v61 = vld [vmem:[%s1252_s1 + $0x140] sm:$0xff]  }
  0x1e   : > { %901 = vmatprep.subr.bf16.mxu0 %v987_v20  ;;  %v243_v57 = vpack.c.bf16 %v237_v56, %v231_v55  ;;  %v1014_v62 = vld [vmem:[%s1252_s1 + $0x100] sm:$0xff]   ;;  %v236_v0 = vld [vmem:[%s1158_s10 + $0x50] sm:$0xff] }
  0x1f   : > { %922 = vmatpush3.bf16.msra.mxu1 %v986_v19  ;;  %v230_v63 = vld [vmem:[%s1158_s10 + $0x20] sm:$0xff]  ;;  %s958_s10 = smul.u32 24, %s1258_s19  ;;  %v771_v32 = vld [vmem:[%s1255_s4 + $0x10] sm:$0x1] }
  0x20   : > { %923 = vmatprep.subr.bf16.mxu1 %v989_v22  ;;  %v242_v1 = vpack.c.bf16 %v236_v0, %v230_v63  ;;  %v840_v8 = vld [vmem:[%s1253_s2] ss:$0 sm:$0xff] }
  0x21   : > { %902 = vmatpush3.bf16.msra.mxu0 %v988_v21  ;;  %s224_s13 = scalar_lea.vmem %s1256_s5, %s958_s10 }
  0x22   : > { %903 = vmatprep.subr.bf16.mxu0 %v991_v24 }
  0x23   : > { %924 = vmatpush3.bf16.msra.mxu1 %v990_v23  ;;  %v758_v23 = vld [vmem:[%s1254_s3] sm:$0x1] }
  0x24   : > { %925 = vmatprep.subr.bf16.mxu1 %v993_v26 }
  0x25   : > { %904 = vmatpush3.bf16.msra.mxu0 %v992_v25 }
  0x26   : > { %905 = vmatprep.subr.bf16.mxu0 %v995_v28 }
  0x27   : > { %926 = vmatpush3.bf16.msra.mxu1 %v994_v27  ;;  %v769_v27 = vld [vmem:[%s1255_s4] sm:$0xff] }
  0x28   : > { %927 = vmatprep.subr.bf16.mxu1 %v997_v30 }
  0x29   : > { %906 = vmatpush3.bf16.msra.mxu0 %v996_v29 }
  0x2a   : > { %935 = vmatprep.subr.bf16.mxu0 %v999_v38 }
  0x2b   : > { %928 = vmatpush3.bf16.msra.mxu1 %v998_v34  ;;  %v770_v34 = vld [vmem:[%s1255_s4 + $0x8] sm:$0xff] }
  0x2c   : > { %668 = vmatmul.mubr.bf16.vlgmr.msra.gmra.mxu0 %v238_v37 }
  0x2d   : > { %936 = vmatpush3.bf16.msra.mxu0 %v1000_v42  ;;  %749 = vmatprep.mubr.bf16.mxu0 %v243_v57 }
  0x2e   : > { %709 = vmatmul.mubr.bf16.vlgmr.msra.gmra.mxu1 %v240_v45  ;;  %937 = vmatprep.subr.bf16.mxu0 %v1001_v46 }
  0x31   : > { %938 = vmatpush3.bf16.msra.mxu0 %v1002_v47 }
  0x32   : > { %939 = vmatprep.subr.bf16.mxu0 %v1003_v48 }
  0x35   : > { %940 = vmatpush3.bf16.msra.mxu0 %v1004_v49 }
  0x36   : > { %941 = vmatprep.subr.bf16.mxu0 %v1005_v50 }
  0x39   : > { %942 = vmatpush3.bf16.msra.mxu0 %v1006_v51 }
  0x3a   : > { %943 = vmatprep.subr.bf16.mxu0 %v1007_v52 }
  0x3d   : > { %944 = vmatpush3.bf16.msra.mxu0 %v1008_v53 }
  0x3e   : > { %945 = vmatprep.subr.bf16.mxu0 %v1009_v54 }
  0x41   : > { %946 = vmatpush3.bf16.msra.mxu0 %v1010_v58 }
  0x42   : > { %947 = vmatprep.subr.bf16.mxu0 %v1011_v59 }
  0x45   : > { %948 = vmatpush3.bf16.msra.mxu0 %v1012_v60 }
  0x46   : > { %949 = vmatprep.subr.bf16.mxu0 %v1013_v61 }
  0x49   : > { %950 = vmatpush3.bf16.msra.mxu0 %v1014_v62 }
  0x4c   : > { %750 = vmatmul.mubr.bf16.vlgmr.msra.gmra.mxu0 %v242_v1 }
  0xec   : > { %v907_v2 = vpop.f32.mrf.mxu0 }
  0xee   : > { %v908_v3 = vpop.f32.mrf.mxu0  ;;  %v929_v4 = vpop.f32.mrf.mxu1 }
  0xef   : > { %v909_v7 = vadd.f32 %v908_v3, %v907_v2 }
  0xf0   : > { %v910_v5 = vpop.f32.mrf.mxu0  ;;  %v930_v6 = vpop.f32.mrf.mxu1 }
  0xf1   : > { %v670_v11 = vadd.f32 %v909_v7, %v840_v8  ;;  %v931_v12 = vadd.f32 %v930_v6, %v929_v4 }
  0xf2   : > { %v911_v9 = vpop.f32.mrf.mxu0  ;;  %v932_v10 = vpop.f32.mrf.mxu1 }
  0xf3   : > { %v912_v13 = vadd.f32 %v911_v9, %v910_v5  ;;  %v711_v17 = vadd.f32 %v931_v12, %v670_v11 }
  0xf4   : > { %v933_v14 = vpop.f32.mrf.mxu1 }
  0xf5   : > { %v673_v18 = vadd.f32 %v912_v13, %v840_v8  ;;  %v934_v19 = vadd.f32 %v933_v14, %v932_v10 }
  0xf7   : > { %v714_v25 = vadd.f32 %v934_v19, %v673_v18 }
 0x10c   : > { %v951_v15 = vpop.f32.mrf.mxu0 }
 0x10e   : > { %v952_v16 = vpop.f32.mrf.mxu0 }
 0x10f   : > { %v953_v20 = vadd.f32 %v952_v16, %v951_v15 }
 0x110   : > { %v954_v21 = vpop.f32.mrf.mxu0 }
 0x111   : > { %v752_v22 = vadd.f32 %v953_v20, %v711_v17 }
 0x112   : > { %v955_v24 = vpop.f32.mrf.mxu0 }
 0x113   : > { %v762_v26 = vrot.slane %v752_v22, 7  ;;  %v956_v28 = vadd.f32 %v955_v24, %v954_v21 }
 0x115   : > { %v768_v29 = vsel %vm761_vm0, %v758_v23, %v762_v26  ;;  %v755_v30 = vadd.f32 %v956_v28, %v714_v25 }
 0x116   : > { %v772_v31 = vadd.f32 %v769_v27, %v768_v29 }
 0x117   : > { %v763_v33 = vrot.slane %v755_v30, 7 }
 0x118   : > { %775 = vst [vmem:[%s224_s13] sm:$0xff] %v772_v31 }
 0x119   : > { %v764_v35 = vsel %vm761_vm0, %v762_v26, %v763_v33  ;;  %v774_v36 = vadd.f32 %v771_v32, %v763_v33 }
 0x11a   : > { %v773_v37 = vadd.f32 %v770_v34, %v764_v35 }
 0x11b   : > { %777 = vst [vmem:[%s224_s13 + $0x10] sm:$0x1] %v774_v36 }
 0x11c   : > { %776 = vst [vmem:[%s224_s13 + $0x8] sm:$0xff] %v773_v37 }
 0x11d PF: > { %s15_s18 = sadd.s32 1, %s1021_s18  }
 0x11e   : > { %p12_p4 = scmp.ge.s32.totalorder %s15_s18, 4  }
 0x120   :  { %14 = sbr.rel (!%p12_p4) target bundleno = 1 (0x1), region = 70 }

// kernel: vit_encoder_forward.5
= control target key start
LH: loop header
LB: loop body
LE: loop exit
PB: predicated region body
PF: predicated region fallthrough
CT: control target
= control target key end

     0   :  { %s3390_s0 = inlined_call_operand.vmem [shape: f32[2,17,128], index: 0, kind: input, shape index: {}]   ;;  %s3391_s1 = inlined_call_operand.vmem [shape: f32[1,128], index: 1, kind: input, shape index: {}]   ;;  %s3392_s2 = inlined_call_operand.vmem [shape: f32[1,128], index: 2, kind: input, shape index: {}]   ;;  %s3393_s3 = inlined_call_operand.vmem [shape: bf16[128,384], index: 3, kind: input, shape index: {}]   ;;  %s3394_s4 = inlined_call_operand.vmem [shape: f32[1,384], index: 4, kind: input, shape index: {}]   ;;  %s3395_s5 = inlined_call_operand.vmem [shape: bf16[128,128], index: 5, kind: input, shape index: {}]   ;;  %s3396_s6 = inlined_call_operand.vmem [shape: f32[1,128], index: 6, kind: input, shape index: {}]   ;;  %s3397_s7 = inlined_call_operand.vmem [shape: f32[1,128], index: 7, kind: input, shape index: {}]   ;;  %s3398_s8 = inlined_call_operand.<no memory space> [shape: f32[1,1], index: 8, kind: input, shape index: {}]   ;;  %s3399_s9 = inlined_call_operand.vmem [shape: bf16[128,128], index: 9, kind: input, shape index: {}]   ;;  %s3400_s10 = inlined_call_operand.vmem [shape: f32[1,128], index: 10, kind: input, shape index: {}]   ;;  %s3401_s11 = inlined_call_operand.vmem [shape: f32[1,128], index: 11, kind: input, shape index: {}]   ;;  %s3402_s12 = inlined_call_operand.vmem [shape: f32[1,128], index: 12, kind: input, shape index: {}]   ;;  %s3403_s13 = inlined_call_operand.vmem [shape: bf16[128,128], index: 13, kind: input, shape index: {}]   ;;  %s3404_s14 = inlined_call_operand.vmem [shape: f32[1,128], index: 14, kind: input, shape index: {}]   ;;  %s3405_s15 = inlined_call_operand.hbm [shape: f32[2,1,128], index: 15, kind: output, shape index: {0}]   ;;  %s3406_s16 = inlined_call_operand.hbm [shape: f32[2,1,128], index: 16, kind: output, shape index: {1}]  }
   0x1   :  { %3413 = sst [smem:[#allocation12_spill]] %s3390_s0  ;;  %v22_v0 = vstv %s3398_s8 }
   0x2   :  { %3414 = sst [smem:[#allocation13_spill]] %s3391_s1  ;;  %23 = vst [vmem:[#allocation2] sm:$0x1] %v22_v0 }
   0x3   :  { %3415 = sst [smem:[#allocation14_spill]] %s3392_s2 }
   0x4   :  { %3416 = sst [smem:[#allocation15_spill]] %s3393_s3 }
   0x5   :  { %3417 = sst [smem:[#allocation16_spill]] %s3394_s4 }
   0x6   :  { %24 = vsyncpa [#allocation4], 0 }
   0x7   :  { %26 = vsyncpa [#allocation4 + $0x1], 0 }
   0x8   :  { %27 = vsyncpa [#allocation6], 0 }
   0x9   :  { %29 = vsyncpa [#allocation6 + $0x1], 0  ;;  %s2853_s23 = smov 0   ;;  %s2855_s24 = smov 0  }
   0xa   :  { %s2857_s25 = smov 0   ;;  %s2859_s26 = smov 0  }
   0xb LB: > { %3418 = sst [smem:[#allocation9_spill]] %s2751_s25  ;;  %s2874_s8 = sadd.s32 4294967295, %s2755_s26   ;;  %s2755_s26 = sphi %s2859_s26, %s3431_s26   ;;  %s2751_s25 = sphi %s2857_s25, %s3433_s25   ;;  %s2747_s24 = sphi %s2855_s24, %s3435_s24   ;;  %s2743_s23 = sphi %s2853_s23, %s3434_s23  }
   0xc   : > { %s2225_s27 = sadd.s32 4294967294, %s2755_s26   ;;  %s2878_s28 = sadd.s32 1, %s2755_s26  }
   0xd   : > { %3419 = sst [smem:[#allocation10_spill]] %s2878_s28  ;;  %s362_s29 = sadd.s32 1, %s2751_s25 }
   0xe   : > { %s359_s30 = ssub.s32 %s2755_s26, %s2878_s28  ;;  %p372_p0 = scmp.ne.s32.totalorder %s2751_s25, %s2747_s24 }
   0xf   : > { %p360_p1 = scmp.eq.s32.totalorder %s359_s30, 0  ;;  %p373_p2 = scmp.eq.s32.totalorder %s2874_s8, 1 }
  0x10   : > { %p378_p3 = scmp.ne.s32.totalorder %s2747_s24, %s2743_s23  ;;  %p379_p4 = scmp.eq.s32.totalorder %s2225_s27, 1 }
  0x11   : > { %s2889_s0 = scalar_select %p360_p1, %s2751_s25, %s362_s29  }
  0x12   : > { %p2891_p5 = por %p373_p2, %p372_p0  ;;  %p2895_p6 = por %p379_p4, %p378_p3 }
  0x13   : > { %3420 = sst [smem:[#allocation11_spill]] %s2889_s0  ;;  %p2228_p7 = scmp.ge.s32.totalorder %s2755_s26, 1 }
  0x14   : > { %p473_p8 = scmp.lt.s32.totalorder %s2755_s26, 3 }
  0x16   : > { %p474_p9 = pnand %p2228_p7, %p473_p8 }
  0x17   : > { %p526_p10 = scmp.lt.s32.totalorder (!%p474_p9), %s2874_s8, 1  ;;  %s3423_s27 = sld [smem:[#allocation12_spill]] (!%p474_p9) }
  0x18   : > { %477 = sbr.rel (%p474_p9) target bundleno = 3463 (0xd87), region = 80  ;;  %s3424_s3 = sld [smem:[#allocation15_spill]] (!%p474_p9) }
  0x19   : > { %s3425_s1 = sld [smem:[#allocation13_spill]] (!%p474_p9)  ;;  %s3023_s28 = sand.u32 (!%p474_p9), 1, %s2747_s24  }
  0x1a   : > { %s3426_s2 = sld [smem:[#allocation14_spill]] (!%p474_p9)  ;;  %s3410_s0 = scalar_lea.vmem (!%p474_p9), [#allocation3], %s3023_s28 }
  0x1b   : > { %s3427_s4 = sld [smem:[#allocation16_spill]] (!%p474_p9)  ;;  %s3411_s30 = smov (!%p474_p9), 96  }
  0x1c   : > { %s3412_s21 = sshll.u32 (!%p474_p9), %s2874_s8, 4  ;;  %s3429_s22 = scalar_lea.vmem (!%p474_p9), [#allocation3], %s3023_s28 }
  0x1d   : > { %s527_s19 = scalar_select %p526_p10, %s2874_s8, 1  ;;  %vm541_vm0 = vcmask 1040384   ;;  %v2757_v21 = vmov 0.0   ;;  %v2758_v41 = vmov 0   ;;  %vm2759_vm1 = vmmov 0  }
  0x1e   : > { %v2561_v18 = vld [vmem:[%s3424_s3 + $0xac] ss:$12 sps:$4 sm:$0xff]   ;;  %v2563_v19 = vld [vmem:[%s3424_s3 + $0xa8] ss:$12 sps:$4 sm:$0xff]   ;;  %v2564_v20 = vld [vmem:[%s3424_s3 + $0xb0] ss:$12 sps:$4 sm:$0xff]   ;;  %2365 = vmatprep.subr.bf16.mxu1 %v2757_v21  ;;  %846 = vmatprep.mubr.bf16.mxu0 %v2758_v41 }
  0x1f   : > { %s2493_s20 = smul.u32 24, %s527_s19  ;;  %814 = vmatprep.subr.bf16.mxu0 %v2561_v18  ;;  %2366 = vmatpush3.bf16.msra.mxu1 %v2564_v20  ;;  %v2565_v22 = vld [vmem:[%s3424_s3 + $0x94] ss:$12 sps:$4 sm:$0xff]   ;;  %v2567_v23 = vld [vmem:[%s3424_s3 + $0x90] ss:$12 sps:$4 sm:$0xff]   ;;  %vm1864_vm2 = vcmask 1046528  }
  0x20   : > { %815 = vmatpush1.bf16.msra.mxu0 %v2563_v19  ;;  %2367 = vmatprep.subr.bf16.mxu1 %v2757_v21  ;;  %v2568_v24 = vld [vmem:[%s3424_s3 + $0x98] ss:$12 sps:$4 sm:$0xff]   ;;  %v2569_v25 = vld [vmem:[%s3424_s3 + $0x7c] ss:$12 sps:$4 sm:$0xff]   ;;  %v2572_v27 = vld [vmem:[%s3424_s3 + $0x80] ss:$12 sps:$4 sm:$0xff]  }
  0x21   : > { %s530_s29 = scalar_lea.vmem %s3423_s27, %s2493_s20  ;;  %816 = vmatprep.subr.bf16.mxu0 %v2565_v22  ;;  %v2571_v26 = vld [vmem:[%s3424_s3 + $0x78] ss:$12 sps:$4 sm:$0xff]   ;;  %v2575_v29 = vld [vmem:[%s3424_s3 + $0x60] ss:$12 sps:$4 sm:$0xff]   ;;  %v2576_v30 = vld [vmem:[%s3424_s3 + $0x68] ss:$12 sps:$4 sm:$0xff]   ;;  %2381 = vmatprep.mubr.msk.bf16.mxu1 %vm2759_vm1, %v2757_v21 }
  0x22   : > { %v532_v1 = vld [vmem:[%s530_s29] sm:$0xff]  ;;  %v534_v2 = vld [vmem:[%s530_s29 + $0x10] sm:$0x1]  ;;  %v533_v3 = vld [vmem:[%s530_s29 + $0x8] sm:$0xff]  ;;  %2560 = vset.pattern.permute.xlu1 %v2758_v41  ;;  %2559 = vset.pattern.permute.xlu0 %v2758_v41  ;;  %vm672_vm3 = vsmask.f32 7424 }
  0x23   : > { %537 = vadd.xlane.f32.xlu0 %v532_v1  ;;  %v542_v4 = vsel %vm541_vm0, %v534_v2, 0.0  ;;  %2368 = vmatpush3.bf16.msra.mxu1 %v2568_v24  ;;  %v2573_v28 = vld [vmem:[%s3424_s3 + $0x64] ss:$12 sps:$4 sm:$0xff]   ;;  %v2577_v31 = vld [vmem:[%s3424_s3 + $0x4c] ss:$12 sps:$4 sm:$0xff]   ;;  %vm902_vm4 = vcmask 261120  }
  0x24   : > { %543 = vadd.xlane.f32.xlu1 %v542_v4  ;;  %817 = vmatpush1.bf16.msra.mxu0 %v2567_v23  ;;  %v2579_v32 = vld [vmem:[%s3424_s3 + $0x48] ss:$12 sps:$4 sm:$0xff]   ;;  %v2580_v33 = vld [vmem:[%s3424_s3 + $0x50] ss:$12 sps:$4 sm:$0xff]   ;;  %v2584_v36 = vld [vmem:[%s3424_s3 + $0x38] ss:$12 sps:$4 sm:$0xff]  }
  0x25   : > { %2369 = vmatprep.subr.bf16.mxu1 %v2757_v21  ;;  %818 = vmatprep.subr.bf16.mxu0 %v2569_v25  ;;  %v2581_v34 = vld [vmem:[%s3424_s3 + $0x34] ss:$12 sps:$4 sm:$0xff]   ;;  %v2583_v35 = vld [vmem:[%s3424_s3 + $0x30] ss:$12 sps:$4 sm:$0xff]   ;;  %v2587_v38 = vld [vmem:[%s3424_s3 + $0x18] ss:$12 sps:$4 sm:$0xff]  }
  0x26   : > { %v2585_v37 = vld [vmem:[%s3424_s3 + $0x1c] ss:$12 sps:$4 sm:$0xff]   ;;  %v2588_v39 = vld [vmem:[%s3424_s3 + $0x20] ss:$12 sps:$4 sm:$0xff]   ;;  %v2589_v40 = vld [vmem:[%s3424_s3 + $0x4] ss:$12 sps:$4 sm:$0xff]  }
  0x27   : > { %539 = vadd.xlane.f32.xlu0 %v533_v3  ;;  %2370 = vmatpush3.bf16.msra.mxu1 %v2572_v27  ;;  %v2591_v42 = vld [vmem:[%s3424_s3] ss:$12 sps:$4 sm:$0xff]   ;;  %v2592_v43 = vld [vmem:[%s3424_s3 + $0x8] ss:$12 sps:$4 sm:$0xff]   ;;  %vm950_vm5 = vcmask 130048   ;;  %s2761_s19 = smov 64  }
  0x28   : > { %819 = vmatpush1.bf16.msra.mxu0 %v2571_v26  ;;  %2371 = vmatprep.subr.bf16.mxu1 %v2757_v21  ;;  %v2230_v54 = vld [vmem:[%s3425_s1] ss:$0 sm:$0xff]  ;;  %s2762_s20 = smov 32   ;;  %vm1411_vm6 = vcmask 523264   ;;  %vm1414_vm7 = vcmask 785408   ;;  %vm1550_vm8 = vcmask 7168   ;;  %s2127_s1 = scalar_lea.hbm %s3405_s15, %s3412_s21 }
  0x29   : > { %820 = vmatprep.subr.bf16.mxu0 %v2573_v28  ;;  %v2231_v58 = vld [vmem:[%s3426_s2] ss:$0 sm:$0xff]  ;;  %v657_v28 = vlaneseq }
  0x2b   : > { %2372 = vmatpush3.bf16.msra.mxu1 %v2576_v30 }
  0x2c   : > { %821 = vmatpush1.bf16.msra.mxu0 %v2575_v29  ;;  %2373 = vmatprep.subr.bf16.mxu1 %v2757_v21  ;;  %v3028_v29 = vshrl.u32 %v657_v28, 7 }
  0x2d   : > { %822 = vmatprep.subr.bf16.mxu0 %v2577_v31 }
  0x2e   : > { %v663_v30 = vsub.s32 1, %v3028_v29 }
  0x2f   : > { %2374 = vmatpush3.bf16.msra.mxu1 %v2580_v33  ;;  %v636_v33 = vld [vmem:[%s3427_s4] sm:$0x7] }
  0x30   : > { %823 = vmatpush1.bf16.msra.mxu0 %v2579_v32  ;;  %2375 = vmatprep.subr.bf16.mxu1 %v2757_v21 }
  0x31   : > { %824 = vmatprep.subr.bf16.mxu0 %v2581_v34 }
  0x33   : > { %2376 = vmatpush3.bf16.msra.mxu1 %v2584_v36  ;;  %v659_v36 = vsub.s32 0, %v3028_v29 }
  0x34   : > { %825 = vmatpush1.bf16.msra.mxu0 %v2583_v35  ;;  %2377 = vmatprep.subr.bf16.mxu1 %v2757_v21 }
  0x35   : > { %826 = vmatprep.subr.bf16.mxu0 %v2585_v37  ;;  %v664_v37 = vrot.slane %v636_v33, %v663_v30 }
  0x37   : > { %2378 = vmatpush3.bf16.msra.mxu1 %v2588_v39 }
  0x38   : > { %827 = vmatpush1.bf16.msra.mxu0 %v2587_v38  ;;  %2379 = vmatprep.subr.bf16.mxu1 %v2757_v21 }
  0x39   : > { %828 = vmatprep.subr.bf16.mxu0 %v2589_v40 }
  0x3b   : > { %2380 = vmatpush3.bf16.msra.mxu1 %v2592_v43 }
  0x3c   : > { %829 = vmatpush1.bf16.msra.mxu0 %v2591_v42  ;;  %2385 = vmatprep.subr.bf16.mxu1 %v2757_v21  ;;  %v660_v42 = vrot.slane %v636_v33, %v659_v36 }
  0x3d   : > { %2409 = vmatprep.subr.bf16.mxu0 %v2757_v21 }
  0xac   : > { %v538_v5 = vpop.xlane.xlu0 %537 }
  0xad   : > { %v546_v6 = vmul.f32 0.0078125, %v538_v5  ;;  %v544_v7 = vpop.xlane.xlu1 %543 }
  0xae   : > { %v548_v8 = vmul.f32 0.0078125, %v544_v7 }
  0xaf   : > { %v2907_v9 = vsub.f32 %v532_v1, %v546_v6 }
  0xb0   : > { %v2909_v10 = vsub.f32 %v534_v2, %v548_v8  ;;  %v540_v11 = vpop.xlane.xlu0 %539 }
  0xb1   : > { %v547_v12 = vmul.f32 0.0078125, %v540_v11  ;;  %v552_v13 = vmul.f32 %v2907_v9, %v2907_v9 }
  0xb2   : > { %v554_v14 = vmul.f32 %v2909_v10, %v2909_v10 }
  0xb3   : > { %v2915_v15 = vsub.f32 %v533_v3, %v547_v12  ;;  %555 = vadd.xlane.f32.xlu1 %v552_v13 }
  0xb4   : > { %v559_v16 = vsel %vm541_vm0, %v554_v14, 0.0 }
  0xb5   : > { %v553_v17 = vmul.f32 %v2915_v15, %v2915_v15 }
  0xb7   : > { %560 = vadd.xlane.f32.xlu1 %v559_v16  ;;  %557 = vadd.xlane.f32.xlu0 %v553_v17 }
 0x13c   : > { %v556_v44 = vpop.xlane.xlu1 %555 }
 0x13d   : > { %v562_v45 = vmul.f32 0.0078125, %v556_v44 }
 0x13f   : > { %v565_v46 = vadd.f32 1e-12, %v562_v45  ;;  %v667_v45 = vsub.s32 2, %v3028_v29 }
 0x140   : > { %v561_v47 = vpop.xlane.xlu1 %560  ;;  %v558_v48 = vpop.xlane.xlu0 %557 }
 0x141   : > { %2617 = vrsqrt.f32 %v565_v46  ;;  %v564_v49 = vmul.f32 0.0078125, %v561_v47  ;;  %v563_v50 = vmul.f32 0.0078125, %v558_v48 }
 0x143   : > { %v567_v51 = vadd.f32 1e-12, %v564_v49  ;;  %v566_v52 = vadd.f32 1e-12, %v563_v50  ;;  %v668_v50 = vrot.slane %v636_v33, %v667_v45 }
 0x145   : > { %2619 = vrsqrt.f32 %v567_v51 }
 0x146   : > { %2621 = vrsqrt.f32 %v566_v52 }
 0x14e   : > { %v2618_v53 = vpop.eup %2617 }
 0x14f   : > { %v571_v55 = vmul.f32 %v2618_v53, %v2907_v9 }
 0x151   : > { %v580_v56 = vmul.f32 %v2230_v54, %v571_v55 }
 0x152   : > { %v2620_v57 = vpop.eup %2619 }
 0x153   : > { %v2622_v59 = vpop.eup %2621  ;;  %v573_v60 = vmul.f32 %v2620_v57, %v2909_v10  ;;  %v589_v63 = vadd.f32 %v2231_v58, %v580_v56 }
 0x154   : > { %v572_v61 = vmul.f32 %v2622_v59, %v2915_v15 }
 0x155   : > { %v582_v62 = vmul.f32 %v2230_v54, %v573_v60  ;;  %v1865_v5 = vrot.slane %v589_v63, 1 }
 0x156   : > { %v581_v0 = vmul.f32 %v2230_v54, %v572_v61 }
 0x157   : > { %v591_v1 = vadd.f32 %v2231_v58, %v582_v62 }
 0x158   : > { %v590_v2 = vadd.f32 %v2231_v58, %v581_v0 }
 0x159   : > { %v655_v3 = vpack.c.bf16 %v591_v1, %v591_v1  ;;  %v1868_v4 = vrot.slane %v591_v1, 1  ;;  %v593_v9 = vsel %vm541_vm0, %v591_v1, 0.0 }
 0x15a   : > { %v654_v6 = vpack.c.bf16 %v590_v2, %v589_v63  ;;  %v1866_v7 = vrot.slane %v590_v2, 1  ;;  %v592_v8 = vadd.f32 %v590_v2, %v589_v63 }
 0x15b   : > { %v681_v12 = vshll.u32 %v655_v3, 16 }
 0x15c   : > { %v676_v11 = vshll.u32 %v654_v6, 16  ;;  %v3014_v13 = vsel %vm1864_vm2, %v1866_v7, %v1868_v4  ;;  %v3016_v10 = vsel %vm1864_vm2, %v1865_v5, %v1866_v7  ;;  %v594_v14 = vadd.f32 %v593_v9, %v592_v8 }
 0x15d   : > { %v674_v15 = vshrl.u32 %v654_v6, 16  ;;  %v683_v19 = vrot.slane %v681_v12, 1 }
 0x15e   : > { %v678_v16 = vrot.slane %v676_v11, 1  ;;  %v595_v17 = vrot.slane %v594_v14, 4 }
 0x160   : > { %v679_v18 = vor.u32 %v678_v16, %v674_v15  ;;  %v596_v20 = vadd.f32 %v595_v17, %v594_v14 }
 0x162   : > { %v684_v22 = vsel %vm672_vm3, %v679_v18, %v683_v19  ;;  %v597_v23 = vrot.slane %v596_v20, 2 }
 0x163   : > { %847 = vmatmul.mubr.bf16.vlgmr.msra.gmra.mxu0 %v684_v22  ;;  %2382 = vmatmul.mubr.bf16.vlgmr.msra.gmra.mxu1 %v684_v22 }
 0x164   : > { %2387 = vmatprep.mubr.msk.bf16.mxu1 %vm2759_vm1, %v2757_v21  ;;  %2411 = vmatprep.mubr.msk.bf16.mxu0 %vm2759_vm1, %v2757_v21  ;;  %v598_v24 = vadd.f32 %v597_v23, %v596_v20 }
 0x166   : > { %v599_v25 = vrot.slane %v598_v24, 1 }
 0x168   : > { %v600_v26 = vadd.f32 %v599_v25, %v598_v24 }
 0x16a   : > { %v602_v27 = vmul.f32 0.05882353, %v600_v26 }
 0x16c   : > { %603 = vst [vmem:[%s3410_s0] sm:$0x1] %v602_v27  ;;  %s2113_s0 = scalar_lea.sflag [#allocation4], %s3023_s28 }
 0x223   : > { %v848_v31 = vpop.f32.mrf.mxu0  ;;  %v891_v32 = vpop.f32.mrf.mxu1 }
 0x224   : > { %v849_v48 = vadd.f32 %v848_v31, %v660_v42  ;;  %v892_v54 = vadd.f32 %v891_v32, %v668_v50 }
 0x225   : > { %v850_v34 = vpop.f32.mrf.mxu0  ;;  %v2383_v35 = vpop.f32.mrf.mxu1 }
 0x226   : > { %v851_v43 = vadd.f32 %v850_v34, %v664_v37  ;;  %v898_v53 = vmul.f32 0.17677669, %v849_v48 }
 0x227   : > { %v852_v38 = vpop.f32.mrf.mxu0  ;;  %v894_v39 = vpop.f32.mrf.mxu1 }
 0x228   : > { %v853_v46 = vadd.f32 %v852_v38, %v660_v42  ;;  %v895_v52 = vadd.f32 %v894_v39, %v668_v50 }
 0x229   : > { %v854_v40 = vpop.f32.mrf.mxu0  ;;  %v2384_v41 = vpop.f32.mrf.mxu1 }
 0x22a   : > { %v855_v44 = vadd.f32 %v854_v40, %v664_v37  ;;  %v899_v51 = vmul.f32 0.17677669, %v853_v46  ;;  %v3038_v56 = vpack.c.bf16 %v895_v52, %v892_v54 }
 0x22c   : > { %v901_v47 = vpack.c.bf16 %v855_v44, %v851_v43  ;;  %v900_v55 = vpack.c.bf16 %v899_v51, %v898_v53 }
 0x22e   : > { %v907_v49 = vsel %vm902_vm4, %v901_v47, 0 }
 0x22f   : > { %2386 = vmatpush3.bf16.xpose.msra.mxu1 %v907_v49 }
 0x230   : > { %2391 = vmatprep.subr.bf16.mxu1 %v2757_v21 }
 0x236   : > { %2388 = vmatmul.mubr.msk.bf16.vlgmr.msra.gmra.mxu1 %vm902_vm4, %v900_v55 }
 0x237   : > { %2392 = vmatpush3.bf16.msra.mxu1 %v3038_v56  ;;  %2393 = vmatprep.mubr.msk.bf16.mxu1 %vm2759_vm1, %v2757_v21 }
 0x238   : > { %2397 = vmatprep.subr.bf16.mxu1 %v2757_v21 }
 0x2f6   : > { %v943_v57 = vpop.f32.mrf.mxu1 }
 0x2f7   : > { %v951_v58 = vsel %vm950_vm5, %v943_v57, -inf }
 0x2f8   : > { %952 = vmax.xlane.f32.xlu0 %v951_v58  ;;  %v2389_v59 = vpop.f32.mrf.mxu1 }
 0x2fa   : > { %v946_v60 = vpop.f32.mrf.mxu1 }
 0x2fb   : > { %v954_v61 = vsel %vm950_vm5, %v946_v60, -inf }
 0x2fc   : > { %955 = vmax.xlane.f32.xlu1 %v954_v61  ;;  %v2390_v62 = vpop.f32.mrf.mxu1 }
 0x381   : > { %v953_v63 = vpop.xlane.xlu0 %952 }
 0x382   : > { %v957_v0 = vsub.f32 %v943_v57, %v953_v63 }
 0x384   : > { %v959_v1 = vmul.f32 1.442695, %v957_v0 }
 0x385   : > { %v956_v2 = vpop.xlane.xlu1 %955 }
 0x386   : > { %2623 = vpow2.f32 %v959_v1  ;;  %v958_v3 = vsub.f32 %v946_v60, %v956_v2 }
 0x388   : > { %v961_v4 = vmul.f32 1.442695, %v958_v3 }
 0x38a   : > { %2625 = vpow2.f32 %v961_v4 }
 0x393   : > { %v2624_v5 = vpop.eup %2623 }
 0x394   : > { %v963_v6 = vsel %vm950_vm5, %v2624_v5, 0.0 }
 0x395   : > { %964 = vadd.xlane.f32.xlu0 %v963_v6 }
 0x397   : > { %v2626_v7 = vpop.eup %2625 }
 0x398   : > { %v966_v8 = vsel %vm950_vm5, %v2626_v7, 0.0 }
 0x399   : > { %967 = vadd.xlane.f32.xlu1 %v966_v8 }
 0x3aa   : > { %1020 = vrot.lane.b32.xlu1 %v900_v55, %s3411_s30 }
 0x3ab   : > { %1023 = vrot.lane.b32.xlu0 %v901_v47, %s3411_s30 }
 0x3ae   : > { %1145 = vrot.lane.b32.xlu1 %v901_v47, %s2761_s19 }
 0x3af   : > { %1266 = vrot.lane.b32.xlu0 %v901_v47, %s2762_s20 }
 0x3b2   : > { %1143 = vrot.lane.b32.xlu1 %v900_v55, %s2761_s19 }
 0x3b6   : > { %1264 = vrot.lane.b32.xlu1 %v900_v55, %s2762_s20 }
 0x41e   : > { %v965_v9 = vpop.xlane.xlu0 %964 }
 0x41f   : > { %2627 = vrcp.f32 %v965_v9 }
 0x422   : > { %v968_v11 = vpop.xlane.xlu1 %967  ;;  %v1024_v14 = vpop.permute.xlu0 %1023 }
 0x423   : > { %2629 = vrcp.f32 %v968_v11  ;;  %v1029_v26 = vsel %vm902_vm4, %v1024_v14, 0 }
 0x426   : > { %v1021_v12 = vpop.permute.xlu1 %1020  ;;  %v1267_v19 = vpop.permute.xlu0 %1266 }
 0x427   : > { %v1272_v24 = vsel %vm902_vm4, %v1267_v19, 0 }
 0x42a   : > { %v1146_v15 = vpop.permute.xlu1 %1145 }
 0x42b   : > { %v1151_v16 = vsel %vm902_vm4, %v1146_v15, 0 }
 0x42c   : > { %2410 = vmatpush3.bf16.xpose.msra.mxu0 %v1151_v16  ;;  %v2628_v17 = vpop.eup %2627 }
 0x42d   : > { %2421 = vmatprep.subr.bf16.mxu0 %v2757_v21  ;;  %v970_v20 = vmul.f32 %v2628_v17, %v2624_v5 }
 0x42e   : > { %v1144_v23 = vpop.permute.xlu1 %1143 }
 0x430   : > { %v2630_v18 = vpop.eup %2629 }
 0x431   : > { %v972_v22 = vmul.f32 %v2630_v18, %v2626_v7 }
 0x432   : > { %v1265_v27 = vpop.permute.xlu1 %1264 }
 0x433   : > { %2412 = vmatmul.mubr.msk.bf16.vlgmr.msra.gmra.mxu0 %vm902_vm4, %v1144_v23  ;;  %v973_v25 = vpack.c.bf16 %v972_v22, %v970_v20 }
 0x434   : > { %2422 = vmatpush3.bf16.xpose.msra.mxu0 %v1272_v24  ;;  %2423 = vmatprep.mubr.msk.bf16.mxu0 %vm2759_vm1, %v2757_v21 }
 0x435   : > { %2394 = vmatmul.mubr.msk.bf16.vlgmr.msra.gmra.mxu1 %vm950_vm5, %v973_v25  ;;  %2433 = vmatprep.subr.bf16.mxu0 %v2757_v21 }
 0x436   : > { %2398 = vmatpush3.bf16.xpose.msra.mxu1 %v1029_v26  ;;  %2399 = vmatprep.mubr.msk.bf16.mxu1 %vm2759_vm1, %v2757_v21 }
 0x437   : > { %2403 = vmatprep.subr.bf16.mxu1 %v2757_v21 }
 0x43b   : > { %2424 = vmatmul.mubr.msk.bf16.vlgmr.msra.gmra.mxu0 %vm902_vm4, %v1265_v27 }
 0x43c   : > { %2449 = vmatprep.mubr.msk.bf16.mxu0 %vm2759_vm1, %v2757_v21 }
 0x43d   : > { %2400 = vmatmul.mubr.msk.bf16.vlgmr.msra.gmra.mxu1 %vm902_vm4, %v1021_v12 }
 0x43e   : > { %2405 = vmatprep.mubr.msk.bf16.mxu1 %vm2759_vm1, %v2757_v21 }
 0x4f3   : > { %v1187_v28 = vpop.f32.mrf.mxu0 }
 0x4f4   : > { %v1194_v45 = vsel %vm950_vm5, %v1187_v28, -inf }
 0x4f5   : > { %v3073_v30 = vpop.f32.mrf.mxu1  ;;  %v2413_v31 = vpop.f32.mrf.mxu0 }
 0x4f7   : > { %v2395_v32 = vpop.f32.mrf.mxu1  ;;  %v1190_v33 = vpop.f32.mrf.mxu0 }
 0x4f8   : > { %v1197_v48 = vsel %vm950_vm5, %v1190_v33, -inf }
 0x4f9   : > { %v3075_v34 = vpop.f32.mrf.mxu1  ;;  %v2414_v35 = vpop.f32.mrf.mxu0 }
 0x4fb   : > { %v2396_v36 = vpop.f32.mrf.mxu1  ;;  %v1308_v37 = vpop.f32.mrf.mxu0 }
 0x4fc   : > { %v1315_v50 = vsel %vm950_vm5, %v1308_v37, -inf }
 0x4fd   : > { %v1065_v38 = vpop.f32.mrf.mxu1  ;;  %v2425_v39 = vpop.f32.mrf.mxu0 }
 0x4fe   : > { %v1072_v40 = vsel %vm950_vm5, %v1065_v38, -inf }
 0x4ff   : > { %v1311_v41 = vpop.f32.mrf.mxu0  ;;  %1073 = vmax.xlane.f32.xlu0 %v1072_v40  ;;  %v2401_v42 = vpop.f32.mrf.mxu1 }
 0x500   : > { %v1318_v49 = vsel %vm950_vm5, %v1311_v41, -inf }
 0x501   : > { %v1068_v43 = vpop.f32.mrf.mxu1  ;;  %v2426_v44 = vpop.f32.mrf.mxu0 }
 0x502   : > { %v1075_v46 = vsel %vm950_vm5, %v1068_v43, -inf }
 0x503   : > { %1195 = vmax.xlane.f32.xlu0 %v1194_v45  ;;  %1076 = vmax.xlane.f32.xlu1 %v1075_v46  ;;  %v2402_v47 = vpop.f32.mrf.mxu1 }
 0x504   : > { %v2593_v47 = vld [vmem:[%s3395_s5 + $0x38] sm:$0xff]  }
 0x505   : > { %2434 = vmatpush3.bf16.msra.mxu0 %v2593_v47 }
 0x506   : > { %2435 = vmatprep.subr.bf16.mxu0 %v2757_v21 }
 0x507   : > { %1198 = vmax.xlane.f32.xlu0 %v1197_v48  ;;  %1319 = vmax.xlane.f32.xlu1 %v1318_v49  ;;  %v2594_v48 = vld [vmem:[%s3395_s5 + $0x30] sm:$0xff]   ;;  %v2595_v49 = vld [vmem:[%s3395_s5 + $0x28] sm:$0xff]  }
 0x509   : > { %2436 = vmatpush3.bf16.msra.mxu0 %v2594_v48 }
 0x50a   : > { %2437 = vmatprep.subr.bf16.mxu0 %v2757_v21 }
 0x50b   : > { %1316 = vmax.xlane.f32.xlu0 %v1315_v50  ;;  %v2596_v50 = vld [vmem:[%s3395_s5 + $0x20] sm:$0xff]  }
 0x50d   : > { %2438 = vmatpush3.bf16.msra.mxu0 %v2595_v49 }
 0x50e   : > { %2439 = vmatprep.subr.bf16.mxu0 %v2757_v21 }
 0x511   : > { %2440 = vmatpush3.bf16.msra.mxu0 %v2596_v50 }
 0x512   : > { %2441 = vmatprep.subr.bf16.mxu0 %v2757_v21 }
 0x588   : > { %v1074_v51 = vpop.xlane.xlu0 %1073 }
 0x589   : > { %v1078_v61 = vsub.f32 %v1065_v38, %v1074_v51  ;;  %v2597_v51 = vld [vmem:[%s3395_s5 + $0x18] sm:$0xff]  }
 0x58a   : > { %2442 = vmatpush3.bf16.msra.mxu0 %v2597_v51 }
 0x58b   : > { %v1080_v3 = vmul.f32 1.442695, %v1078_v61  ;;  %2443 = vmatprep.subr.bf16.mxu0 %v2757_v21 }
 0x58c   : > { %v1196_v52 = vpop.xlane.xlu0 %1195  ;;  %v1077_v53 = vpop.xlane.xlu1 %1076 }
 0x58d   : > { %v1200_v54 = vsub.f32 %v1187_v28, %v1196_v52  ;;  %v1079_v62 = vsub.f32 %v1068_v43, %v1077_v53 }
 0x58f   : > { %v1202_v55 = vmul.f32 1.442695, %v1200_v54  ;;  %v1082_v4 = vmul.f32 1.442695, %v1079_v62  ;;  %v2598_v54 = vld [vmem:[%s3395_s5 + $0x10] sm:$0xff]   ;;  %v2600_v62 = vld [vmem:[%s3395_s5] sm:$0xff]  }
 0x590   : > { %v1199_v57 = vpop.xlane.xlu0 %1198  ;;  %v1320_v58 = vpop.xlane.xlu1 %1319  ;;  %2444 = vmatpush3.bf16.msra.mxu0 %v2598_v54 }
 0x591   : > { %2631 = vpow2.f32 %v1202_v55  ;;  %v1201_v59 = vsub.f32 %v1190_v33, %v1199_v57  ;;  %v1322_v60 = vsub.f32 %v1311_v41, %v1320_v58  ;;  %v2599_v58 = vld [vmem:[%s3395_s5 + $0x8] sm:$0xff]   ;;  %2445 = vmatprep.subr.bf16.mxu0 %v2757_v21 }
 0x593   : > { %v1204_v63 = vmul.f32 1.442695, %v1201_v59  ;;  %v1325_v0 = vmul.f32 1.442695, %v1322_v60 }
 0x594   : > { %v1317_v1 = vpop.xlane.xlu0 %1316  ;;  %2446 = vmatpush3.bf16.msra.mxu0 %v2599_v58  ;;  %v3157_v58 = vadd.s32 8, %v3028_v29 }
 0x595   : > { %2633 = vpow2.f32 %v1204_v63  ;;  %v1321_v2 = vsub.f32 %v1308_v37, %v1317_v1  ;;  %2447 = vmatprep.subr.bf16.mxu0 %v2757_v21 }
 0x596   : > { %2635 = vpow2.f32 %v1325_v0 }
 0x597   : > { %v1323_v5 = vmul.f32 1.442695, %v1321_v2 }
 0x598   : > { %2448 = vmatpush3.bf16.msra.mxu0 %v2600_v62 }
 0x599   : > { %2637 = vpow2.f32 %v1323_v5  ;;  %2473 = vmatprep.subr.bf16.mxu0 %v2757_v21 }
 0x59a   : > { %2639 = vpow2.f32 %v1080_v3 }
 0x59b   : > { %2641 = vpow2.f32 %v1082_v4 }
 0x59e   : > { %v2632_v6 = vpop.eup %2631 }
 0x59f   : > { %v1206_v7 = vsel %vm950_vm5, %v2632_v6, 0.0 }
 0x5a0   : > { %1207 = vadd.xlane.f32.xlu0 %v1206_v7 }
 0x5a2   : > { %v2634_v8 = vpop.eup %2633 }
 0x5a3   : > { %v1209_v9 = vsel %vm950_vm5, %v2634_v8, 0.0  ;;  %v2636_v11 = vpop.eup %2635 }
 0x5a4   : > { %1210 = vadd.xlane.f32.xlu1 %v1209_v9  ;;  %v1330_v16 = vsel %vm950_vm5, %v2636_v11, 0.0 }
 0x5a6   : > { %v2638_v12 = vpop.eup %2637 }
 0x5a7   : > { %v2640_v14 = vpop.eup %2639  ;;  %v1327_v15 = vsel %vm950_vm5, %v2638_v12, 0.0 }
 0x5a8   : > { %v2642_v17 = vpop.eup %2641  ;;  %1328 = vadd.xlane.f32.xlu0 %v1327_v15  ;;  %1331 = vadd.xlane.f32.xlu1 %v1330_v16  ;;  %v1084_v18 = vsel %vm950_vm5, %v2640_v14, 0.0 }
 0x5a9   : > { %v1087_v19 = vsel %vm950_vm5, %v2642_v17, 0.0 }
 0x5ac   : > { %1085 = vadd.xlane.f32.xlu0 %v1084_v18  ;;  %1088 = vadd.xlane.f32.xlu1 %v1087_v19 }
 0x5bd   : > { %1217 = vrot.lane.b32.xlu1 %v3038_v56, %s2761_s19 }
 0x5c1   : > { %1338 = vrot.lane.b32.xlu1 %v3038_v56, %s2762_s20 }
 0x5c2   : > { %1096 = vrot.lane.b32.xlu0 %v3038_v56, %s3411_s30  ;;  %s2763_s30 = smov [#allocation3]  }
 0x5c3   : > { %s2669_s29 = sshll.u32 %s2763_s30, 4  ;;  %s2670_s29 = int_to_ptr.vmem [resolvable:$false] %s2669_s29 }
 0x5c4   : > { %s2671_s2 = scalar_lea.vmem %s2670_s29, 32 }
 0x629   : > { %v1208_v20 = vpop.xlane.xlu0 %1207 }
 0x62d   : > { %v1211_v22 = vpop.xlane.xlu1 %1210 }
 0x631   : > { %v1329_v23 = vpop.xlane.xlu0 %1328  ;;  %v1332_v24 = vpop.xlane.xlu1 %1331 }
 0x635   : > { %v1086_v25 = vpop.xlane.xlu0 %1085  ;;  %v1089_v26 = vpop.xlane.xlu1 %1088 }
 0x636   : > { %2643 = vrcp.f32 %v1086_v25 }
 0x637   : > { %2645 = vrcp.f32 %v1089_v26  ;;  %v2264_v26 = vld [vmem:[%s3396_s6] ss:$0 sm:$0xff] }
 0x638   : > { %2647 = vrcp.f32 %v1211_v22 }
 0x639   : > { %v1097_v27 = vpop.permute.xlu0 %1096  ;;  %2649 = vrcp.f32 %v1208_v20  ;;  %v1218_v36 = vpop.permute.xlu1 %1217 }
 0x63a   : > { %2404 = vmatpush3.bf16.msra.mxu1 %v1097_v27  ;;  %2651 = vrcp.f32 %v1329_v23 }
 0x63b   : > { %2415 = vmatprep.subr.bf16.mxu1 %v2757_v21  ;;  %2653 = vrcp.f32 %v1332_v24 }
 0x63d   : > { %v1339_v43 = vpop.permute.xlu1 %1338 }
 0x643   : > { %v2644_v28 = vpop.eup %2643 }
 0x644   : > { %v2646_v31 = vpop.eup %2645  ;;  %v1091_v32 = vmul.f32 %v2644_v28, %v2640_v14 }
 0x645   : > { %v1093_v56 = vmul.f32 %v2646_v31, %v2642_v17  ;;  %v2648_v35 = vpop.eup %2647 }
 0x646   : > { %v2650_v37 = vpop.eup %2649  ;;  %v1215_v38 = vmul.f32 %v2648_v35, %v2634_v8 }
 0x647   : > { %v1094_v33 = vpack.c.bf16 %v1093_v56, %v1091_v32  ;;  %v1213_v39 = vmul.f32 %v2650_v37, %v2632_v6  ;;  %v2652_v40 = vpop.eup %2651 }
 0x648   : > { %v2654_v42 = vpop.eup %2653  ;;  %v1334_v44 = vmul.f32 %v2652_v40, %v2638_v12 }
 0x649   : > { %2406 = vmatmul.mubr.msk.bf16.vlgmr.msra.gmra.mxu1 %vm950_vm5, %v1094_v33  ;;  %v1216_v41 = vpack.c.bf16 %v1215_v38, %v1213_v39  ;;  %v1336_v45 = vmul.f32 %v2654_v42, %v2636_v11 }
 0x64a   : > { %2416 = vmatpush3.bf16.msra.mxu1 %v1218_v36  ;;  %2417 = vmatprep.mubr.msk.bf16.mxu1 %vm2759_vm1, %v2757_v21  ;;  %v2274_v36 = vld [vmem:[#allocation2] ss:$0 sm:$0xff] }
 0x64b   : > { %2427 = vmatprep.subr.bf16.mxu1 %v2757_v21  ;;  %v1337_v46 = vpack.c.bf16 %v1336_v45, %v1334_v44 }
 0x651   : > { %2418 = vmatmul.mubr.msk.bf16.vlgmr.msra.gmra.mxu1 %vm950_vm5, %v1216_v41 }
 0x652   : > { %2428 = vmatpush3.bf16.msra.mxu1 %v1339_v43  ;;  %2429 = vmatprep.mubr.msk.bf16.mxu1 %vm2759_vm1, %v2757_v21 }
 0x653   : > { %2453 = vmatprep.subr.bf16.mxu1 %v2757_v21 }
 0x659   : > { %2430 = vmatmul.mubr.msk.bf16.vlgmr.msra.gmra.mxu1 %vm950_vm5, %v1337_v46 }
 0x65a   : > { %2469 = vmatprep.mubr.msk.bf16.mxu1 %vm2759_vm1, %v2757_v21 }
 0x709   : > { %v1136_v52 = vpop.f32.mrf.mxu1 }
 0x70b   : > { %v2407_v53 = vpop.f32.mrf.mxu1 }
 0x70d   : > { %v1139_v55 = vpop.f32.mrf.mxu1 }
 0x70e   : > { %v2544_v57 = vpack.i.bf16 %v1139_v55, %v1136_v52 }
 0x70f   : > { %v2408_v59 = vpop.f32.mrf.mxu1 }
 0x710   : > { %2545 = vrot.lane.b32.xlu1 %v2544_v57, %s2762_s20  ;;  %s3428_s20 = smov 96  }
 0x711   : > { %v1257_v60 = vpop.f32.mrf.mxu1 }
 0x713   : > { %v2419_v61 = vpop.f32.mrf.mxu1 }
 0x715   : > { %v1260_v63 = vpop.f32.mrf.mxu1 }
 0x716   : > { %v2549_v0 = vpack.i.bf16 %v1260_v63, %v1257_v60 }
 0x717   : > { %v2420_v1 = vpop.f32.mrf.mxu1 }
 0x718   : > { %2550 = vrot.lane.b32.xlu0 %v2549_v0, %s2761_s19 }
 0x719   : > { %v1378_v2 = vpop.f32.mrf.mxu1 }
 0x71b   : > { %v2431_v3 = vpop.f32.mrf.mxu1 }
 0x71d   : > { %v1381_v4 = vpop.f32.mrf.mxu1 }
 0x71e   : > { %v2554_v5 = vpack.i.bf16 %v1381_v4, %v1378_v2 }
 0x71f   : > { %v2432_v6 = vpop.f32.mrf.mxu1 }
 0x720   : > { %2555 = vrot.lane.b32.xlu1 %v2554_v5, %s3428_s20  ;;  %s2129_s20 = sshll.u32 %s3429_s22, 4  ;;  %s2130_s20 = int_to_ptr.vmem [resolvable:$true] %s2129_s20 }
 0x721   : > { %s2665_s25 = scalar_lea.vmem %s2130_s20, 16  ;;  %p2672_p0 = scmp.lt.s32.totalorder %s2130_s20, %s2670_s29 }
 0x722   : > { %p2666_p11 = scmp.ne.s32.totalorder %s2130_s20, %s2665_s25  ;;  %p2673_p1 = scmp.lt.s32.totalorder %s2671_s2, %s2665_s25 }
 0x724   : > { %p2667_p12 = pnand %p2666_p11, %p2891_p5  ;;  %p2674_p2 = por %p2673_p1, %p2672_p0 }
 0x726   : > { %p2668_p13 = pneg %p2667_p12 }
 0x728   : > { %p2675_p3 = pnand %p2674_p2, %p2668_p13 }
 0x782   : > { %v2546_v7 = vpop.permute.xlu1 %2545 }
 0x783   : > { %v2548_v9 = vunpack.i.h.bf16 %v2546_v7  ;;  %v2547_v11 = vunpack.i.l.bf16 %v2546_v7 }
 0x785   : > { %v1410_v16 = vsel %vm902_vm4, %v3075_v34, %v2548_v9  ;;  %v1409_v17 = vsel %vm902_vm4, %v3073_v30, %v2547_v11  ;;  %v2273_v30 = vld [vmem:[%s3397_s7] ss:$0 sm:$0xff] }
 0x78a   : > { %v2551_v8 = vpop.permute.xlu0 %2550 }
 0x78b   : > { %v2553_v12 = vunpack.i.h.bf16 %v2551_v8  ;;  %v2552_v14 = vunpack.i.l.bf16 %v2551_v8 }
 0x78d   : > { %v1413_v20 = vsel %vm1411_vm6, %v1410_v16, %v2553_v12  ;;  %v1412_v22 = vsel %vm1411_vm6, %v1409_v17, %v2552_v14 }
 0x792   : > { %v2556_v15 = vpop.permute.xlu1 %2555 }
 0x793   : > { %v2558_v18 = vunpack.i.h.bf16 %v2556_v15  ;;  %v2557_v19 = vunpack.i.l.bf16 %v2556_v15 }
 0x795   : > { %v1416_v23 = vsel %vm1414_vm7, %v1413_v20, %v2558_v18  ;;  %v1415_v24 = vsel %vm1414_vm7, %v1412_v22, %v2557_v19 }
 0x796   : > { %v1417_v25 = vpack.c.bf16 %v1416_v23, %v1415_v24 }
 0x798   : > { %2450 = vmatmul.mubr.bf16.vlgmr.msra.gmra.mxu0 %v1417_v25 }
 0x799   : > { %2489 = vmatprep.mubr.msk.bf16.mxu0 %vm2759_vm1, %v2757_v21 }
 0x858   : > { %v1506_v27 = vpop.f32.mrf.mxu0 }
 0x859   : > { %v1507_v34 = vadd.f32 %v2264_v26, %v1506_v27 }
 0x85a   : > { %v2451_v28 = vpop.f32.mrf.mxu0 }
 0x85b   : > { %v1520_v31 = vmul.f32 %v2273_v30, %v1507_v34 }
 0x85c   : > { %v1509_v32 = vpop.f32.mrf.mxu0 }
 0x85d   : > { %v1510_v56 = vadd.f32 %v2264_v26, %v1509_v32  ;;  %1522 = vadd.xlane.f32.xlu0 %v1520_v31 }
 0x85e   : > { %v2452_v33 = vpop.f32.mrf.mxu0 }
 0x85f   : > { %v1521_v35 = vmul.f32 %v2273_v30, %v1510_v56 }
 0x861   : > { %1524 = vadd.xlane.f32.xlu1 %v1521_v35 }
 0x8e6   : > { %v1523_v37 = vpop.xlane.xlu0 %1522 }
 0x8e7   : > { %v1533_v38 = vadd.f32 %v2274_v36, %v1523_v37 }
 0x8e9   : > { %v2275_v39 = vmul.f32 -1.442695, %v1533_v38 }
 0x8ea   : > { %v1525_v40 = vpop.xlane.xlu1 %1524 }
 0x8eb   : > { %2655 = vpow2.f32 %v2275_v39  ;;  %v1534_v41 = vadd.f32 %v2274_v36, %v1525_v40 }
 0x8ed   : > { %v2276_v42 = vmul.f32 -1.442695, %v1534_v41 }
 0x8ef   : > { %2657 = vpow2.f32 %v2276_v42 }
 0x8f8   : > { %v2656_v43 = vpop.eup %2655 }
 0x8f9   : > { %v1541_v44 = vadd.f32 1.0, %v2656_v43 }
 0x8fb   : > { %2659 = vrcp.f32 %v1541_v44 }
 0x8fc   : > { %v2658_v45 = vpop.eup %2657 }
 0x8fd   : > { %v1542_v46 = vadd.f32 1.0, %v2658_v45 }
 0x8ff   : > { %2661 = vrcp.f32 %v1542_v46 }
 0x908   : > { %v2660_v47 = vpop.eup %2659 }
 0x909   : > { %v1551_v49 = vsel %vm1550_vm8, %v2660_v47, -inf }
 0x90c   : > { %v2662_v48 = vpop.eup %2661 }
 0x90d   : > { %v1552_v50 = vsel %vm1550_vm8, %v2662_v48, -inf }
 0x90e   : > { %v1553_v51 = vmax.f32 %v1551_v49, %v1552_v50 }
 0x910   : > { %v1554_v52 = vrot.slane %v1553_v51, 4 }
 0x912   : > { %v1555_v53 = vmax.f32 %v1553_v51, %v1554_v52 }
 0x914   : > { %v1556_v54 = vrot.slane %v1555_v53, 2 }
 0x916   : > { %v1557_v55 = vmax.f32 %v1555_v53, %v1556_v54 }
 0x918   : > { %v1558_v57 = vrot.slane %v1557_v55, 1 }
 0x91a   : > { %v1559_v59 = vmax.f32 %v1557_v55, %v1558_v57 }
 0x91c   : > { %vm1560_vm9 = vcmp.ge.f32.partialorder %v2660_v47, %v1559_v59  ;;  %vm1561_vm10 = vcmp.ge.f32.partialorder %v2662_v48, %v1559_v59 }
 0x91d   : > { %v1562_v60 = vsel %vm1560_vm9, %v3028_v29, 16  ;;  %v1563_v61 = vsel %vm1561_vm10, %v3157_v58, 16 }
 0x91e   : > { %v1564_v62 = vsel %vm1550_vm8, %v1562_v60, 2147483647  ;;  %v1565_v63 = vsel %vm1550_vm8, %v1563_v61, 2147483647 }
 0x91f   : > { %vm1566_vm11 = vcmp.lt.s32.totalorder %v1564_v62, %v1565_v63 }
 0x920   : > { %v1567_v0 = vsel %vm1566_vm11, %v1564_v62, %v1565_v63 }
 0x921   : > { %v1568_v1 = vrot.slane %v1567_v0, 4 }
 0x923   : > { %vm1569_vm12 = vcmp.lt.s32.totalorder %v1567_v0, %v1568_v1 }
 0x924   : > { %v1570_v2 = vsel %vm1569_vm12, %v1567_v0, %v1568_v1 }
 0x925   : > { %v1571_v3 = vrot.slane %v1570_v2, 2 }
 0x927   : > { %vm1572_vm13 = vcmp.lt.s32.totalorder %v1570_v2, %v1571_v3 }
 0x928   : > { %v1573_v4 = vsel %vm1572_vm13, %v1570_v2, %v1571_v3 }
 0x929   : > { %v1574_v5 = vrot.slane %v1573_v4, 1 }
 0x92b   : > { %vm1575_vm14 = vcmp.lt.s32.totalorder %v1573_v4, %v1574_v5 }
 0x92c   : > { %v1576_v6 = vsel %vm1575_vm14, %v1573_v4, %v1574_v5 }
 0x92d   : > { %vm1577_vm15 = vcmp.eq.s32.totalorder %v3028_v29, %v1576_v6  ;;  %vm1578_vm1 = vcmp.eq.s32.totalorder %v3157_v58, %v1576_v6 }
 0x92e   : > { %v2277_v7 = vsel %vm1577_vm15, 1.0, %v2757_v21  ;;  %v2278_v8 = vsel %vm1578_vm1, 1.0, %v2757_v21 }
 0x92f   : > { %vm1585_vm2 = vcmp.gt.f32.partialorder %v2277_v7, 0.0  ;;  %vm1586_vm3 = vcmp.gt.f32.partialorder %v2278_v8, 0.0 }
 0x930   : > { %v1587_v9 = vsel %vm1585_vm2, -1e+30, %v2660_v47  ;;  %v1588_v11 = vsel %vm1586_vm3, -1e+30, %v2662_v48 }
 0x931   : > { %v1589_v12 = vsel %vm1550_vm8, %v1587_v9, -inf  ;;  %v1590_v14 = vsel %vm1550_vm8, %v1588_v11, -inf }
 0x932   : > { %v1591_v15 = vmax.f32 %v1589_v12, %v1590_v14 }
 0x934   : > { %v1592_v16 = vrot.slane %v1591_v15, 4 }
 0x936   : > { %v1593_v17 = vmax.f32 %v1591_v15, %v1592_v16 }
 0x938   : > { %v1594_v18 = vrot.slane %v1593_v17, 2 }
 0x93a   : > { %v1595_v19 = vmax.f32 %v1593_v17, %v1594_v18 }
 0x93c   : > { %v1596_v20 = vrot.slane %v1595_v19, 1 }
 0x93e   : > { %v1597_v22 = vmax.f32 %v1595_v19, %v1596_v20 }
 0x940   : > { %vm1598_vm4 = vcmp.ge.f32.partialorder %v1587_v9, %v1597_v22  ;;  %vm1599_vm5 = vcmp.ge.f32.partialorder %v1588_v11, %v1597_v22 }
 0x941   : > { %v1600_v23 = vsel %vm1598_vm4, %v3028_v29, 16  ;;  %v1601_v24 = vsel %vm1599_vm5, %v3157_v58, 16 }
 0x942   : > { %v1602_v25 = vsel %vm1550_vm8, %v1600_v23, 2147483647  ;;  %v1603_v26 = vsel %vm1550_vm8, %v1601_v24, 2147483647 }
 0x943   : > { %vm1604_vm6 = vcmp.lt.s32.totalorder %v1602_v25, %v1603_v26 }
 0x944   : > { %v1605_v27 = vsel %vm1604_vm6, %v1602_v25, %v1603_v26 }
 0x945   : > { %v1606_v30 = vrot.slane %v1605_v27, 4 }
 0x947   : > { %vm1607_vm7 = vcmp.lt.s32.totalorder %v1605_v27, %v1606_v30 }
 0x948   : > { %v1608_v34 = vsel %vm1607_vm7, %v1605_v27, %v1606_v30 }
 0x949   : > { %v1609_v28 = vrot.slane %v1608_v34, 2 }
 0x94b   : > { %vm1610_vm9 = vcmp.lt.s32.totalorder %v1608_v34, %v1609_v28 }
 0x94c   : > { %v1611_v31 = vsel %vm1610_vm9, %v1608_v34, %v1609_v28 }
 0x94d   : > { %v1612_v32 = vrot.slane %v1611_v31, 1 }
 0x94f   : > { %vm1613_vm10 = vcmp.lt.s32.totalorder %v1611_v31, %v1612_v32 }
 0x950   : > { %v1614_v56 = vsel %vm1613_vm10, %v1611_v31, %v1612_v32 }
 0x951   : > { %vm1615_vm11 = vcmp.eq.s32.totalorder %v3028_v29, %v1614_v56  ;;  %vm1616_vm12 = vcmp.eq.s32.totalorder %v3157_v58, %v1614_v56 }
 0x952   : > { %v2279_v33 = vsel %vm1615_vm11, 1.0, %v2757_v21  ;;  %v2280_v35 = vsel %vm1616_vm12, 1.0, %v2757_v21 }
 0x953   : > { %v1622_v36 = vadd.f32 %v2280_v35, %v2278_v8  ;;  %vm1623_vm13 = vcmp.gt.f32.partialorder %v2279_v33, 0.0  ;;  %vm1624_vm14 = vcmp.gt.f32.partialorder %v2280_v35, 0.0  ;;  %v1621_v37 = vadd.f32 %v2279_v33, %v2277_v7 }
 0x954   : > { %v1625_v38 = vsel %vm1623_vm13, -1e+30, %v1587_v9  ;;  %v1626_v39 = vsel %vm1624_vm14, -1e+30, %v1588_v11 }
 0x955   : > { %v1627_v40 = vsel %vm1550_vm8, %v1625_v38, -inf  ;;  %v1628_v41 = vsel %vm1550_vm8, %v1626_v39, -inf }
 0x956   : > { %v1629_v42 = vmax.f32 %v1627_v40, %v1628_v41 }
 0x958   : > { %v1630_v43 = vrot.slane %v1629_v42, 4 }
 0x95a   : > { %v1631_v44 = vmax.f32 %v1629_v42, %v1630_v43 }
 0x95c   : > { %v1632_v45 = vrot.slane %v1631_v44, 2 }
 0x95e   : > { %v1633_v46 = vmax.f32 %v1631_v44, %v1632_v45  ;;  %v2601_v44 = vld [vmem:[%s3399_s9 + $0x38] sm:$0xff]  }
 0x95f   : > { %2454 = vmatpush3.bf16.msra.mxu1 %v2601_v44 }
 0x960   : > { %v1634_v47 = vrot.slane %v1633_v46, 1  ;;  %2455 = vmatprep.subr.bf16.mxu1 %v2757_v21 }
 0x962   : > { %v1635_v48 = vmax.f32 %v1633_v46, %v1634_v47  ;;  %v2602_v47 = vld [vmem:[%s3399_s9 + $0x30] sm:$0xff]  }
 0x963   : > { %2456 = vmatpush3.bf16.msra.mxu1 %v2602_v47 }
 0x964   : > { %vm1636_vm15 = vcmp.ge.f32.partialorder %v1625_v38, %v1635_v48  ;;  %vm1637_vm1 = vcmp.ge.f32.partialorder %v1626_v39, %v1635_v48  ;;  %2457 = vmatprep.subr.bf16.mxu1 %v2757_v21 }
 0x965   : > { %v1638_v49 = vsel %vm1636_vm15, %v3028_v29, 16  ;;  %v1639_v50 = vsel %vm1637_vm1, %v3157_v58, 16 }
 0x966   : > { %v1640_v51 = vsel %vm1550_vm8, %v1638_v49, 2147483647  ;;  %v1641_v52 = vsel %vm1550_vm8, %v1639_v50, 2147483647  ;;  %v2603_v50 = vld [vmem:[%s3399_s9 + $0x28] sm:$0xff]  }
 0x967   : > { %vm1642_vm2 = vcmp.lt.s32.totalorder %v1640_v51, %v1641_v52  ;;  %2458 = vmatpush3.bf16.msra.mxu1 %v2603_v50 }
 0x968   : > { %v1643_v53 = vsel %vm1642_vm2, %v1640_v51, %v1641_v52  ;;  %2459 = vmatprep.subr.bf16.mxu1 %v2757_v21 }
 0x969   : > { %v1644_v54 = vrot.slane %v1643_v53, 4 }
 0x96b   : > { %vm1645_vm3 = vcmp.lt.s32.totalorder %v1643_v53, %v1644_v54 }
 0x96c   : > { %v1646_v55 = vsel %vm1645_vm3, %v1643_v53, %v1644_v54 }
 0x96d   : > { %v1647_v57 = vrot.slane %v1646_v55, 2 }
 0x96f   : > { %vm1648_vm4 = vcmp.lt.s32.totalorder %v1646_v55, %v1647_v57 }
 0x970   : > { %v1649_v59 = vsel %vm1648_vm4, %v1646_v55, %v1647_v57 }
 0x971   : > { %v1650_v60 = vrot.slane %v1649_v59, 1 }
 0x973   : > { %vm1651_vm5 = vcmp.lt.s32.totalorder %v1649_v59, %v1650_v60 }
 0x974   : > { %v1652_v61 = vsel %vm1651_vm5, %v1649_v59, %v1650_v60 }
 0x975   : > { %vm1653_vm6 = vcmp.eq.s32.totalorder %v3028_v29, %v1652_v61  ;;  %vm1654_vm7 = vcmp.eq.s32.totalorder %v3157_v58, %v1652_v61 }
 0x976   : > { %v2281_v62 = vsel %vm1653_vm6, 1.0, %v2757_v21  ;;  %v2282_v63 = vsel %vm1654_vm7, 1.0, %v2757_v21 }
 0x977   : > { %v1660_v0 = vadd.f32 %v2282_v63, %v1622_v36  ;;  %vm1661_vm9 = vcmp.gt.f32.partialorder %v2281_v62, 0.0  ;;  %vm1662_vm10 = vcmp.gt.f32.partialorder %v2282_v63, 0.0  ;;  %v1659_v1 = vadd.f32 %v2281_v62, %v1621_v37 }
 0x978   : > { %v1663_v2 = vsel %vm1661_vm9, -1e+30, %v1625_v38  ;;  %v1664_v3 = vsel %vm1662_vm10, -1e+30, %v1626_v39 }
 0x979   : > { %v1665_v4 = vsel %vm1550_vm8, %v1663_v2, -inf  ;;  %v1666_v5 = vsel %vm1550_vm8, %v1664_v3, -inf }
 0x97a   : > { %v1667_v6 = vmax.f32 %v1665_v4, %v1666_v5 }
 0x97c   : > { %v1668_v7 = vrot.slane %v1667_v6, 4 }
 0x97e   : > { %v1669_v8 = vmax.f32 %v1667_v6, %v1668_v7 }
 0x980   : > { %v1670_v9 = vrot.slane %v1669_v8, 2 }
 0x982   : > { %v1671_v11 = vmax.f32 %v1669_v8, %v1670_v9 }
 0x984   : > { %v1672_v12 = vrot.slane %v1671_v11, 1 }
 0x986   : > { %v1673_v14 = vmax.f32 %v1671_v11, %v1672_v12 }
 0x988   : > { %vm1674_vm11 = vcmp.ge.f32.partialorder %v1663_v2, %v1673_v14  ;;  %vm1675_vm12 = vcmp.ge.f32.partialorder %v1664_v3, %v1673_v14 }
 0x989   : > { %v1676_v15 = vsel %vm1674_vm11, %v3028_v29, 16  ;;  %v1677_v16 = vsel %vm1675_vm12, %v3157_v58, 16 }
 0x98a   : > { %v1678_v17 = vsel %vm1550_vm8, %v1676_v15, 2147483647  ;;  %v1679_v18 = vsel %vm1550_vm8, %v1677_v16, 2147483647 }
 0x98b   : > { %vm1680_vm13 = vcmp.lt.s32.totalorder %v1678_v17, %v1679_v18 }
 0x98c   : > { %v1681_v19 = vsel %vm1680_vm13, %v1678_v17, %v1679_v18 }
 0x98d   : > { %v1682_v20 = vrot.slane %v1681_v19, 4 }
 0x98f   : > { %vm1683_vm14 = vcmp.lt.s32.totalorder %v1681_v19, %v1682_v20 }
 0x990   : > { %v1684_v22 = vsel %vm1683_vm14, %v1681_v19, %v1682_v20 }
 0x991   : > { %v1685_v23 = vrot.slane %v1684_v22, 2 }
 0x993   : > { %vm1686_vm15 = vcmp.lt.s32.totalorder %v1684_v22, %v1685_v23 }
 0x994   : > { %v1687_v24 = vsel %vm1686_vm15, %v1684_v22, %v1685_v23 }
 0x995   : > { %v1688_v25 = vrot.slane %v1687_v24, 1 }
 0x997   : > { %vm1689_vm1 = vcmp.lt.s32.totalorder %v1687_v24, %v1688_v25 }
 0x998   : > { %v1690_v26 = vsel %vm1689_vm1, %v1687_v24, %v1688_v25 }
 0x999   : > { %vm1691_vm2 = vcmp.eq.s32.totalorder %v3028_v29, %v1690_v26  ;;  %vm1692_vm3 = vcmp.eq.s32.totalorder %v3157_v58, %v1690_v26 }
 0x99a   : > { %v2283_v27 = vsel %vm1691_vm2, 1.0, %v2757_v21  ;;  %v2284_v30 = vsel %vm1692_vm3, 1.0, %v2757_v21 }
 0x99b   : > { %v1698_v34 = vadd.f32 %v2284_v30, %v1660_v0  ;;  %vm1699_vm4 = vcmp.gt.f32.partialorder %v2283_v27, 0.0  ;;  %vm1700_vm5 = vcmp.gt.f32.partialorder %v2284_v30, 0.0  ;;  %v1697_v28 = vadd.f32 %v2283_v27, %v1659_v1 }
 0x99c   : > { %v1701_v31 = vsel %vm1699_vm4, -1e+30, %v1663_v2  ;;  %v1702_v32 = vsel %vm1700_vm5, -1e+30, %v1664_v3 }
 0x99d   : > { %v1703_v56 = vsel %vm1550_vm8, %v1701_v31, -inf  ;;  %v1704_v33 = vsel %vm1550_vm8, %v1702_v32, -inf }
 0x99e   : > { %v1705_v35 = vmax.f32 %v1703_v56, %v1704_v33 }
 0x9a0   : > { %v1706_v36 = vrot.slane %v1705_v35, 4 }
 0x9a2   : > { %v1707_v37 = vmax.f32 %v1705_v35, %v1706_v36 }
 0x9a4   : > { %v1708_v38 = vrot.slane %v1707_v37, 2 }
 0x9a6   : > { %v1709_v39 = vmax.f32 %v1707_v37, %v1708_v38 }
 0x9a8   : > { %v1710_v40 = vrot.slane %v1709_v39, 1 }
 0x9aa   : > { %v1711_v41 = vmax.f32 %v1709_v39, %v1710_v40 }
 0x9ac   : > { %vm1712_vm6 = vcmp.ge.f32.partialorder %v1701_v31, %v1711_v41  ;;  %vm1713_vm7 = vcmp.ge.f32.partialorder %v1702_v32, %v1711_v41 }
 0x9ad   : > { %v1714_v42 = vsel %vm1712_vm6, %v3028_v29, 16  ;;  %v1715_v43 = vsel %vm1713_vm7, %v3157_v58, 16 }
 0x9ae   : > { %v1716_v45 = vsel %vm1550_vm8, %v1714_v42, 2147483647  ;;  %v1717_v46 = vsel %vm1550_vm8, %v1715_v43, 2147483647 }
 0x9af   : > { %vm1718_vm9 = vcmp.lt.s32.totalorder %v1716_v45, %v1717_v46 }
 0x9b0   : > { %v1719_v48 = vsel %vm1718_vm9, %v1716_v45, %v1717_v46 }
 0x9b1   : > { %v1720_v49 = vrot.slane %v1719_v48, 4 }
 0x9b3   : > { %vm1721_vm10 = vcmp.lt.s32.totalorder %v1719_v48, %v1720_v49 }
 0x9b4   : > { %v1722_v51 = vsel %vm1721_vm10, %v1719_v48, %v1720_v49 }
 0x9b5   : > { %v1723_v52 = vrot.slane %v1722_v51, 2 }
 0x9b7   : > { %vm1724_vm11 = vcmp.lt.s32.totalorder %v1722_v51, %v1723_v52 }
 0x9b8   : > { %v1725_v53 = vsel %vm1724_vm11, %v1722_v51, %v1723_v52 }
 0x9b9   : > { %v1726_v54 = vrot.slane %v1725_v53, 1 }
 0x9bb   : > { %vm1727_vm12 = vcmp.lt.s32.totalorder %v1725_v53, %v1726_v54 }
 0x9bc   : > { %v1728_v55 = vsel %vm1727_vm12, %v1725_v53, %v1726_v54 }
 0x9bd   : > { %vm1729_vm13 = vcmp.eq.s32.totalorder %v3028_v29, %v1728_v55  ;;  %vm1730_vm14 = vcmp.eq.s32.totalorder %v3157_v58, %v1728_v55 }
 0x9be   : > { %v2285_v57 = vsel %vm1729_vm13, 1.0, %v2757_v21  ;;  %v2286_v59 = vsel %vm1730_vm14, 1.0, %v2757_v21 }
 0x9bf   : > { %v1736_v60 = vadd.f32 %v2286_v59, %v1698_v34  ;;  %vm1737_vm15 = vcmp.gt.f32.partialorder %v2285_v57, 0.0  ;;  %vm1738_vm1 = vcmp.gt.f32.partialorder %v2286_v59, 0.0  ;;  %v1735_v61 = vadd.f32 %v2285_v57, %v1697_v28 }
 0x9c0   : > { %v1739_v62 = vsel %vm1737_vm15, -1e+30, %v1701_v31  ;;  %v1740_v63 = vsel %vm1738_vm1, -1e+30, %v1702_v32 }
 0x9c1   : > { %v1741_v0 = vsel %vm1550_vm8, %v1739_v62, -inf  ;;  %v1742_v1 = vsel %vm1550_vm8, %v1740_v63, -inf }
 0x9c2   : > { %v1743_v2 = vmax.f32 %v1741_v0, %v1742_v1 }
 0x9c4   : > { %v1744_v3 = vrot.slane %v1743_v2, 4 }
 0x9c6   : > { %v1745_v4 = vmax.f32 %v1743_v2, %v1744_v3 }
 0x9c8   : > { %v1746_v5 = vrot.slane %v1745_v4, 2 }
 0x9ca   : > { %v1747_v6 = vmax.f32 %v1745_v4, %v1746_v5 }
 0x9cc   : > { %v1748_v7 = vrot.slane %v1747_v6, 1 }
 0x9ce   : > { %v1749_v8 = vmax.f32 %v1747_v6, %v1748_v7 }
 0x9d0   : > { %vm1750_vm2 = vcmp.ge.f32.partialorder %v1739_v62, %v1749_v8  ;;  %vm1751_vm3 = vcmp.ge.f32.partialorder %v1740_v63, %v1749_v8 }
 0x9d1   : > { %v1752_v9 = vsel %vm1750_vm2, %v3028_v29, 16  ;;  %v1753_v11 = vsel %vm1751_vm3, %v3157_v58, 16 }
 0x9d2   : > { %v1754_v12 = vsel %vm1550_vm8, %v1752_v9, 2147483647  ;;  %v1755_v14 = vsel %vm1550_vm8, %v1753_v11, 2147483647 }
 0x9d3   : > { %vm1756_vm4 = vcmp.lt.s32.totalorder %v1754_v12, %v1755_v14 }
 0x9d4   : > { %v1757_v15 = vsel %vm1756_vm4, %v1754_v12, %v1755_v14 }
 0x9d5   : > { %v1758_v16 = vrot.slane %v1757_v15, 4 }
 0x9d7   : > { %vm1759_vm5 = vcmp.lt.s32.totalorder %v1757_v15, %v1758_v16 }
 0x9d8   : > { %v1760_v17 = vsel %vm1759_vm5, %v1757_v15, %v1758_v16  ;;  %v2604_v15 = vld [vmem:[%s3399_s9 + $0x20] sm:$0xff]  }
 0x9d9   : > { %v1761_v18 = vrot.slane %v1760_v17, 2  ;;  %2460 = vmatpush3.bf16.msra.mxu1 %v2604_v15 }
 0x9da   : > { %2461 = vmatprep.subr.bf16.mxu1 %v2757_v21 }
 0x9db   : > { %vm1762_vm6 = vcmp.lt.s32.totalorder %v1760_v17, %v1761_v18 }
 0x9dc   : > { %v1763_v19 = vsel %vm1762_vm6, %v1760_v17, %v1761_v18 }
 0x9dd   : > { %v1764_v20 = vrot.slane %v1763_v19, 1 }
 0x9df   : > { %vm1765_vm7 = vcmp.lt.s32.totalorder %v1763_v19, %v1764_v20 }
 0x9e0   : > { %v1766_v22 = vsel %vm1765_vm7, %v1763_v19, %v1764_v20  ;;  %v2607_v20 = vld [vmem:[%s3399_s9 + $0x8] sm:$0xff]  }
 0x9e1   : > { %vm1767_vm9 = vcmp.eq.s32.totalorder %v3028_v29, %v1766_v22  ;;  %vm1768_vm10 = vcmp.eq.s32.totalorder %v3157_v58, %v1766_v22  ;;  %v2608_v22 = vld [vmem:[%s3399_s9] sm:$0xff]  }
 0x9e2   : > { %v2287_v23 = vsel %vm1767_vm9, 1.0, %v2757_v21  ;;  %v2288_v24 = vsel %vm1768_vm10, 1.0, %v2757_v21 }
 0x9e3   : > { %v3229_v25 = vadd.f32 %v2288_v24, %v1736_v60  ;;  %vm1775_vm11 = vcmp.gt.f32.partialorder %v2287_v23, 0.0  ;;  %vm1776_vm12 = vcmp.gt.f32.partialorder %v2288_v24, 0.0  ;;  %v3231_v26 = vadd.f32 %v2287_v23, %v1735_v61 }
 0x9e4   : > { %v1777_v27 = vsel %vm1775_vm11, -1e+30, %v1739_v62  ;;  %v1778_v30 = vsel %vm1776_vm12, -1e+30, %v1740_v63 }
 0x9e5   : > { %v1779_v34 = vsel %vm1550_vm8, %v1777_v27, -inf  ;;  %v1780_v28 = vsel %vm1550_vm8, %v1778_v30, -inf }
 0x9e6   : > { %v1781_v31 = vmax.f32 %v1779_v34, %v1780_v28 }
 0x9e8   : > { %v1782_v32 = vrot.slane %v1781_v31, 4 }
 0x9ea   : > { %v1783_v56 = vmax.f32 %v1781_v31, %v1782_v32 }
 0x9ec   : > { %v1784_v33 = vrot.slane %v1783_v56, 2 }
 0x9ee   : > { %v1785_v35 = vmax.f32 %v1783_v56, %v1784_v33 }
 0x9f0   : > { %v1786_v36 = vrot.slane %v1785_v35, 1 }
 0x9f2   : > { %v1787_v37 = vmax.f32 %v1785_v35, %v1786_v36  ;;  %v1899_v36 = vld [vmem:[%s3400_s10] sm:$0x1] }
 0x9f4   : > { %vm1788_vm13 = vcmp.ge.f32.partialorder %v1777_v27, %v1787_v37  ;;  %vm1789_vm14 = vcmp.ge.f32.partialorder %v1778_v30, %v1787_v37 }
 0x9f5   : > { %v1790_v38 = vsel %vm1788_vm13, %v3028_v29, 16  ;;  %v1791_v39 = vsel %vm1789_vm14, %v3157_v58, 16 }
 0x9f6   : > { %v1792_v40 = vsel %vm1550_vm8, %v1790_v38, 2147483647  ;;  %v1793_v41 = vsel %vm1550_vm8, %v1791_v39, 2147483647 }
 0x9f7   : > { %vm1794_vm15 = vcmp.lt.s32.totalorder %v1792_v40, %v1793_v41 }
 0x9f8   : > { %v1795_v42 = vsel %vm1794_vm15, %v1792_v40, %v1793_v41  ;;  %v2609_v41 = vld [vmem:[%s3403_s13 + $0x38] sm:$0xff]  }
 0x9f9   : > { %v1796_v43 = vrot.slane %v1795_v42, 4  ;;  %2474 = vmatpush3.bf16.msra.mxu0 %v2609_v41 }
 0x9fa   : > { %2475 = vmatprep.subr.bf16.mxu0 %v2757_v21 }
 0x9fb   : > { %vm1797_vm1 = vcmp.lt.s32.totalorder %v1795_v42, %v1796_v43 }
 0x9fc   : > { %v1798_v44 = vsel %vm1797_vm1, %v1795_v42, %v1796_v43  ;;  %v2610_v42 = vld [vmem:[%s3403_s13 + $0x30] sm:$0xff]  }
 0x9fd   : > { %v1799_v45 = vrot.slane %v1798_v44, 2  ;;  %2476 = vmatpush3.bf16.msra.mxu0 %v2610_v42 }
 0x9fe   : > { %2477 = vmatprep.subr.bf16.mxu0 %v2757_v21 }
 0x9ff   : > { %vm1800_vm2 = vcmp.lt.s32.totalorder %v1798_v44, %v1799_v45 }
 0xa00   : > { %v1801_v46 = vsel %vm1800_vm2, %v1798_v44, %v1799_v45 }
 0xa01   : > { %v1802_v47 = vrot.slane %v1801_v46, 1 }
 0xa03   : > { %vm1803_vm3 = vcmp.lt.s32.totalorder %v1801_v46, %v1802_v47 }
 0xa04   : > { %v1804_v48 = vsel %vm1803_vm3, %v1801_v46, %v1802_v47 }
 0xa05   : > { %vm1805_vm4 = vcmp.eq.s32.totalorder %v3028_v29, %v1804_v48  ;;  %vm1806_vm5 = vcmp.eq.s32.totalorder %v3157_v58, %v1804_v48  ;;  %v2611_v48 = vld [vmem:[%s3403_s13 + $0x28] sm:$0xff]  }
 0xa06   : > { %v2289_v49 = vsel %vm1805_vm4, 1.0, %v2757_v21  ;;  %v2290_v50 = vsel %vm1806_vm5, 1.0, %v2757_v21  ;;  %2478 = vmatpush3.bf16.msra.mxu0 %v2611_v48 }
 0xa07   : > { %vm1813_vm6 = vcmp.gt.f32.partialorder %v2289_v49, 0.0  ;;  %vm1814_vm7 = vcmp.gt.f32.partialorder %v2290_v50, 0.0  ;;  %v1812_v12 = vadd.f32 %v2290_v50, %v3229_v25  ;;  %v1811_v14 = vadd.f32 %v2289_v49, %v3231_v26  ;;  %v2612_v49 = vld [vmem:[%s3403_s13 + $0x20] sm:$0xff]   ;;  %2479 = vmatprep.subr.bf16.mxu0 %v2757_v21  ;;  %v2613_v50 = vld [vmem:[%s3403_s13 + $0x18] sm:$0xff]  }
 0xa08   : > { %v1815_v51 = vsel %vm1813_vm6, -1e+30, %v1777_v27  ;;  %v1816_v52 = vsel %vm1814_vm7, -1e+30, %v1778_v30 }
 0xa09   : > { %v1817_v53 = vsel %vm1550_vm8, %v1815_v51, -inf  ;;  %v1818_v54 = vsel %vm1550_vm8, %v1816_v52, -inf }
 0xa0a   : > { %v1819_v55 = vmax.f32 %v1817_v53, %v1818_v54  ;;  %2480 = vmatpush3.bf16.msra.mxu0 %v2612_v49  ;;  %v2616_v53 = vld [vmem:[%s3403_s13] sm:$0xff]  }
 0xa0b   : > { %2481 = vmatprep.subr.bf16.mxu0 %v2757_v21 }
 0xa0c   : > { %v1820_v57 = vrot.slane %v1819_v55, 4 }
 0xa0e   : > { %v1821_v59 = vmax.f32 %v1819_v55, %v1820_v57  ;;  %2482 = vmatpush3.bf16.msra.mxu0 %v2613_v50 }
 0xa0f   : > { %2483 = vmatprep.subr.bf16.mxu0 %v2757_v21 }
 0xa10   : > { %v1822_v60 = vrot.slane %v1821_v59, 2 }
 0xa12   : > { %v1823_v61 = vmax.f32 %v1821_v59, %v1822_v60  ;;  %v1988_v60 = vld [vmem:[%s3401_s11] sm:$0x1] }
 0xa14   : > { %v1824_v62 = vrot.slane %v1823_v61, 1 }
 0xa16   : > { %v1825_v63 = vmax.f32 %v1823_v61, %v1824_v62  ;;  %v1989_v62 = vld [vmem:[%s3402_s12] sm:$0x1] }
 0xa18   : > { %vm1826_vm9 = vcmp.ge.f32.partialorder %v1815_v51, %v1825_v63  ;;  %vm1827_vm10 = vcmp.ge.f32.partialorder %v1816_v52, %v1825_v63  ;;  %v2614_v51 = vld [vmem:[%s3403_s13 + $0x10] sm:$0xff]   ;;  %v2615_v52 = vld [vmem:[%s3403_s13 + $0x8] sm:$0xff]  }
 0xa19   : > { %v1828_v0 = vsel %vm1826_vm9, %v3028_v29, 16  ;;  %v1829_v1 = vsel %vm1827_vm10, %v3157_v58, 16  ;;  %2484 = vmatpush3.bf16.msra.mxu0 %v2614_v51 }
 0xa1a   : > { %v1830_v2 = vsel %vm1550_vm8, %v1828_v0, 2147483647  ;;  %v1831_v3 = vsel %vm1550_vm8, %v1829_v1, 2147483647  ;;  %2485 = vmatprep.subr.bf16.mxu0 %v2757_v21 }
 0xa1b   : > { %vm1832_vm11 = vcmp.lt.s32.totalorder %v1830_v2, %v1831_v3 }
 0xa1c   : > { %v1833_v4 = vsel %vm1832_vm11, %v1830_v2, %v1831_v3 }
 0xa1d   : > { %v1834_v5 = vrot.slane %v1833_v4, 4  ;;  %2486 = vmatpush3.bf16.msra.mxu0 %v2615_v52 }
 0xa1e   : > { %2487 = vmatprep.subr.bf16.mxu0 %v2757_v21 }
 0xa1f   : > { %vm1835_vm12 = vcmp.lt.s32.totalorder %v1833_v4, %v1834_v5 }
 0xa20   : > { %v1836_v6 = vsel %vm1835_vm12, %v1833_v4, %v1834_v5 }
 0xa21   : > { %v1837_v7 = vrot.slane %v1836_v6, 2  ;;  %2488 = vmatpush3.bf16.msra.mxu0 %v2616_v53 }
 0xa23   : > { %vm1838_vm13 = vcmp.lt.s32.totalorder %v1836_v6, %v1837_v7 }
 0xa24   : > { %v1839_v8 = vsel %vm1838_vm13, %v1836_v6, %v1837_v7 }
 0xa25   : > { %v1840_v9 = vrot.slane %v1839_v8, 1 }
 0xa27   : > { %vm1841_vm14 = vcmp.lt.s32.totalorder %v1839_v8, %v1840_v9 }
 0xa28   : > { %v1842_v11 = vsel %vm1841_vm14, %v1839_v8, %v1840_v9 }
 0xa29   : > { %vm1844_vm15 = vcmp.eq.s32.totalorder %v3157_v58, %v1842_v11  ;;  %vm1843_vm1 = vcmp.eq.s32.totalorder %v3028_v29, %v1842_v11  ;;  %v2605_v58 = vld [vmem:[%s3399_s9 + $0x18] sm:$0xff]   ;;  %v2606_v29 = vld [vmem:[%s3399_s9 + $0x10] sm:$0xff]  }
 0xa2a   : > { %v2292_v16 = vsel %vm1844_vm15, 1.0, %v2757_v21  ;;  %v2291_v17 = vsel %vm1843_vm1, 1.0, %v2757_v21  ;;  %2462 = vmatpush3.bf16.msra.mxu1 %v2605_v58 }
 0xa2b   : > { %v1850_v18 = vadd.f32 %v2292_v16, %v1812_v12  ;;  %v1849_v19 = vadd.f32 %v2291_v17, %v1811_v14  ;;  %2463 = vmatprep.subr.bf16.mxu1 %v2757_v21 }
 0xa2d   : > { %1858 = vperm.xlu1 %2560, %v1850_v18   ;;  %1853 = vperm.xlu0 %2559, %v1849_v19  }
 0xa2e   : > { %2464 = vmatpush3.bf16.msra.mxu1 %v2606_v29 }
 0xa2f   : > { %2465 = vmatprep.subr.bf16.mxu1 %v2757_v21 }
 0xa32   : > { %2466 = vmatpush3.bf16.msra.mxu1 %v2607_v20 }
 0xa33   : > { %2467 = vmatprep.subr.bf16.mxu1 %v2757_v21 }
 0xa36   : > { %2468 = vmatpush3.bf16.msra.mxu1 %v2608_v22 }
 0xaa8   : > { %v1859_v23 = vpop.permute.xlu1 %1858  ;;  %v1854_v24 = vpop.permute.xlu0 %1853 }
 0xaa9   : > { %v1873_v25 = vmul.f32 %v3014_v13, %v1859_v23  ;;  %v1872_v26 = vmul.f32 %v3016_v10, %v1854_v24 }
 0xaab   : > { %v1874_v27 = vadd.f32 %v1873_v25, %v1872_v26 }
 0xaad   : > { %v1875_v30 = vrot.slane %v1874_v27, 4 }
 0xaaf   : > { %v1876_v34 = vadd.f32 %v1875_v30, %v1874_v27 }
 0xab1   : > { %v1877_v28 = vrot.slane %v1876_v34, 2 }
 0xab3   : > { %v1878_v31 = vadd.f32 %v1877_v28, %v1876_v34 }
 0xab5   : > { %v1879_v32 = vrot.slane %v1878_v31, 1 }
 0xab7   : > { %v1880_v56 = vadd.f32 %v1879_v32, %v1878_v31 }
 0xab9   : > { %v1881_v33 = vmul.f32 0.125, %v1880_v56 }
 0xabb   : > { %v1882_v35 = vpack.c.bf16 %v1881_v33, %v1881_v33 }
 0xabd   : > { %2470 = vmatmul.mubr.bf16.vlgmr.msra.gmra.mxu1 %v1882_v35 }
 0xb7d   : > { %v1982_v37 = vpop.f32.mrf.mxu1 }
 0xb7e   : > { %v1983_v38 = vadd.f32 %v1982_v37, %v1899_v36 }
 0xb7f   : > { %v2471_v39 = vpop.f32.mrf.mxu1 }
 0xb80   : > { %v1990_v13 = vsel %vm541_vm0, %v1983_v38, 0.0 }
 0xb81   : > { %1991 = vadd.xlane.f32.xlu1 %v1990_v13  ;;  %v1985_v10 = vpop.f32.mrf.mxu1 }
 0xb83   : > { %v2472_v40 = vpop.f32.mrf.mxu1 }
 0xc0a   : > { %v1992_v43 = vpop.xlane.xlu1 %1991 }
 0xc0b   : > { %v1993_v44 = vmul.f32 0.0078125, %v1992_v43 }
 0xc0d   : > { %v1994_v45 = vsub.f32 %v1983_v38, %v1993_v44 }
 0xc0f   : > { %v1995_v46 = vmul.f32 %v1994_v45, %v1994_v45 }
 0xc11   : > { %v1996_v47 = vsel %vm541_vm0, %v1995_v46, 0.0 }
 0xc12   : > { %1997 = vadd.xlane.f32.xlu0 %v1996_v47 }
 0xc9b   : > { %v1998_v54 = vpop.xlane.xlu0 %1997 }
 0xc9c   : > { %v1999_v55 = vmul.f32 0.0078125, %v1998_v54 }
 0xc9e   : > { %v2000_v57 = vadd.f32 1e-05, %v1999_v55 }
 0xca0   : > { %2663 = vrsqrt.f32 %v2000_v57 }
 0xcad   : > { %v2664_v59 = vpop.eup %2663 }
 0xcae   : > { %v2002_v61 = vmul.f32 %v2664_v59, %v1994_v45 }
 0xcb0   : > { %v2003_v63 = vmul.f32 %v2002_v61, %v1988_v60 }
 0xcb2   : > { %v2004_v21 = vadd.f32 %v2003_v63, %v1989_v62 }
 0xcb4   : > { %v2005_v0 = vpack.c.bf16 %v2004_v21, %v2004_v21 }
 0xcb6   : > { %2490 = vmatmul.mubr.bf16.vlgmr.msra.gmra.mxu0 %v2005_v0 }
 0xcb7   : > { %2678 = shalt.err (!%p2675_p3)
}
 0xcb8   : > { %s2679_s22 = scalar_lea.hbm %s2127_s1, 16  ;;  %s2683_s21 = scalar_lea.hbm %s3405_s15, 32 }
 0xcb9   : > { %p2680_p4 = scmp.ne.s32.totalorder %s2127_s1, %s2679_s22  ;;  %p2684_p9 = scmp.lt.s32.totalorder %s2127_s1, %s3405_s15 }
 0xcba   : > { %p2685_p10 = scmp.lt.s32.totalorder %s2683_s21, %s2679_s22 }
 0xcbb   : > { %p2681_p7 = pnand %p2680_p4, %p2891_p5 }
 0xcbc   : > { %p2686_p11 = por %p2685_p10, %p2684_p9 }
 0xcbd   : > { %p2682_p8 = pneg %p2681_p7 }
 0xcbf   : > { %p2687_p12 = pnand %p2686_p11, %p2682_p8 }
 0xcc1   : > { %2690 = shalt.err (!%p2687_p12)
}
 0xcc2   : > { %2494 = dma.vmem_to_hbm [thread:$0]  (%p2891_p5), %s2130_s20, 16, %s2127_s1, %s2113_s0   ;;  %v2022_v1 = vld [vmem:[%s3404_s14] sm:$0x1] }
 0xcc3   : > { %s525_s30 = scalar_lea.vmem [#allocation5], %s3023_s28  ;;  %s3430_s3 = sshll.u32 %s2874_s8, 4 }
 0xcc4   : > { %s2142_s29 = sshll.u32 %s525_s30, 4  ;;  %s3348_s22 = scalar_lea.hbm %s3406_s16, %s3430_s3  ;;  %s3350_s29 = int_to_ptr.vmem [resolvable:$true] %s2142_s29 }
 0xcc5   : > { %s2117_s1 = scalar_lea.sflag [#allocation6], %s3023_s28  ;;  %s2691_s20 = scalar_lea.vmem %s3350_s29, 16 }
 0xcc6   : > { %p2692_p13 = scmp.ne.s32.totalorder %s3350_s29, %s2691_s20  ;;  %s2764_s8 = smov [#allocation5]  }
 0xcc7   : > { %s2695_s0 = sshll.u32 %s2764_s8, 4  ;;  %s2696_s0 = int_to_ptr.vmem [resolvable:$false] %s2695_s0 }
 0xcc8   : > { %p2693_p0 = pnand %p2692_p13, %p2891_p5  ;;  %s2697_s19 = scalar_lea.vmem %s2696_s0, 32 }
 0xcc9   : > { %p2698_p2 = scmp.lt.s32.totalorder %s3350_s29, %s2696_s0  ;;  %p2699_p3 = scmp.lt.s32.totalorder %s2697_s19, %s2691_s20 }
 0xcca   : > { %p2694_p1 = pneg %p2693_p0 }
 0xccb   : > { %p2700_p4 = por %p2699_p3, %p2698_p2 }
 0xccd   : > { %p2701_p7 = pnand %p2700_p4, %p2694_p1 }
 0xd76   : > { %v2105_v2 = vpop.f32.mrf.mxu0 }
 0xd77   : > { %v2106_v3 = vadd.f32 %v2105_v2, %v2022_v1 }
 0xd78   : > { %v2491_v4 = vpop.f32.mrf.mxu0 }
 0xd79   : > { %2111 = vst [vmem:[%s525_s30] sm:$0x1] %v2106_v3 }
 0xd7a   : > { %v2108_v5 = vpop.f32.mrf.mxu0 }
 0xd7b   : > { %2704 = shalt.err (!%p2701_p7)
}
 0xd7c   : > { %s2705_s27 = scalar_lea.hbm %s3348_s22, 16  ;;  %s2709_s25 = scalar_lea.hbm %s3406_s16, 32 }
 0xd7d   : > { %p2706_p8 = scmp.ne.s32.totalorder %s3348_s22, %s2705_s27  ;;  %p2710_p11 = scmp.lt.s32.totalorder %s3348_s22, %s3406_s16 }
 0xd7e   : > { %p2711_p12 = scmp.lt.s32.totalorder %s2709_s25, %s2705_s27 }
 0xd7f   : > { %p2707_p9 = pnand %p2706_p8, %p2891_p5 }
 0xd80   : > { %p2712_p13 = por %p2711_p12, %p2710_p11 }
 0xd81   : > { %p2708_p10 = pneg %p2707_p9 }
 0xd83   : > { %p2713_p0 = pnand %p2712_p13, %p2708_p10 }
 0xd85   : > { %2716 = shalt.err (!%p2713_p0)
}
 0xd86   : > { %2495 = dma.vmem_to_hbm [thread:$0]  (%p2891_p5), %s3350_s29, 16, %s3348_s22, %s2117_s1   ;;  %v2492_v6 = vpop.f32.mrf.mxu0 }
 0xd87 PF: > { %p2505_p1 = scmp.ge.s32.totalorder %s2755_s26, 2  ;;  %s2154_s4 = sand.u32 1, %s2743_s23  }
 0xd88   : > { %s2155_s21 = scalar_lea.sflag [#allocation4], %s2154_s4 }
 0xd89   : > { %p2499_p2 = pnand %p2505_p1, %p2895_p6 }
 0xd8b   : > { %p2500_p3 = pneg %p2499_p2 }
 0xd8d   : > { %2734 = dma.done.wait (%p2500_p3), %s2155_s21, 16  }
 0xd8e   : > { %2736 = vsyncadd (%p2500_p3), %s2155_s21, 4294967280  ;;  %s2163_s20 = scalar_lea.sflag [#allocation6], %s2154_s4 }
 0xd8f   : > { %2738 = dma.done.wait (%p2500_p3), %s2163_s20, 16  }
 0xd90   : > { %2740 = vsyncadd (%p2500_p3), %s2163_s20, 4294967280  ;;  %s3431_s26 = sld [smem:[#allocation10_spill]]  ;;  %s3434_s23 = smov %s2747_s24 }
 0xd91   : > { %s3432_s17 = sld [smem:[#allocation9_spill]] }
 0xd92   : > { %s3433_s25 = sld [smem:[#allocation11_spill]] }
 0xd96   : > { %p32_p5 = scmp.ge.s32.totalorder %s3431_s26, 4  }
 0xd97   : > { %s3435_s24 = smov %s3432_s17 }
 0xd98   :  { %34 = sbr.rel (!%p32_p5) target bundleno = 11 (0xb), region = 132 }
 0xd9d   :  { %2167 = vsyncpa [#allocation4], 1 }
 0xd9e   :  { %2169 = vsyncpa [#allocation4 + $0x1], 1 }
 0xd9f   :  { %2170 = vsyncpa [#allocation6], 1 }
 0xda0   :  { %2172 = vsyncpa [#allocation6 + $0x1], 1 }

// kernel: vit_encoder_forward.4
= control target key start
LH: loop header
LB: loop body
LE: loop exit
PB: predicated region body
PF: predicated region fallthrough
CT: control target
= control target key end

     0   :  { %s3626_s25 = smov 0   ;;  %s3628_s26 = smov 0   ;;  %s4223_s0 = inlined_call_operand.vmem [shape: f32[2,17,128], index: 0, kind: input, shape index: {}]   ;;  %s4224_s1 = inlined_call_operand.vmem [shape: f32[4,1,128], index: 1, kind: input, shape index: {}]   ;;  %s4225_s2 = inlined_call_operand.vmem [shape: f32[4,1,128], index: 2, kind: input, shape index: {}]   ;;  %s4226_s3 = inlined_call_operand.vmem [shape: bf16[4,128,384], index: 3, kind: input, shape index: {}]   ;;  %s4227_s4 = inlined_call_operand.vmem [shape: f32[4,1,384], index: 4, kind: input, shape index: {}]   ;;  %s4228_s5 = inlined_call_operand.vmem [shape: bf16[4,128,128], index: 5, kind: input, shape index: {}]   ;;  %s4229_s6 = inlined_call_operand.vmem [shape: f32[4,1,128], index: 6, kind: input, shape index: {}]   ;;  %s4230_s7 = inlined_call_operand.vmem [shape: f32[4,1,128], index: 7, kind: input, shape index: {}]   ;;  %s4231_s8 = inlined_call_operand.vmem [shape: f32[4,1,128], index: 8, kind: input, shape index: {}]   ;;  %s4232_s9 = inlined_call_operand.vmem [shape: bf16[4,128,512], index: 9, kind: input, shape index: {}]   ;;  %s4233_s10 = inlined_call_operand.vmem [shape: f32[4,1,512], index: 10, kind: input, shape index: {}]   ;;  %s4234_s11 = inlined_call_operand.vmem [shape: bf16[4,512,128], index: 11, kind: input, shape index: {}]   ;;  %s4235_s12 = inlined_call_operand.vmem [shape: f32[4,1,128], index: 12, kind: input, shape index: {}]   ;;  %s4236_s13 = inlined_call_operand.vmem [shape: f32[2,17,128], index: 13, kind: output, shape index: {}]  }
   0x1   :  { %4241 = sst [smem:[#allocation8_spill]] %s4223_s0  ;;  %s3630_s27 = smov 0  }
   0x2   :  { %4242 = sst [smem:[#allocation9_spill]] %s4225_s2  ;;  %s3632_s28 = smov 0  }
   0x3   :  { %4243 = sst [smem:[#allocation10_spill]] %s4226_s3  ;;  %s3634_s29 = smov 0  }
   0x4   :  { %4244 = sst [smem:[#allocation11_spill]] %s4227_s4 }
   0x5   :  { %4245 = sst [smem:[#allocation12_spill]] %s4228_s5 }
   0x6   :  { %4246 = sst [smem:[#allocation13_spill]] %s4236_s13 }
   0x7 LB: > { %4247 = sst [smem:[#allocation2_spill]] %s3534_s25  ;;  %s32_s30 = sadd.s32 1, %s3542_s27  ;;  %s3550_s29 = sphi %s3634_s29, %s23_s29   ;;  %s3546_s28 = sphi %s3632_s28, %s4270_s28   ;;  %s3542_s27 = sphi %s3630_s27, %s4269_s27   ;;  %s3538_s26 = sphi %s3628_s26, %s4268_s26   ;;  %s3534_s25 = sphi %s3626_s25, %s4267_s25  }
   0x8   : > { %4248 = sst [smem:[#allocation3_spill]] %s3542_s27  ;;  %s35_s14 = sadd.s32 1, %s3546_s28 }
   0x9   : > { %4249 = sst [smem:[#allocation4_spill]] %s3546_s28  ;;  %p33_p0 = scmp.ge.s32.totalorder %s32_s30, 4 }
   0xa   : > { %4250 = sst [smem:[#allocation5_spill]] %s3550_s29  ;;  %p2888_p1 = scmp.ge.s32.totalorder %s3550_s29, 1 }
   0xb   : > { %p505_p2 = scmp.lt.s32.totalorder %s3550_s29, 9  ;;  %s4272_s30 = smov (%p33_p0, %s32_s30), 0 }
   0xc   : > { %4251 = sst [smem:[#allocation6_spill]] %s4272_s30  ;;  %s4274_s14 = smov (!%p33_p0, %s35_s14), %s3546_s28 }
   0xd   : > { %p506_p3 = pnand %p2888_p1, %p505_p2  ;;  %p37_p4 = scmp.ge.s32.totalorder %s4274_s14, 2 }
   0xe   : > { %p595_p5 = scmp.lt.s32.totalorder (!%p506_p3), %s3538_s26, 1  ;;  %p600_p6 = scmp.lt.s32.totalorder (!%p506_p3), %s3534_s25, 3 }
   0xf   : > { %s4276_s14 = smov (%p37_p4, %s4274_s14), 0  ;;  %509 = sbr.rel (%p506_p3) target bundleno = 3459 (0xd83), region = 72 }
  0x10   : > { %4252 = sst [smem:[#allocation7_spill]] %s4276_s14 }
  0x11   : > { %s4254_s0 = sld [smem:[#allocation8_spill]] (!%p506_p3) }
  0x12   : > { %s4255_s3 = sld [smem:[#allocation10_spill]] (!%p506_p3) }
  0x13   : > { %s4256_s5 = sld [smem:[#allocation12_spill]] (!%p506_p3) }
  0x14   : > { %s4278_s26 = smov (!%p595_p5, %s3538_s26), 1  ;;  %s4257_s4 = sld [smem:[#allocation11_spill]] }
  0x15   : > { %s3660_s15 = scalar_select %p600_p6, %s3534_s25, 3 }
  0x16   : > { %s3243_s16 = smul.u32 24, %s4278_s26  ;;  %s4259_s17 = sld [smem:[#allocation2_spill]] }
  0x17   : > { %s3244_s30 = smul.u32 192, %s3660_s15  ;;  %s3020_s27 = sshll.u32 %s3660_s15, 6 }
  0x18   : > { %s599_s14 = scalar_lea.vmem %s4254_s0, %s3243_s16  ;;  %s3245_s28 = smul.u32 3, %s3660_s15 }
  0x19   : > { %s3679_s26 = scalar_lea.vmem %s4255_s3, %s3244_s30  ;;  %s3684_s18 = scalar_lea.vmem %s4256_s5, %s3020_s27 }
  0x1a   : > { %s3689_s22 = scalar_lea.vmem %s4257_s4, %s3245_s28  ;;  %s3021_s13 = sshll.u32 %s3660_s15, 8 }
  0x1b   : > { %s2895_s27 = sshll.u32 %s3660_s15, 2  ;;  %s3708_s20 = scalar_lea.vmem %s4232_s9, %s3021_s13 }
  0x1c   : > { %s3713_s23 = scalar_lea.vmem %s4233_s10, %s2895_s27  ;;  %s3718_s0 = scalar_lea.vmem %s4234_s11, %s3021_s13 }
  0x1d   : > { %s645_s30 = scalar_lea.vmem %s4235_s12, %s3660_s15  ;;  %s4258_s4 = sld [smem:[#allocation13_spill]] }
  0x1e   : > { %p2899_p7 = scmp.ne.s32.totalorder %s4259_s17, 0 }
  0x20   : > { %655 = sbr.rel (%p2899_p7) target bundleno = 40 (0x28), region = 76 }
  0x23   : > { %s3727_s5 = scalar_lea.vmem %s4258_s4, %s3243_s16 }
  0x25   : > { %v656_v0 = vld [vmem:[%s599_s14] sm:$0xff]  ;;  %v657_v1 = vld [vmem:[%s599_s14 + $0x8] sm:$0xff]  ;;  %v658_v2 = vld [vmem:[%s599_s14 + $0x10] sm:$0x1] }
  0x26   : > { %659 = vst [vmem:[%s3727_s5] sm:$0xff] %v656_v0  ;;  %660 = vst [vmem:[%s3727_s5 + $0x8] sm:$0xff] %v657_v1 }
  0x27   : > { %661 = vst [vmem:[%s3727_s5 + $0x10] sm:$0x1] %v658_v2 }
  0x28 PF: > { %vm671_vm0 = vcmask 1040384   ;;  %v3305_v7 = vld [vmem:[%s3679_s26 + $0xac] ss:$12 sps:$4 sm:$0xff]   ;;  %v3307_v8 = vld [vmem:[%s3679_s26 + $0xa8] ss:$12 sps:$4 sm:$0xff]   ;;  %v3552_v37 = vmov 0   ;;  %s4260_s14 = scalar_lea.vmem %s4224_s1, %s3660_s15  ;;  %s4263_s21 = scalar_lea.vmem %s4229_s6, %s3660_s15 }
  0x29   : > { %v3308_v9 = vld [vmem:[%s3679_s26 + $0xb0] ss:$12 sps:$4 sm:$0xff]   ;;  %918 = vmatprep.subr.bf16.mxu0 %v3305_v7  ;;  %v3309_v23 = vld [vmem:[%s3679_s26 + $0x94] ss:$12 sps:$4 sm:$0xff]   ;;  %v3312_v25 = vld [vmem:[%s3679_s26 + $0x98] ss:$12 sps:$4 sm:$0xff]   ;;  %950 = vmatprep.mubr.bf16.mxu0 %v3552_v37  ;;  %s4264_s2 = scalar_lea.vmem %s4230_s7, %s3660_s15  ;;  %s4265_s3 = scalar_lea.vmem %s4231_s8, %s3660_s15 }
  0x2a   : > { %3131 = vmatprep.subr.bf16.mxu1 %v3308_v9  ;;  %919 = vmatpush1.bf16.msra.mxu0 %v3307_v8  ;;  %v3311_v24 = vld [vmem:[%s3679_s26 + $0x90] ss:$12 sps:$4 sm:$0xff]   ;;  %v3315_v27 = vld [vmem:[%s3679_s26 + $0x78] ss:$12 sps:$4 sm:$0xff]   ;;  %v3316_v28 = vld [vmem:[%s3679_s26 + $0x80] ss:$12 sps:$4 sm:$0xff]  }
  0x2b   : > { %3132 = vmatpush3.bf16.msra.mxu1 %v3308_v9  ;;  %920 = vmatprep.subr.bf16.mxu0 %v3309_v23  ;;  %v3313_v26 = vld [vmem:[%s3679_s26 + $0x7c] ss:$12 sps:$4 sm:$0xff]   ;;  %v3317_v29 = vld [vmem:[%s3679_s26 + $0x64] ss:$12 sps:$4 sm:$0xff]   ;;  %v3319_v30 = vld [vmem:[%s3679_s26 + $0x60] ss:$12 sps:$4 sm:$0xff]  }
  0x2c   : > { %3133 = vmatprep.subr.bf16.mxu1 %v3312_v25  ;;  %v3320_v31 = vld [vmem:[%s3679_s26 + $0x68] ss:$12 sps:$4 sm:$0xff]   ;;  %v3321_v32 = vld [vmem:[%s3679_s26 + $0x4c] ss:$12 sps:$4 sm:$0xff]   ;;  %v3324_v33 = vld [vmem:[%s3679_s26 + $0x50] ss:$12 sps:$4 sm:$0xff]  }
  0x2d   : > { %v662_v3 = vld [vmem:[%s3727_s5] sm:$0xff]  ;;  %v663_v5 = vld [vmem:[%s3727_s5 + $0x8] sm:$0xff]  ;;  %v3327_v38 = vld [vmem:[%s3679_s26 + $0x30] ss:$12 sps:$4 sm:$0xff]   ;;  %vm1024_vm1 = vcmask 261120   ;;  %vm1085_vm2 = vcmask 138240  }
  0x2e   : > { %v664_v4 = vld [vmem:[%s3727_s5 + $0x10] sm:$0x1]  ;;  %667 = vadd.xlane.f32.xlu0 %v662_v3  ;;  %921 = vmatpush1.bf16.msra.mxu0 %v3311_v24  ;;  %v3323_v34 = vld [vmem:[%s3679_s26 + $0x48] ss:$12 sps:$4 sm:$0xff]   ;;  %v3328_v36 = vld [vmem:[%s3679_s26 + $0x38] ss:$12 sps:$4 sm:$0xff]  }
  0x2f   : > { %v672_v6 = vsel %vm671_vm0, %v664_v4, 0.0  ;;  %3134 = vmatpush3.bf16.msra.mxu1 %v3312_v25  ;;  %922 = vmatprep.subr.bf16.mxu0 %v3313_v26  ;;  %v3325_v35 = vld [vmem:[%s3679_s26 + $0x34] ss:$12 sps:$4 sm:$0xff]   ;;  %v3329_v39 = vld [vmem:[%s3679_s26 + $0x1c] ss:$12 sps:$4 sm:$0xff]   ;;  %vm1092_vm3 = vcmask 131072  }
  0x30   : > { %673 = vadd.xlane.f32.xlu1 %v672_v6  ;;  %3135 = vmatprep.subr.bf16.mxu1 %v3316_v28  ;;  %v3332_v40 = vld [vmem:[%s3679_s26 + $0x20] ss:$12 sps:$4 sm:$0xff]   ;;  %v3331_v41 = vld [vmem:[%s3679_s26 + $0x18] ss:$12 sps:$4 sm:$0xff]   ;;  %v3336_v43 = vld [vmem:[%s3679_s26 + $0x8] ss:$12 sps:$4 sm:$0xff]   ;;  %v775_v6 = vlaneseq }
  0x31   : > { %v3333_v42 = vld [vmem:[%s3679_s26 + $0x4] ss:$12 sps:$4 sm:$0xff]   ;;  %v3335_v44 = vld [vmem:[%s3679_s26] ss:$12 sps:$4 sm:$0xff]   ;;  %s4261_s26 = sld [smem:[#allocation9_spill]]  ;;  %s3554_s13 = smov 64  }
  0x32   : > { %669 = vadd.xlane.f32.xlu0 %v663_v5  ;;  %923 = vmatpush1.bf16.msra.mxu0 %v3315_v27  ;;  %v2900_v56 = vld [vmem:[%s4260_s14] ss:$0 sm:$0xff]  ;;  %v3789_v7 = vshrl.u32 %v775_v6, 7  ;;  %s3555_s27 = smov 32   ;;  %vm1723_vm4 = vcmask 523264   ;;  %vm1727_vm5 = vcmask 785408  }
  0x33   : > { %3136 = vmatpush3.bf16.msra.mxu1 %v3316_v28  ;;  %924 = vmatprep.subr.bf16.mxu0 %v3317_v29  ;;  %v754_v9 = vld [vmem:[%s3689_s22] sm:$0x7]  ;;  %s3553_s22 = smov 96  }
  0x34   : > { %3137 = vmatprep.subr.bf16.mxu1 %v3320_v31  ;;  %v785_v8 = vsub.s32 2, %v3789_v7 }
  0x36   : > { %925 = vmatpush1.bf16.msra.mxu0 %v3319_v30 }
  0x37   : > { %3138 = vmatpush3.bf16.msra.mxu1 %v3320_v31  ;;  %926 = vmatprep.subr.bf16.mxu0 %v3321_v32  ;;  %s4262_s25 = scalar_lea.vmem %s4261_s26, %s3660_s15 }
  0x38   : > { %3139 = vmatprep.subr.bf16.mxu1 %v3324_v33  ;;  %v2901_v62 = vld [vmem:[%s4262_s25] ss:$0 sm:$0xff] }
  0x3a   : > { %927 = vmatpush1.bf16.msra.mxu0 %v3323_v34 }
  0x3b   : > { %3140 = vmatpush3.bf16.msra.mxu1 %v3324_v33  ;;  %928 = vmatprep.subr.bf16.mxu0 %v3325_v35 }
  0x3c   : > { %3141 = vmatprep.subr.bf16.mxu1 %v3328_v36 }
  0x3e   : > { %929 = vmatpush1.bf16.msra.mxu0 %v3327_v38 }
  0x3f   : > { %3142 = vmatpush3.bf16.msra.mxu1 %v3328_v36  ;;  %930 = vmatprep.subr.bf16.mxu0 %v3329_v39 }
  0x40   : > { %3143 = vmatprep.subr.bf16.mxu1 %v3332_v40 }
  0x42   : > { %931 = vmatpush1.bf16.msra.mxu0 %v3331_v41 }
  0x43   : > { %3144 = vmatpush3.bf16.msra.mxu1 %v3332_v40  ;;  %932 = vmatprep.subr.bf16.mxu0 %v3333_v42 }
  0x44   : > { %3145 = vmatprep.subr.bf16.mxu1 %v3336_v43 }
  0x46   : > { %933 = vmatpush1.bf16.msra.mxu0 %v3335_v44 }
  0x47   : > { %3146 = vmatpush3.bf16.msra.mxu1 %v3336_v43 }
  0xb7   : > { %v668_v10 = vpop.xlane.xlu0 %667 }
  0xb8   : > { %v676_v11 = vmul.f32 0.0078125, %v668_v10  ;;  %v777_v10 = vsub.s32 0, %v3789_v7 }
  0xb9   : > { %v674_v12 = vpop.xlane.xlu1 %673 }
  0xba   : > { %v678_v13 = vmul.f32 0.0078125, %v674_v12  ;;  %v3740_v14 = vsub.f32 %v662_v3, %v676_v11  ;;  %v786_v11 = vrot.slane %v754_v9, %v785_v8  ;;  %v778_v12 = vrot.slane %v754_v9, %v777_v10 }
  0xbb   : > { %v670_v16 = vpop.xlane.xlu0 %669 }
  0xbc   : > { %v3742_v15 = vsub.f32 %v664_v4, %v678_v13  ;;  %v677_v17 = vmul.f32 0.0078125, %v670_v16  ;;  %v682_v18 = vmul.f32 %v3740_v14, %v3740_v14 }
  0xbe   : > { %v684_v19 = vmul.f32 %v3742_v15, %v3742_v15  ;;  %v3748_v20 = vsub.f32 %v663_v5, %v677_v17  ;;  %685 = vadd.xlane.f32.xlu1 %v682_v18 }
  0xc0   : > { %v689_v21 = vsel %vm671_vm0, %v684_v19, 0.0  ;;  %v683_v22 = vmul.f32 %v3748_v20, %v3748_v20  ;;  %v3800_v19 = vsel %vm671_vm0, 65535, %v3552_v37 }
  0xc2   : > { %690 = vadd.xlane.f32.xlu1 %v689_v21  ;;  %687 = vadd.xlane.f32.xlu0 %v683_v22  ;;  %v781_v22 = vsub.s32 1, %v3789_v7 }
  0xc4   : > { %v782_v33 = vrot.slane %v754_v9, %v781_v22 }
 0x147   : > { %v686_v45 = vpop.xlane.xlu1 %685 }
 0x148   : > { %v692_v46 = vmul.f32 0.0078125, %v686_v45 }
 0x14a   : > { %v695_v47 = vadd.f32 1e-12, %v692_v46 }
 0x14b   : > { %v691_v48 = vpop.xlane.xlu1 %690  ;;  %v688_v49 = vpop.xlane.xlu0 %687 }
 0x14c   : > { %3425 = vrsqrt.f32 %v695_v47  ;;  %v694_v50 = vmul.f32 0.0078125, %v691_v48  ;;  %v693_v51 = vmul.f32 0.0078125, %v688_v49 }
 0x14e   : > { %v697_v52 = vadd.f32 1e-12, %v694_v50  ;;  %v696_v53 = vadd.f32 1e-12, %v693_v51 }
 0x150   : > { %3427 = vrsqrt.f32 %v697_v52 }
 0x151   : > { %3429 = vrsqrt.f32 %v696_v53 }
 0x159   : > { %v3426_v54 = vpop.eup %3425 }
 0x15a   : > { %v701_v55 = vmul.f32 %v3426_v54, %v3740_v14 }
 0x15c   : > { %v710_v61 = vmul.f32 %v2900_v56, %v701_v55 }
 0x15d   : > { %v3428_v57 = vpop.eup %3427 }
 0x15e   : > { %v3430_v58 = vpop.eup %3429  ;;  %v703_v59 = vmul.f32 %v3428_v57, %v3742_v15  ;;  %v719_v2 = vadd.f32 %v2901_v62, %v710_v61 }
 0x15f   : > { %v702_v60 = vmul.f32 %v3430_v58, %v3748_v20 }
 0x160   : > { %v712_v63 = vmul.f32 %v2900_v56, %v703_v59 }
 0x161   : > { %v711_v0 = vmul.f32 %v2900_v56, %v702_v60 }
 0x162   : > { %v721_v1 = vadd.f32 %v2901_v62, %v712_v63 }
 0x163   : > { %v720_v3 = vadd.f32 %v2901_v62, %v711_v0 }
 0x164   : > { %v773_v4 = vpack.c.bf16 %v721_v1, %v721_v1 }
 0x165   : > { %v772_v5 = vpack.c.bf16 %v720_v3, %v719_v2 }
 0x167   : > { %951 = vmatmul.mubr.bf16.vlgmr.msra.gmra.mxu0 %v772_v5  ;;  %3147 = vmatprep.mubr.bf16.mxu1 %v772_v5 }
 0x168   : > { %3148 = vmatmul.mubr.bf16.vlgmr.msra.gmra.mxu1 %v773_v4  ;;  %960 = vmatprep.mubr.bf16.mxu0 %v3552_v37 }
 0x16f   : > { %961 = vmatmul.mubr.bf16.gmra.mxu0 %v773_v4 }
 0x227   : > { %v952_v13 = vpop.f32.mrf.mxu0 }
 0x228   : > { %v3149_v14 = vpop.f32.mrf.mxu1  ;;  %v953_v17 = vadd.f32 %v952_v13, %v778_v12 }
 0x229   : > { %v1012_v15 = vadd.f32 %v3149_v14, %v786_v11  ;;  %v954_v16 = vpop.f32.mrf.mxu0 }
 0x22a   : > { %v1003_v18 = vpop.f32.mrf.mxu1  ;;  %v1017_v27 = vmul.f32 0.17677669, %v953_v17  ;;  %v955_v41 = vadd.f32 %v954_v16, %v782_v33 }
 0x22b   : > { %v3802_v20 = vpack.c.bf16 %v1012_v15, %v1012_v15  ;;  %v956_v21 = vpop.f32.mrf.mxu0  ;;  %v1004_v30 = vadd.f32 %v1003_v18, %v786_v11 }
 0x22c   : > { %v957_v23 = vadd.f32 %v956_v21, %v778_v12  ;;  %v3150_v24 = vpop.f32.mrf.mxu1 }
 0x22d   : > { %v958_v25 = vpop.f32.mrf.mxu0  ;;  %v1133_v26 = vand.u32 %v3800_v19, %v3802_v20 }
 0x22e   : > { %v1018_v28 = vmul.f32 0.17677669, %v957_v23  ;;  %v1006_v29 = vpop.f32.mrf.mxu1  ;;  %v959_v38 = vadd.f32 %v958_v25, %v782_v33 }
 0x22f   : > { %v1007_v31 = vadd.f32 %v1006_v29, %v786_v11  ;;  %v962_v32 = vpop.f32.mrf.mxu0  ;;  %3159 = vmatprep.subr.bf16.mxu1 %v1133_v26 }
 0x230   : > { %v3809_v34 = vpack.c.bf16 %v1018_v28, %v1017_v27  ;;  %3160 = vmatpush3.bf16.msra.mxu1 %v1133_v26  ;;  %v3819_v44 = vpack.c.bf16 %v959_v38, %v955_v41  ;;  %v963_v46 = vadd.f32 %v962_v32, %v778_v12 }
 0x231   : > { %v3811_v35 = vpack.c.bf16 %v1007_v31, %v1004_v30  ;;  %v964_v36 = vpop.f32.mrf.mxu0 }
 0x232   : > { %v965_v39 = vadd.f32 %v964_v36, %v782_v33  ;;  %3155 = vmatprep.mubr.msk.bf16.mxu0 %vm1024_vm1, %v3809_v34  ;;  %v1032_v47 = vsel %vm1024_vm1, %v3819_v44, 0  ;;  %v1019_v48 = vmul.f32 0.17677669, %v963_v46 }
 0x233   : > { %v966_v40 = vpop.f32.mrf.mxu0  ;;  %3161 = vmatprep.subr.bf16.mxu1 %v3811_v35 }
 0x234   : > { %v3816_v42 = vpack.c.bf16 %v965_v39, %v965_v39  ;;  %3162 = vmatpush3.bf16.msra.mxu1 %v3811_v35  ;;  %v3829_v49 = vpack.c.bf16 %v1019_v48, %v1019_v48 }
 0x235   : > { %v967_v43 = vpop.f32.mrf.mxu0 }
 0x236   : > { %3235 = vmatprep.subr.msk.bf16.mxu0 %vm1024_vm1, %v3816_v42  ;;  %v1035_v45 = vsel %vm1024_vm1, %v3816_v42, 0 }
 0x237   : > { %3152 = vmatpush3.bf16.xpose.msra.mxu0 %v1035_v45 }
 0x238   : > { %3236 = vmatprep.subr.msk.bf16.mxu0 %vm1024_vm1, %v3819_v44 }
 0x23f   : > { %3154 = vmatpush3.bf16.xpose.msra.mxu0 %v1032_v47 }
 0x246   : > { %3156 = vmatmul.mubr.msk.bf16.vlgmr.msra.gmra.mxu0 %vm1024_vm1, %v3829_v49 }
 0x306   : > { %v3157_v50 = vpop.f32.mrf.mxu0 }
 0x307   : > { %v1093_v55 = vsel %vm1092_vm3, %v3157_v50, -inf }
 0x308   : > { %v1071_v51 = vpop.f32.mrf.mxu0 }
 0x309   : > { %v1086_v52 = vsel %vm1085_vm2, %v1071_v51, -inf }
 0x30a   : > { %1087 = vmax.xlane.f32.xlu0 %v1086_v52  ;;  %v3158_v53 = vpop.f32.mrf.mxu0 }
 0x30c   : > { %v1074_v54 = vpop.f32.mrf.mxu0 }
 0x30d   : > { %v1089_v56 = vsel %vm1085_vm2, %v1074_v54, -inf }
 0x30e   : > { %1094 = vmax.xlane.f32.xlu0 %v1093_v55  ;;  %1090 = vmax.xlane.f32.xlu1 %v1089_v56 }
 0x393   : > { %v1088_v57 = vpop.xlane.xlu0 %1087 }
 0x394   : > { %v1096_v58 = vsub.f32 %v1071_v51, %v1088_v57 }
 0x396   : > { %v1099_v59 = vmul.f32 1.442695, %v1096_v58 }
 0x397   : > { %v1095_v60 = vpop.xlane.xlu0 %1094  ;;  %v1091_v61 = vpop.xlane.xlu1 %1090 }
 0x398   : > { %3431 = vpow2.f32 %v1099_v59  ;;  %v1098_v62 = vsub.f32 %v3157_v50, %v1095_v60  ;;  %v1097_v63 = vsub.f32 %v1074_v54, %v1091_v61 }
 0x39a   : > { %v1103_v0 = vmul.f32 1.442695, %v1098_v62  ;;  %v1101_v1 = vmul.f32 1.442695, %v1097_v63 }
 0x39c   : > { %3433 = vpow2.f32 %v1103_v0 }
 0x39d   : > { %3435 = vpow2.f32 %v1101_v1 }
 0x3a5   : > { %v3432_v2 = vpop.eup %3431 }
 0x3a6   : > { %v1105_v3 = vsel %vm1085_vm2, %v3432_v2, 0.0 }
 0x3a7   : > { %1106 = vadd.xlane.f32.xlu1 %v1105_v3 }
 0x3a9   : > { %v3434_v4 = vpop.eup %3433 }
 0x3aa   : > { %v3436_v5 = vpop.eup %3435  ;;  %v1111_v6 = vsel %vm1092_vm3, %v3434_v4, 0.0 }
 0x3ab   : > { %1112 = vadd.xlane.f32.xlu1 %v1111_v6  ;;  %v1108_v9 = vsel %vm1085_vm2, %v3436_v5, 0.0 }
 0x3ac   : > { %1109 = vadd.xlane.f32.xlu0 %v1108_v9 }
 0x3bc   : > { %1191 = vrot.lane.b32.xlu1 %v3819_v44, %s3553_s22 }
 0x3c0   : > { %1185 = vrot.lane.b32.xlu1 %v3809_v34, %s3553_s22 }
 0x3c2   : > { %1193 = vrot.lane.b32.xlu0 %v3816_v42, %s3553_s22 }
 0x3c4   : > { %1360 = vrot.lane.b32.xlu1 %v3816_v42, %s3554_s13 }
 0x3c6   : > { %1187 = vrot.lane.b32.xlu0 %v3829_v49, %s3553_s22 }
 0x3c8   : > { %1358 = vrot.lane.b32.xlu1 %v3819_v44, %s3554_s13 }
 0x3ca   : > { %1354 = vrot.lane.b32.xlu0 %v3809_v34, %s3554_s13 }
 0x3cc   : > { %1356 = vrot.lane.b32.xlu1 %v3829_v49, %s3554_s13 }
 0x430   : > { %v1107_v11 = vpop.xlane.xlu1 %1106 }
 0x431   : > { %3437 = vrcp.f32 %v1107_v11 }
 0x434   : > { %v1113_v12 = vpop.xlane.xlu1 %1112 }
 0x435   : > { %v1110_v13 = vpop.xlane.xlu0 %1109  ;;  %3439 = vrcp.f32 %v1113_v12 }
 0x436   : > { %3441 = vrcp.f32 %v1110_v13 }
 0x438   : > { %v1192_v18 = vpop.permute.xlu1 %1191 }
 0x439   : > { %v1194_v14 = vpop.permute.xlu0 %1193  ;;  %v1202_v29 = vsel %vm1024_vm1, %v1192_v18, 0 }
 0x43a   : > { %3237 = vmatprep.subr.msk.bf16.mxu1 %vm1024_vm1, %v1194_v14  ;;  %v1205_v27 = vsel %vm1024_vm1, %v1194_v14, 0 }
 0x43c   : > { %v1186_v28 = vpop.permute.xlu1 %1185 }
 0x43d   : > { %v1188_v31 = vpop.permute.xlu0 %1187 }
 0x43e   : > { %v3438_v15 = vpop.eup %3437 }
 0x43f   : > { %v1115_v23 = vmul.f32 %v3438_v15, %v3432_v2 }
 0x440   : > { %v1361_v30 = vpop.permute.xlu1 %1360 }
 0x441   : > { %v1355_v32 = vpop.permute.xlu0 %1354  ;;  %v1372_v33 = vsel %vm1024_vm1, %v1361_v30, 0 }
 0x442   : > { %v3440_v16 = vpop.eup %3439 }
 0x443   : > { %v3442_v17 = vpop.eup %3441  ;;  %v1119_v21 = vmul.f32 %v3440_v16, %v3434_v4 }
 0x444   : > { %v1117_v24 = vmul.f32 %v3442_v17, %v3436_v5  ;;  %v1359_v36 = vpop.permute.xlu1 %1358 }
 0x445   : > { %v1121_v25 = vpack.c.bf16 %v1119_v21, %v1119_v21  ;;  %v1369_v38 = vsel %vm1024_vm1, %v1359_v36, 0 }
 0x446   : > { %v1120_v26 = vpack.c.bf16 %v1117_v24, %v1115_v23 }
 0x448   : > { %3163 = vmatprep.mubr.msk.bf16.mxu1 %vm1085_vm2, %v1120_v26  ;;  %v1357_v39 = vpop.permute.xlu1 %1356 }
 0x449   : > { %3164 = vmatmul.mubr.msk.bf16.vlgmr.msra.gmra.mxu1 %vm1085_vm2, %v1121_v25 }
 0x44a   : > { %3168 = vmatpush3.bf16.xpose.msra.mxu1 %v1205_v27  ;;  %3171 = vmatprep.mubr.msk.bf16.mxu1 %vm1024_vm1, %v1186_v28 }
 0x44b   : > { %3238 = vmatprep.subr.msk.bf16.mxu1 %vm1024_vm1, %v1192_v18 }
 0x452   : > { %3170 = vmatpush3.bf16.xpose.msra.mxu1 %v1202_v29 }
 0x453   : > { %3239 = vmatprep.subr.msk.bf16.mxu1 %vm1024_vm1, %v1361_v30 }
 0x459   : > { %3172 = vmatmul.mubr.msk.bf16.vlgmr.msra.gmra.mxu1 %vm1024_vm1, %v1188_v31 }
 0x45a   : > { %3184 = vmatpush3.bf16.xpose.msra.mxu1 %v1372_v33  ;;  %3187 = vmatprep.mubr.msk.bf16.mxu1 %vm1024_vm1, %v1355_v32 }
 0x45b   : > { %3240 = vmatprep.subr.msk.bf16.mxu1 %vm1024_vm1, %v1359_v36 }
 0x462   : > { %3186 = vmatpush3.bf16.xpose.msra.mxu1 %v1369_v38 }
 0x469   : > { %3188 = vmatmul.mubr.msk.bf16.vlgmr.msra.gmra.mxu1 %vm1024_vm1, %v1357_v39 }
 0x509   : > { %v3869_v40 = vpop.f32.mrf.mxu1 }
 0x50b   : > { %v3871_v41 = vpop.f32.mrf.mxu1 }
 0x50d   : > { %v3166_v43 = vpop.f32.mrf.mxu1 }
 0x50f   : > { %v3873_v45 = vpop.f32.mrf.mxu1 }
 0x519   : > { %v3875_v46 = vpop.f32.mrf.mxu1 }
 0x51a   : > { %v1261_v13 = vsel %vm1092_vm3, %v3875_v46, -inf }
 0x51b   : > { %v3877_v47 = vpop.f32.mrf.mxu1 }
 0x51c   : > { %v1255_v12 = vsel %vm1085_vm2, %v3877_v47, -inf }
 0x51d   : > { %v3174_v48 = vpop.f32.mrf.mxu1 }
 0x51f   : > { %v3879_v50 = vpop.f32.mrf.mxu1 }
 0x529   : > { %v3189_v51 = vpop.f32.mrf.mxu1 }
 0x52a   : > { %v1428_v56 = vsel %vm1092_vm3, %v3189_v51, -inf }
 0x52b   : > { %v1408_v52 = vpop.f32.mrf.mxu1 }
 0x52c   : > { %v1422_v53 = vsel %vm1085_vm2, %v1408_v52, -inf }
 0x52d   : > { %1423 = vmax.xlane.f32.xlu0 %v1422_v53  ;;  %v3190_v54 = vpop.f32.mrf.mxu1 }
 0x52f   : > { %v1411_v55 = vpop.f32.mrf.mxu1 }
 0x530   : > { %v1425_v57 = vsel %vm1085_vm2, %v1411_v55, -inf }
 0x531   : > { %1429 = vmax.xlane.f32.xlu0 %v1428_v56  ;;  %1426 = vmax.xlane.f32.xlu1 %v1425_v57 }
 0x5b6   : > { %v1424_v58 = vpop.xlane.xlu0 %1423 }
 0x5b7   : > { %v1431_v59 = vsub.f32 %v1408_v52, %v1424_v58 }
 0x5b9   : > { %v1434_v60 = vmul.f32 1.442695, %v1431_v59 }
 0x5ba   : > { %v1430_v61 = vpop.xlane.xlu0 %1429  ;;  %v1427_v62 = vpop.xlane.xlu1 %1426 }
 0x5bb   : > { %3443 = vpow2.f32 %v1434_v60  ;;  %v1433_v63 = vsub.f32 %v3189_v51, %v1430_v61  ;;  %v1432_v0 = vsub.f32 %v1411_v55, %v1427_v62 }
 0x5bd   : > { %v1438_v1 = vmul.f32 1.442695, %v1433_v63  ;;  %v1436_v2 = vmul.f32 1.442695, %v1432_v0 }
 0x5bf   : > { %3445 = vpow2.f32 %v1438_v1 }
 0x5c0   : > { %3447 = vpow2.f32 %v1436_v2 }
 0x5c8   : > { %v3444_v3 = vpop.eup %3443 }
 0x5c9   : > { %v1440_v4 = vsel %vm1085_vm2, %v3444_v3, 0.0 }
 0x5ca   : > { %1441 = vadd.xlane.f32.xlu0 %v1440_v4 }
 0x5cc   : > { %v3446_v5 = vpop.eup %3445 }
 0x5cd   : > { %v3448_v6 = vpop.eup %3447  ;;  %v1446_v9 = vsel %vm1092_vm3, %v3446_v5, 0.0 }
 0x5ce   : > { %1447 = vadd.xlane.f32.xlu1 %v1446_v9  ;;  %v1443_v11 = vsel %vm1085_vm2, %v3448_v6, 0.0 }
 0x5cf   : > { %1444 = vadd.xlane.f32.xlu0 %v1443_v11 }
 0x5df   : > { %1457 = vrot.lane.b32.xlu1 %v3811_v35, %s3554_s13 }
 0x5e3   : > { %1525 = vrot.lane.b32.xlu1 %v3816_v42, %s3555_s27  ;;  %v1258_v42 = vsel %vm1085_vm2, %v3879_v50, -inf }
 0x5e5   : > { %1459 = vrot.lane.b32.xlu0 %v3802_v20, %s3554_s13 }
 0x5e7   : > { %1523 = vrot.lane.b32.xlu1 %v3819_v44, %s3555_s27 }
 0x5e9   : > { %1519 = vrot.lane.b32.xlu0 %v3809_v34, %s3555_s27 }
 0x5eb   : > { %1521 = vrot.lane.b32.xlu1 %v3829_v49, %s3555_s27 }
 0x608   : > { %1256 = vmax.xlane.f32.xlu0 %v1255_v12 }
 0x60c   : > { %1262 = vmax.xlane.f32.xlu0 %v1261_v13 }
 0x60f   : > { %1259 = vmax.xlane.f32.xlu1 %v1258_v42 }
 0x653   : > { %v1442_v14 = vpop.xlane.xlu0 %1441 }
 0x654   : > { %3449 = vrcp.f32 %v1442_v14 }
 0x657   : > { %v1448_v44 = vpop.xlane.xlu1 %1447 }
 0x658   : > { %v1445_v15 = vpop.xlane.xlu0 %1444  ;;  %3451 = vrcp.f32 %v1448_v44 }
 0x659   : > { %3453 = vrcp.f32 %v1445_v15 }
 0x65b   : > { %v1458_v16 = vpop.permute.xlu1 %1457 }
 0x65c   : > { %v1460_v34 = vpop.permute.xlu0 %1459 }
 0x65d   : > { %v1469_v49 = vand.u32 %v1460_v34, %v3800_v19 }
 0x65f   : > { %3191 = vmatprep.subr.bf16.mxu1 %v1469_v49  ;;  %v1526_v18 = vpop.permute.xlu1 %1525 }
 0x660   : > { %3192 = vmatpush3.bf16.msra.mxu1 %v1469_v49  ;;  %v1520_v29 = vpop.permute.xlu0 %1519  ;;  %v1537_v30 = vsel %vm1024_vm1, %v1526_v18, 0 }
 0x661   : > { %3193 = vmatprep.subr.bf16.mxu1 %v1458_v16  ;;  %v3450_v17 = vpop.eup %3449 }
 0x662   : > { %v1450_v25 = vmul.f32 %v3450_v17, %v3444_v3 }
 0x663   : > { %v1524_v31 = vpop.permute.xlu1 %1523 }
 0x664   : > { %3194 = vmatpush3.bf16.msra.mxu1 %v1458_v16  ;;  %v1534_v32 = vsel %vm1024_vm1, %v1524_v31, 0 }
 0x665   : > { %v3452_v21 = vpop.eup %3451  ;;  %3241 = vmatprep.subr.msk.bf16.mxu1 %vm1024_vm1, %v1526_v18 }
 0x666   : > { %v3454_v23 = vpop.eup %3453  ;;  %v1454_v24 = vmul.f32 %v3452_v21, %v3446_v5 }
 0x667   : > { %v1452_v26 = vmul.f32 %v3454_v23, %v3448_v6  ;;  %v1522_v33 = vpop.permute.xlu1 %1521 }
 0x668   : > { %v1456_v27 = vpack.c.bf16 %v1454_v24, %v1454_v24 }
 0x669   : > { %v1455_v28 = vpack.c.bf16 %v1452_v26, %v1450_v25 }
 0x66b   : > { %3195 = vmatprep.mubr.msk.bf16.mxu1 %vm1085_vm2, %v1455_v28 }
 0x66c   : > { %3196 = vmatmul.mubr.msk.bf16.vlgmr.msra.gmra.mxu1 %vm1085_vm2, %v1456_v27 }
 0x66d   : > { %3200 = vmatpush3.bf16.xpose.msra.mxu1 %v1537_v30  ;;  %3203 = vmatprep.mubr.msk.bf16.mxu1 %vm1024_vm1, %v1520_v29 }
 0x66e   : > { %3242 = vmatprep.subr.msk.bf16.mxu1 %vm1024_vm1, %v1524_v31 }
 0x675   : > { %3202 = vmatpush3.bf16.xpose.msra.mxu1 %v1534_v32 }
 0x67c   : > { %3204 = vmatmul.mubr.msk.bf16.vlgmr.msra.gmra.mxu1 %vm1024_vm1, %v1522_v33 }
 0x67d   : > { %2141 = vmatprep.mubr.bf16.mxu1 %v3552_v37 }
 0x691   : > { %v1257_v39 = vpop.xlane.xlu0 %1256 }
 0x692   : > { %v1264_v52 = vsub.f32 %v3877_v47, %v1257_v39 }
 0x694   : > { %v1267_v56 = vmul.f32 1.442695, %v1264_v52 }
 0x695   : > { %v1263_v53 = vpop.xlane.xlu0 %1262 }
 0x696   : > { %v1266_v57 = vsub.f32 %v3875_v46, %v1263_v53 }
 0x698   : > { %v1260_v36 = vpop.xlane.xlu1 %1259 }
 0x699   : > { %v1265_v38 = vsub.f32 %v3879_v50, %v1260_v36  ;;  %v1271_v50 = vmul.f32 1.442695, %v1266_v57 }
 0x69b   : > { %v1269_v48 = vmul.f32 1.442695, %v1265_v38 }
 0x69d   : > { %3455 = vpow2.f32 %v1269_v48 }
 0x69e   : > { %3457 = vpow2.f32 %v1267_v56 }
 0x69f   : > { %3459 = vpow2.f32 %v1271_v50 }
 0x6aa   : > { %v3456_v61 = vpop.eup %3455 }
 0x6ab   : > { %v1276_v0 = vsel %vm1085_vm2, %v3456_v61, 0.0  ;;  %v3458_v2 = vpop.eup %3457 }
 0x6ac   : > { %v1273_v3 = vsel %vm1085_vm2, %v3458_v2, 0.0  ;;  %v3460_v4 = vpop.eup %3459 }
 0x6ad   : > { %v1279_v5 = vsel %vm1092_vm3, %v3460_v4, 0.0 }
 0x72c   : > { %v3916_v43 = vpop.f32.mrf.mxu1 }
 0x72e   : > { %v3918_v51 = vpop.f32.mrf.mxu1 }
 0x730   : > { %v3198_v54 = vpop.f32.mrf.mxu1 }
 0x732   : > { %v3921_v55 = vpop.f32.mrf.mxu1 }
 0x733   : > { %v3295_v58 = vpack.i.bf16 %v3921_v55, %v3918_v51 }
 0x73c   : > { %v3205_v59 = vpop.f32.mrf.mxu1 }
 0x73d   : > { %v1593_v60 = vsel %vm1092_vm3, %v3205_v59, -inf }
 0x73e   : > { %1594 = vmax.xlane.f32.xlu1 %v1593_v60  ;;  %v1573_v47 = vpop.f32.mrf.mxu1 }
 0x73f   : > { %v1587_v62 = vsel %vm1085_vm2, %v1573_v47, -inf }
 0x740   : > { %1588 = vmax.xlane.f32.xlu0 %v1587_v62  ;;  %v3206_v63 = vpop.f32.mrf.mxu1  ;;  %v3337_v62 = vld [vmem:[%s3684_s18 + $0x38] sm:$0xff]  }
 0x741   : > { %v3338_v63 = vld [vmem:[%s3684_s18 + $0x30] sm:$0xff]  }
 0x742   : > { %v1576_v1 = vpop.f32.mrf.mxu1  ;;  %1277 = vadd.xlane.f32.xlu1 %v1276_v0  ;;  %v3339_v0 = vld [vmem:[%s3684_s18 + $0x28] sm:$0xff]  }
 0x743   : > { %v1590_v46 = vsel %vm1085_vm2, %v1576_v1, -inf }
 0x744   : > { %1591 = vmax.xlane.f32.xlu0 %v1590_v46  ;;  %v3341_v46 = vld [vmem:[%s3684_s18 + $0x18] sm:$0xff]  }
 0x748   : > { %1274 = vadd.xlane.f32.xlu0 %v1273_v3 }
 0x74c   : > { %1280 = vadd.xlane.f32.xlu0 %v1279_v5 }
 0x7c7   : > { %v1595_v6 = vpop.xlane.xlu1 %1594 }
 0x7c8   : > { %v1598_v9 = vsub.f32 %v3205_v59, %v1595_v6 }
 0x7c9   : > { %v1589_v11 = vpop.xlane.xlu0 %1588 }
 0x7ca   : > { %v1603_v12 = vmul.f32 1.442695, %v1598_v9  ;;  %v1596_v13 = vsub.f32 %v1573_v47, %v1589_v11  ;;  %v3344_v9 = vld [vmem:[%s3684_s18] sm:$0xff]  }
 0x7cb   : > { %v1278_v44 = vpop.xlane.xlu1 %1277 }
 0x7cc   : > { %3461 = vpow2.f32 %v1603_v12  ;;  %v1599_v42 = vmul.f32 1.442695, %v1596_v13 }
 0x7cd   : > { %v1592_v14 = vpop.xlane.xlu0 %1591 }
 0x7ce   : > { %3463 = vpow2.f32 %v1599_v42  ;;  %v1597_v15 = vsub.f32 %v1576_v1, %v1592_v14  ;;  %v3340_v1 = vld [vmem:[%s3684_s18 + $0x20] sm:$0xff]  }
 0x7cf   : > { %3465 = vrcp.f32 %v1278_v44 }
 0x7d0   : > { %v1601_v34 = vmul.f32 1.442695, %v1597_v15 }
 0x7d1   : > { %v1275_v49 = vpop.xlane.xlu0 %1274 }
 0x7d2   : > { %3467 = vpow2.f32 %v1601_v34 }
 0x7d3   : > { %3469 = vrcp.f32 %v1275_v49 }
 0x7d5   : > { %v1281_v30 = vpop.xlane.xlu0 %1280 }
 0x7d6   : > { %3471 = vrcp.f32 %v1281_v30 }
 0x7d9   : > { %v3462_v16 = vpop.eup %3461 }
 0x7da   : > { %v1611_v17 = vsel %vm1092_vm3, %v3462_v16, 0.0 }
 0x7db   : > { %v3464_v18 = vpop.eup %3463  ;;  %1612 = vadd.xlane.f32.xlu1 %v1611_v17 }
 0x7dc   : > { %v3466_v21 = vpop.eup %3465  ;;  %v1605_v23 = vsel %vm1085_vm2, %v3464_v18, 0.0 }
 0x7dd   : > { %v1285_v28 = vmul.f32 %v3466_v21, %v3456_v61 }
 0x7df   : > { %v3468_v24 = vpop.eup %3467  ;;  %1606 = vadd.xlane.f32.xlu1 %v1605_v23 }
 0x7e0   : > { %v3470_v25 = vpop.eup %3469  ;;  %v1608_v26 = vsel %vm1085_vm2, %v3468_v24, 0.0 }
 0x7e1   : > { %1609 = vadd.xlane.f32.xlu0 %v1608_v26  ;;  %v1283_v27 = vmul.f32 %v3470_v25, %v3458_v2  ;;  %v3342_v2 = vld [vmem:[%s3684_s18 + $0x10] sm:$0xff]  }
 0x7e3   : > { %v1288_v29 = vpack.c.bf16 %v1285_v28, %v1283_v27  ;;  %v3472_v48 = vpop.eup %3471 }
 0x7e5   : > { %3179 = vmatprep.mubr.msk.bf16.mxu0 %vm1085_vm2, %v1288_v29 }
 0x7f0   : > { %1292 = vrot.lane.b32.xlu1 %v3811_v35, %s3553_s22 }
 0x7f4   : > { %1624 = vrot.lane.b32.xlu1 %v3802_v20, %s3555_s27 }
 0x7f7   : > { %1294 = vrot.lane.b32.xlu0 %v3802_v20, %s3553_s22  ;;  %v1287_v20 = vmul.f32 %v3472_v48, %v3460_v4  ;;  %v3343_v4 = vld [vmem:[%s3684_s18 + $0x8] sm:$0xff]  }
 0x7f8   : > { %1622 = vrot.lane.b32.xlu1 %v3811_v35, %s3555_s27 }
 0x7f9   : > { %v1289_v56 = vpack.c.bf16 %v1287_v20, %v1287_v20  ;;  %v3509_v20 = vld [vmem:[%s3727_s5] sm:$0xff] }
 0x864   : > { %v1613_v31 = vpop.xlane.xlu1 %1612 }
 0x868   : > { %v1607_v32 = vpop.xlane.xlu1 %1606 }
 0x869   : > { %3473 = vrcp.f32 %v1607_v32 }
 0x86a   : > { %3475 = vrcp.f32 %v1613_v31  ;;  %v1610_v33 = vpop.xlane.xlu0 %1609 }
 0x86b   : > { %3477 = vrcp.f32 %v1610_v33 }
 0x86c   : > { %v1293_v36 = vpop.permute.xlu1 %1292 }
 0x86e   : > { %v1295_v38 = vpop.permute.xlu0 %1294 }
 0x86f   : > { %v1304_v39 = vand.u32 %v1295_v38, %v3800_v19 }
 0x870   : > { %v1625_v52 = vpop.permute.xlu1 %1624 }
 0x871   : > { %3175 = vmatprep.subr.bf16.mxu0 %v1304_v39  ;;  %v1634_v35 = vand.u32 %v1625_v52, %v3800_v19 }
 0x872   : > { %3176 = vmatpush3.bf16.msra.mxu0 %v1304_v39 }
 0x873   : > { %3177 = vmatprep.subr.bf16.mxu0 %v1293_v36 }
 0x874   : > { %v1623_v60 = vpop.permute.xlu1 %1622 }
 0x876   : > { %v3474_v53 = vpop.eup %3473  ;;  %3178 = vmatpush3.bf16.msra.mxu0 %v1293_v36 }
 0x877   : > { %v3476_v54 = vpop.eup %3475  ;;  %3207 = vmatprep.subr.bf16.mxu0 %v1634_v35  ;;  %v1615_v50 = vmul.f32 %v3474_v53, %v3464_v18  ;;  %v3510_v53 = vld [vmem:[%s3727_s5 + $0x10] sm:$0x1] }
 0x878   : > { %v3478_v57 = vpop.eup %3477  ;;  %v1619_v47 = vmul.f32 %v3476_v54, %v3462_v16 }
 0x879   : > { %3180 = vmatmul.mubr.msk.bf16.vlgmr.msra.gmra.mxu0 %vm1085_vm2, %v1289_v56  ;;  %v1617_v59 = vmul.f32 %v3478_v57, %v3468_v24 }
 0x87a   : > { %3208 = vmatpush3.bf16.msra.mxu0 %v1634_v35  ;;  %v1621_v19 = vpack.c.bf16 %v1619_v47, %v1619_v47  ;;  %v3347_v47 = vld [vmem:[%s3708_s20 + $0xe4] ss:$16 sps:$4 sm:$0xff]  }
 0x87b   : > { %3209 = vmatprep.subr.bf16.mxu0 %v1623_v60  ;;  %v1620_v61 = vpack.c.bf16 %v1617_v59, %v1615_v50  ;;  %v3511_v50 = vld [vmem:[%s3727_s5 + $0x8] sm:$0xff]  ;;  %2109 = vmatprep.subr.bf16.mxu1 %v3347_v47 }
 0x87d   : > { %3211 = vmatprep.mubr.msk.bf16.mxu0 %vm1085_vm2, %v1620_v61  ;;  %v3345_v61 = vld [vmem:[%s3708_s20 + $0xe0] ss:$16 sps:$4 sm:$0xff]  }
 0x87e   : > { %3210 = vmatpush3.bf16.msra.mxu0 %v1623_v60  ;;  %2110 = vmatpush1.bf16.msra.mxu1 %v3345_v61  ;;  %v2951_v61 = vld [vmem:[%s4264_s2] ss:$0 sm:$0xff] }
 0x87f   : > { %3215 = vmatprep.subr.bf16.mxu0 %v3337_v62 }
 0x881   : > { %3212 = vmatmul.mubr.msk.bf16.vlgmr.msra.gmra.mxu0 %vm1085_vm2, %v1621_v19  ;;  %v3348_v19 = vld [vmem:[%s3708_s20 + $0xe8] ss:$16 sps:$4 sm:$0xff]  }
 0x882   : > { %3216 = vmatpush3.bf16.msra.mxu0 %v3337_v62  ;;  %v3350_v62 = vld [vmem:[%s3708_s20 + $0xec] ss:$16 sps:$4 sm:$0xff]  }
 0x883   : > { %3217 = vmatprep.subr.bf16.mxu0 %v3338_v63 }
 0x886   : > { %3218 = vmatpush3.bf16.msra.mxu0 %v3338_v63 }
 0x887   : > { %3219 = vmatprep.subr.bf16.mxu0 %v3339_v0 }
 0x88a   : > { %3220 = vmatpush3.bf16.msra.mxu0 %v3339_v0 }
 0x88b   : > { %3221 = vmatprep.subr.bf16.mxu0 %v3340_v1 }
 0x88e   : > { %3222 = vmatpush3.bf16.msra.mxu0 %v3340_v1 }
 0x88f   : > { %3223 = vmatprep.subr.bf16.mxu0 %v3341_v46 }
 0x892   : > { %3224 = vmatpush3.bf16.msra.mxu0 %v3341_v46 }
 0x893   : > { %3225 = vmatprep.subr.bf16.mxu0 %v3342_v2 }
 0x896   : > { %3226 = vmatpush3.bf16.msra.mxu0 %v3342_v2 }
 0x897   : > { %3227 = vmatprep.subr.bf16.mxu0 %v3343_v4 }
 0x89a   : > { %3228 = vmatpush3.bf16.msra.mxu0 %v3343_v4 }
 0x89b   : > { %3229 = vmatprep.subr.bf16.mxu0 %v3344_v9 }
 0x89e   : > { %3230 = vmatpush3.bf16.msra.mxu0 %v3344_v9 }
 0x89f   : > { %2160 = vmatprep.subr.bf16.mxu0 %v3350_v62 }
 0x939   : > { %v3181_v3 = vpop.f32.mrf.mxu0 }
 0x93a   : > { %1691 = vrot.lane.b32.xlu1 %v3181_v3, %s3555_s27 }
 0x93b   : > { %v1340_v5 = vpop.f32.mrf.mxu0 }
 0x93d   : > { %v3182_v6 = vpop.f32.mrf.mxu0 }
 0x93e   : > { %1703 = vrot.lane.b32.xlu1 %v3916_v43, %s3554_s13 }
 0x93f   : > { %v1343_v11 = vpop.f32.mrf.mxu0 }
 0x940   : > { %v3290_v12 = vpack.i.bf16 %v1343_v11, %v1340_v5 }
 0x941   : > { %v3213_v13 = vpop.f32.mrf.mxu0 }
 0x942   : > { %3291 = vrot.lane.b32.xlu0 %v3290_v12, %s3555_s27  ;;  %1715 = vrot.lane.b32.xlu1 %v3213_v13, %s3553_s22 }
 0x943   : > { %v1670_v42 = vpop.f32.mrf.mxu0 }
 0x945   : > { %v3214_v14 = vpop.f32.mrf.mxu0 }
 0x946   : > { %3296 = vrot.lane.b32.xlu0 %v3295_v58, %s3554_s13  ;;  %v3356_v14 = vld [vmem:[%s3708_s20 + $0xcc] ss:$16 sps:$4 sm:$0xff]  }
 0x947   : > { %v1673_v44 = vpop.f32.mrf.mxu0 }
 0x948   : > { %v3300_v15 = vpack.i.bf16 %v1673_v44, %v1670_v42  ;;  %v3353_v42 = vld [vmem:[%s3708_s20 + $0xc4] ss:$16 sps:$4 sm:$0xff]   ;;  %v3351_v44 = vld [vmem:[%s3708_s20 + $0xc0] ss:$16 sps:$4 sm:$0xff]  }
 0x949   : > { %2111 = vmatprep.subr.bf16.mxu1 %v3353_v42  ;;  %v3396_v42 = vld [vmem:[%s3718_s0 + $0xb8] sm:$0xff]  }
 0x94a   : > { %3301 = vrot.lane.b32.xlu0 %v3300_v15, %s3553_s22  ;;  %v3354_v15 = vld [vmem:[%s3708_s20 + $0xc8] ss:$16 sps:$4 sm:$0xff]   ;;  %2112 = vmatpush1.bf16.msra.mxu1 %v3351_v44  ;;  %v3399_v44 = vld [vmem:[%s3718_s0 + $0x30] sm:$0xff]  }
 0x9ac   : > { %v1692_v43 = vpop.permute.xlu1 %1691 }
 0x9ad   : > { %v1722_v24 = vsel %vm1024_vm1, %v3869_v40, %v1692_v43  ;;  %v3359_v43 = vld [vmem:[%s3708_s20 + $0xa4] ss:$16 sps:$4 sm:$0xff]  }
 0x9ae   : > { %2113 = vmatprep.subr.bf16.mxu1 %v3359_v43  ;;  %v3401_v43 = vld [vmem:[%s3718_s0 + $0x68] sm:$0xff]  }
 0x9b0   : > { %v1704_v49 = vpop.permute.xlu1 %1703 }
 0x9b1   : > { %v1726_v51 = vsel %vm1723_vm4, %v1722_v24, %v1704_v49  ;;  %v3357_v49 = vld [vmem:[%s3708_s20 + $0xa0] ss:$16 sps:$4 sm:$0xff]   ;;  %v3371_v24 = vld [vmem:[%s3708_s20 + $0x64] ss:$16 sps:$4 sm:$0xff]  }
 0x9b2   : > { %2114 = vmatpush1.bf16.msra.mxu1 %v3357_v49  ;;  %v3403_v49 = vld [vmem:[%s3718_s0 + $0x28] sm:$0xff]  }
 0x9b4   : > { %v3292_v34 = vpop.permute.xlu0 %3291  ;;  %v1716_v25 = vpop.permute.xlu1 %1715 }
 0x9b5   : > { %v3294_v17 = vunpack.i.h.bf16 %v3292_v34  ;;  %v3293_v18 = vunpack.i.l.bf16 %v3292_v34  ;;  %v1730_v29 = vsel %vm1727_vm5, %v1726_v51, %v1716_v25  ;;  %v3362_v34 = vld [vmem:[%s3708_s20 + $0xac] ss:$16 sps:$4 sm:$0xff]   ;;  %v3369_v51 = vld [vmem:[%s3708_s20 + $0x60] ss:$16 sps:$4 sm:$0xff]  }
 0x9b6   : > { %v1732_v36 = vpack.c.bf16 %v1730_v29, %v1730_v29  ;;  %v3374_v25 = vld [vmem:[%s3708_s20 + $0x6c] ss:$16 sps:$4 sm:$0xff]   ;;  %v3383_v29 = vld [vmem:[%s3708_s20 + $0x24] ss:$16 sps:$4 sm:$0xff]  }
 0x9b7   : > { %v1721_v58 = vsel %vm1024_vm1, %v3873_v45, %v3294_v17  ;;  %v1720_v26 = vsel %vm1024_vm1, %v3871_v41, %v3293_v18  ;;  %v2942_v41 = vld [vmem:[%s4263_s21] ss:$0 sm:$0xff]  ;;  %v3365_v18 = vld [vmem:[%s3708_s20 + $0x84] ss:$16 sps:$4 sm:$0xff]  }
 0x9b8   : > { %v3297_v16 = vpop.permute.xlu0 %3296  ;;  %v3363_v17 = vld [vmem:[%s3708_s20 + $0x80] ss:$16 sps:$4 sm:$0xff]   ;;  %2115 = vmatprep.subr.bf16.mxu1 %v3365_v18 }
 0x9b9   : > { %v3299_v21 = vunpack.i.h.bf16 %v3297_v16  ;;  %v3298_v23 = vunpack.i.l.bf16 %v3297_v16  ;;  %v3360_v16 = vld [vmem:[%s3708_s20 + $0xa8] ss:$16 sps:$4 sm:$0xff]   ;;  %2116 = vmatpush1.bf16.msra.mxu1 %v3363_v17  ;;  %v3405_v17 = vld [vmem:[%s3718_s0 + $0x60] sm:$0xff]  }
 0x9ba   : > { %2117 = vmatprep.subr.bf16.mxu1 %v3371_v24  ;;  %v3406_v18 = vld [vmem:[%s3718_s0 + $0xe0] sm:$0xff]   ;;  %v3409_v24 = vld [vmem:[%s3718_s0 + $0x58] sm:$0xff]  }
 0x9bb   : > { %v1724_v30 = vsel %vm1723_vm4, %v1720_v26, %v3298_v23  ;;  %v1725_v40 = vsel %vm1723_vm4, %v1721_v58, %v3299_v21  ;;  %v3366_v21 = vld [vmem:[%s3708_s20 + $0x88] ss:$16 sps:$4 sm:$0xff]   ;;  %v3368_v23 = vld [vmem:[%s3708_s20 + $0x8c] ss:$16 sps:$4 sm:$0xff]   ;;  %v3377_v58 = vld [vmem:[%s3708_s20 + $0x44] ss:$16 sps:$4 sm:$0xff]  }
 0x9bc   : > { %v3302_v55 = vpop.permute.xlu0 %3301  ;;  %v3380_v26 = vld [vmem:[%s3708_s20 + $0x4c] ss:$16 sps:$4 sm:$0xff]  }
 0x9bd   : > { %v3304_v27 = vunpack.i.h.bf16 %v3302_v55  ;;  %v3303_v28 = vunpack.i.l.bf16 %v3302_v55  ;;  %v3372_v55 = vld [vmem:[%s3708_s20 + $0x68] ss:$16 sps:$4 sm:$0xff]   ;;  %2118 = vmatpush1.bf16.msra.mxu1 %v3369_v51 }
 0x9be   : > { %2119 = vmatprep.subr.bf16.mxu1 %v3377_v58  ;;  %v3411_v51 = vld [vmem:[%s3718_s0 + $0x18] sm:$0xff]   ;;  %v3413_v58 = vld [vmem:[%s3718_s0 + $0x50] sm:$0xff]  }
 0x9bf   : > { %v1728_v31 = vsel %vm1727_vm5, %v1724_v30, %v3303_v28  ;;  %v1729_v32 = vsel %vm1727_vm5, %v1725_v40, %v3304_v27  ;;  %v3375_v27 = vld [vmem:[%s3708_s20 + $0x40] ss:$16 sps:$4 sm:$0xff]   ;;  %v3378_v28 = vld [vmem:[%s3708_s20 + $0x48] ss:$16 sps:$4 sm:$0xff]   ;;  %v3386_v30 = vld [vmem:[%s3708_s20 + $0x2c] ss:$16 sps:$4 sm:$0xff]  }
 0x9c0   : > { %v1731_v33 = vpack.c.bf16 %v1729_v32, %v1728_v31  ;;  %v3381_v40 = vld [vmem:[%s3708_s20 + $0x20] ss:$16 sps:$4 sm:$0xff]   ;;  %v3384_v31 = vld [vmem:[%s3708_s20 + $0x28] ss:$16 sps:$4 sm:$0xff]   ;;  %v3389_v32 = vld [vmem:[%s3708_s20 + $0x4] ss:$16 sps:$4 sm:$0xff]  }
 0x9c1   : > { %2120 = vmatpush1.bf16.msra.mxu1 %v3375_v27  ;;  %v3415_v27 = vld [vmem:[%s3718_s0 + $0x10] sm:$0xff]  }
 0x9c2   : > { %3231 = vmatprep.mubr.bf16.mxu0 %v1731_v33  ;;  %2121 = vmatprep.subr.bf16.mxu1 %v3383_v29  ;;  %v3392_v33 = vld [vmem:[%s3708_s20 + $0xc] ss:$16 sps:$4 sm:$0xff]  }
 0x9c3   : > { %3232 = vmatmul.mubr.bf16.vlgmr.msra.gmra.mxu0 %v1732_v36  ;;  %v3387_v36 = vld [vmem:[%s3708_s20] ss:$16 sps:$4 sm:$0xff]   ;;  %v3417_v29 = vld [vmem:[%s3718_s0 + $0x48] sm:$0xff]  }
 0x9c4   : > { %2192 = vmatprep.mubr.bf16.mxu0 %v3552_v37  ;;  %2161 = vmatpush1.bf16.msra.mxu0 %v3348_v19 }
 0x9c5   : > { %2162 = vmatprep.subr.bf16.mxu0 %v3356_v14  ;;  %2122 = vmatpush1.bf16.msra.mxu1 %v3381_v40  ;;  %v3397_v14 = vld [vmem:[%s3718_s0 + $0x70] sm:$0xff]   ;;  %v3419_v40 = vld [vmem:[%s3718_s0 + $0x8] sm:$0xff]  }
 0x9c6   : > { %2123 = vmatprep.subr.bf16.mxu1 %v3389_v32  ;;  %v3421_v32 = vld [vmem:[%s3718_s0 + $0x40] sm:$0xff]  }
 0x9c8   : > { %2163 = vmatpush1.bf16.msra.mxu0 %v3354_v15  ;;  %v3400_v15 = vld [vmem:[%s3718_s0 + $0xb0] sm:$0xff]  }
 0x9c9   : > { %2164 = vmatprep.subr.bf16.mxu0 %v3362_v34  ;;  %2124 = vmatpush1.bf16.msra.mxu1 %v3387_v36  ;;  %v3402_v34 = vld [vmem:[%s3718_s0 + $0xe8] sm:$0xff]   ;;  %v3423_v36 = vld [vmem:[%s3718_s0] sm:$0xff]  }
 0x9cc   : > { %2165 = vmatpush1.bf16.msra.mxu0 %v3360_v16  ;;  %v3404_v16 = vld [vmem:[%s3718_s0 + $0xa8] sm:$0xff]  }
 0x9cd   : > { %2166 = vmatprep.subr.bf16.mxu0 %v3368_v23  ;;  %v3408_v23 = vld [vmem:[%s3718_s0 + $0xa0] sm:$0xff]  }
 0x9d0   : > { %2167 = vmatpush1.bf16.msra.mxu0 %v3366_v21  ;;  %v3407_v21 = vld [vmem:[%s3718_s0 + $0x20] sm:$0xff]  }
 0x9d1   : > { %2168 = vmatprep.subr.bf16.mxu0 %v3374_v25  ;;  %v3410_v25 = vld [vmem:[%s3718_s0 + $0xd8] sm:$0xff]  }
 0x9d4   : > { %2169 = vmatpush1.bf16.msra.mxu0 %v3372_v55  ;;  %v3412_v55 = vld [vmem:[%s3718_s0 + $0x98] sm:$0xff]  }
 0x9d5   : > { %2170 = vmatprep.subr.bf16.mxu0 %v3380_v26  ;;  %v3414_v26 = vld [vmem:[%s3718_s0 + $0xd0] sm:$0xff]  }
 0x9d8   : > { %2171 = vmatpush1.bf16.msra.mxu0 %v3378_v28  ;;  %v3416_v28 = vld [vmem:[%s3718_s0 + $0x90] sm:$0xff]  }
 0x9d9   : > { %2172 = vmatprep.subr.bf16.mxu0 %v3386_v30  ;;  %v3418_v30 = vld [vmem:[%s3718_s0 + $0xc8] sm:$0xff]  }
 0x9dc   : > { %2173 = vmatpush1.bf16.msra.mxu0 %v3384_v31  ;;  %v3420_v31 = vld [vmem:[%s3718_s0 + $0x88] sm:$0xff]  }
 0x9dd   : > { %2174 = vmatprep.subr.bf16.mxu0 %v3392_v33  ;;  %v3422_v33 = vld [vmem:[%s3718_s0 + $0xc0] sm:$0xff]  }
 0xa83   : > { %v3233_v45 = vpop.f32.mrf.mxu0 }
 0xa84   : > { %v1830_v38 = vadd.f32 %v3233_v45, %v2942_v41 }
 0xa85   : > { %v1821_v39 = vpop.f32.mrf.mxu0 }
 0xa86   : > { %v1822_v48 = vadd.f32 %v2942_v41, %v1821_v39  ;;  %v3986_v54 = vadd.f32 %v3510_v53, %v1830_v38 }
 0xa87   : > { %v3234_v52 = vpop.f32.mrf.mxu0 }
 0xa88   : > { %v3983_v35 = vadd.f32 %v3509_v20, %v1822_v48  ;;  %v1844_v60 = vsel %vm671_vm0, %v3986_v54, 0.0 }
 0xa89   : > { %v1824_v56 = vpop.f32.mrf.mxu0 }
 0xa8a   : > { %v1825_v57 = vadd.f32 %v2942_v41, %v1824_v56  ;;  %1840 = vadd.xlane.f32.xlu0 %v3983_v35  ;;  %v3390_v41 = vld [vmem:[%s3708_s20 + $0x8] ss:$16 sps:$4 sm:$0xff]  }
 0xa8b   : > { %2175 = vmatpush1.bf16.msra.mxu0 %v3390_v41  ;;  %v3424_v41 = vld [vmem:[%s3718_s0 + $0x80] sm:$0xff]  }
 0xa8c   : > { %v3990_v59 = vadd.f32 %v3511_v50, %v1825_v57 }
 0xa8e   : > { %1842 = vadd.xlane.f32.xlu1 %v3990_v59  ;;  %1845 = vadd.xlane.f32.xlu0 %v1844_v60 }
 0xb13   : > { %v1841_v63 = vpop.xlane.xlu0 %1840 }
 0xb14   : > { %v1847_v0 = vmul.f32 0.0078125, %v1841_v63 }
 0xb16   : > { %v4000_v1 = vsub.f32 %v3983_v35, %v1847_v0  ;;  %v2952_v0 = vld [vmem:[%s4265_s3] ss:$0 sm:$0xff] }
 0xb17   : > { %v1843_v46 = vpop.xlane.xlu1 %1842  ;;  %v1846_v2 = vpop.xlane.xlu0 %1845 }
 0xb18   : > { %v1848_v3 = vmul.f32 0.0078125, %v1843_v46  ;;  %v1849_v4 = vmul.f32 0.0078125, %v1846_v2  ;;  %v1853_v5 = vmul.f32 %v4000_v1, %v4000_v1 }
 0xb1a   : > { %v4005_v6 = vsub.f32 %v3990_v59, %v1848_v3  ;;  %v4008_v9 = vsub.f32 %v3986_v54, %v1849_v4  ;;  %1856 = vadd.xlane.f32.xlu0 %v1853_v5 }
 0xb1c   : > { %v1854_v11 = vmul.f32 %v4005_v6, %v4005_v6  ;;  %v1855_v12 = vmul.f32 %v4008_v9, %v4008_v9 }
 0xb1e   : > { %1858 = vadd.xlane.f32.xlu0 %v1854_v11  ;;  %v1860_v13 = vsel %vm671_vm0, %v1855_v12, 0.0  ;;  %v3394_v12 = vld [vmem:[%s3718_s0 + $0xf8] sm:$0xff]  }
 0xb1f   : > { %1861 = vadd.xlane.f32.xlu1 %v1860_v13  ;;  %v3395_v13 = vld [vmem:[%s3718_s0 + $0x38] sm:$0xff]   ;;  %3103 = vmatprep.subr.bf16.mxu0 %v3394_v12 }
 0xba3   : > { %v1857_v45 = vpop.xlane.xlu0 %1856 }
 0xba4   : > { %v1863_v38 = vmul.f32 0.0078125, %v1857_v45  ;;  %v1927_v45 = vld [vmem:[%s3713_s23] sm:$0xf] }
 0xba6   : > { %v1866_v39 = vadd.f32 1e-12, %v1863_v38  ;;  %v1943_v38 = vsub.s32 3, %v3789_v7 }
 0xba7   : > { %v1859_v48 = vpop.xlane.xlu0 %1858 }
 0xba8   : > { %3479 = vrsqrt.f32 %v1866_v39  ;;  %v1864_v52 = vmul.f32 0.0078125, %v1859_v48  ;;  %v1862_v20 = vpop.xlane.xlu1 %1861  ;;  %v1932_v39 = vrot.slane %v1927_v45, %v777_v10  ;;  %v4096_v48 = vrot.slane %v1927_v45, %v785_v8 }
 0xba9   : > { %v1865_v53 = vmul.f32 0.0078125, %v1862_v20  ;;  %v4102_v20 = vrot.slane %v1927_v45, %v1943_v38 }
 0xbaa   : > { %v1867_v56 = vadd.f32 1e-12, %v1864_v52  ;;  %v4100_v52 = vrot.slane %v1927_v45, %v781_v22 }
 0xbab   : > { %v1868_v57 = vadd.f32 1e-12, %v1865_v53 }
 0xbac   : > { %3481 = vrsqrt.f32 %v1867_v56 }
 0xbad   : > { %3483 = vrsqrt.f32 %v1868_v57 }
 0xbb5   : > { %v3480_v50 = vpop.eup %3479 }
 0xbb6   : > { %v1872_v60 = vmul.f32 %v3480_v50, %v4000_v1 }
 0xbb8   : > { %v1881_v63 = vmul.f32 %v2951_v61, %v1872_v60 }
 0xbb9   : > { %v3482_v47 = vpop.eup %3481 }
 0xbba   : > { %v3484_v19 = vpop.eup %3483  ;;  %v1873_v62 = vmul.f32 %v3482_v47, %v4005_v6  ;;  %v1890_v2 = vadd.f32 %v2952_v0, %v1881_v63 }
 0xbbb   : > { %v1874_v1 = vmul.f32 %v3484_v19, %v4008_v9  ;;  %v3393_v9 = vld [vmem:[%s3718_s0 + $0x78] sm:$0xff]  }
 0xbbc   : > { %v1882_v46 = vmul.f32 %v2951_v61, %v1873_v62  ;;  %3075 = vmatprep.subr.bf16.mxu1 %v3393_v9 }
 0xbbd   : > { %v1883_v5 = vmul.f32 %v2951_v61, %v1874_v1 }
 0xbbe   : > { %v1891_v3 = vadd.f32 %v2952_v0, %v1882_v46 }
 0xbbf   : > { %v1892_v6 = vadd.f32 %v2952_v0, %v1883_v5 }
 0xbc0   : > { %v1893_v4 = vpack.c.bf16 %v1891_v3, %v1890_v2 }
 0xbc1   : > { %v1894_v11 = vpack.c.bf16 %v1892_v6, %v1892_v6 }
 0xbc2   : > { %2142 = vmatmul.mubr.bf16.vlgmr.msra.gmra.mxu1 %v1893_v4  ;;  %2193 = vmatmul.mubr.bf16.vlgmr.msra.gmra.mxu0 %v1893_v4 }
 0xbc3   : > { %2151 = vmatprep.mubr.bf16.mxu1 %v3552_v37  ;;  %2202 = vmatprep.mubr.bf16.mxu0 %v3552_v37  ;;  %v3398_v37 = vld [vmem:[%s3718_s0 + $0xf0] sm:$0xff]  }
 0xbc4   : > { %3076 = vmatpush3.bf16.msra.mxu1 %v3395_v13  ;;  %3104 = vmatpush3.bf16.msra.mxu0 %v3396_v42 }
 0xbc5   : > { %3077 = vmatprep.subr.bf16.mxu1 %v3397_v14  ;;  %3105 = vmatprep.subr.bf16.mxu0 %v3398_v37 }
 0xbc8   : > { %3078 = vmatpush3.bf16.msra.mxu1 %v3399_v44  ;;  %3106 = vmatpush3.bf16.msra.mxu0 %v3400_v15 }
 0xbc9   : > { %3079 = vmatprep.subr.bf16.mxu1 %v3401_v43  ;;  %3107 = vmatprep.subr.bf16.mxu0 %v3402_v34 }
 0xbca   : > { %2152 = vmatmul.mubr.bf16.gmra.mxu1 %v1894_v11  ;;  %2203 = vmatmul.mubr.bf16.gmra.mxu0 %v1894_v11 }
 0xbcc   : > { %3080 = vmatpush3.bf16.msra.mxu1 %v3403_v49  ;;  %3108 = vmatpush3.bf16.msra.mxu0 %v3404_v16 }
 0xbcd   : > { %3081 = vmatprep.subr.bf16.mxu1 %v3405_v17  ;;  %3109 = vmatprep.subr.bf16.mxu0 %v3406_v18 }
 0xbd0   : > { %3082 = vmatpush3.bf16.msra.mxu1 %v3407_v21  ;;  %3110 = vmatpush3.bf16.msra.mxu0 %v3408_v23 }
 0xbd1   : > { %3083 = vmatprep.subr.bf16.mxu1 %v3409_v24  ;;  %3111 = vmatprep.subr.bf16.mxu0 %v3410_v25 }
 0xbd4   : > { %3084 = vmatpush3.bf16.msra.mxu1 %v3411_v51  ;;  %3112 = vmatpush3.bf16.msra.mxu0 %v3412_v55 }
 0xbd5   : > { %3085 = vmatprep.subr.bf16.mxu1 %v3413_v58  ;;  %3113 = vmatprep.subr.bf16.mxu0 %v3414_v26 }
 0xbd8   : > { %3086 = vmatpush3.bf16.msra.mxu1 %v3415_v27  ;;  %3114 = vmatpush3.bf16.msra.mxu0 %v3416_v28 }
 0xbd9   : > { %3087 = vmatprep.subr.bf16.mxu1 %v3417_v29  ;;  %3115 = vmatprep.subr.bf16.mxu0 %v3418_v30 }
 0xbdc   : > { %3088 = vmatpush3.bf16.msra.mxu1 %v3419_v40  ;;  %3116 = vmatpush3.bf16.msra.mxu0 %v3420_v31 }
 0xbdd   : > { %3089 = vmatprep.subr.bf16.mxu1 %v3421_v32  ;;  %3117 = vmatprep.subr.bf16.mxu0 %v3422_v33 }
 0xbe0   : > { %3090 = vmatpush3.bf16.msra.mxu1 %v3423_v36  ;;  %3118 = vmatpush3.bf16.msra.mxu0 %v3424_v41 }
 0xc82   : > { %v2143_v53 = vpop.f32.mrf.mxu1  ;;  %v2194_v56 = vpop.f32.mrf.mxu0 }
 0xc83   : > { %v4104_v57 = vadd.f32 %v2143_v53, %v1932_v39  ;;  %v4107_v50 = vadd.f32 %v2194_v56, %v4096_v48 }
 0xc84   : > { %v2145_v60 = vpop.f32.mrf.mxu1  ;;  %v2196_v61 = vpop.f32.mrf.mxu0 }
 0xc85   : > { %v2211_v10 = vmul.f32 %v4104_v57, %v4104_v57  ;;  %v2213_v8 = vmul.f32 %v4107_v50, %v4107_v50  ;;  %v4114_v7 = vadd.f32 %v2145_v60, %v4100_v52  ;;  %v4117_v22 = vadd.f32 %v2196_v61, %v4102_v20 }
 0xc86   : > { %v2147_v47 = vpop.f32.mrf.mxu1  ;;  %v2198_v19 = vpop.f32.mrf.mxu0 }
 0xc87   : > { %v2223_v62 = vmul.f32 %v2211_v10, %v4104_v57  ;;  %v2225_v63 = vmul.f32 %v2213_v8, %v4107_v50  ;;  %v2212_v0 = vmul.f32 %v4114_v7, %v4114_v7  ;;  %v2214_v46 = vmul.f32 %v4117_v22, %v4117_v22 }
 0xc88   : > { %v4125_v1 = vadd.f32 %v2147_v47, %v1932_v39  ;;  %v4128_v2 = vadd.f32 %v2198_v19, %v4096_v48  ;;  %v2149_v3 = vpop.f32.mrf.mxu1  ;;  %v2200_v4 = vpop.f32.mrf.mxu0 }
 0xc89   : > { %v2235_v5 = vmul.f32 0.044715, %v2223_v62  ;;  %v2237_v6 = vmul.f32 0.044715, %v2225_v63  ;;  %v2224_v11 = vmul.f32 %v2212_v0, %v4114_v7  ;;  %v2226_v9 = vmul.f32 %v2214_v46, %v4117_v22 }
 0xc8a   : > { %v2215_v12 = vmul.f32 %v4125_v1, %v4125_v1  ;;  %v2217_v13 = vmul.f32 %v4128_v2, %v4128_v2  ;;  %v4137_v42 = vadd.f32 %v2149_v3, %v4100_v52  ;;  %v4140_v14 = vadd.f32 %v2200_v4, %v4102_v20  ;;  %v2153_v37 = vpop.f32.mrf.mxu1  ;;  %v2204_v44 = vpop.f32.mrf.mxu0 }
 0xc8b   : > { %v2247_v15 = vadd.f32 %v2235_v5, %v4104_v57  ;;  %v2249_v43 = vadd.f32 %v2237_v6, %v4107_v50  ;;  %v2236_v34 = vmul.f32 0.044715, %v2224_v11  ;;  %v2238_v49 = vmul.f32 0.044715, %v2226_v9 }
 0xc8c   : > { %v2227_v16 = vmul.f32 %v2215_v12, %v4125_v1  ;;  %v2229_v17 = vmul.f32 %v2217_v13, %v4128_v2  ;;  %v2216_v18 = vmul.f32 %v4137_v42, %v4137_v42  ;;  %v2218_v21 = vmul.f32 %v4140_v14, %v4140_v14  ;;  %v2155_v23 = vpop.f32.mrf.mxu1  ;;  %v2206_v24 = vpop.f32.mrf.mxu0 }
 0xc8d   : > { %v2259_v25 = vmul.f32 0.7978846, %v2247_v15  ;;  %v2261_v51 = vmul.f32 0.7978846, %v2249_v43  ;;  %v2248_v55 = vadd.f32 %v2236_v34, %v4114_v7  ;;  %v2250_v58 = vadd.f32 %v2238_v49, %v4117_v22 }
 0xc8e   : > { %v2239_v26 = vmul.f32 0.044715, %v2227_v16  ;;  %v2241_v27 = vmul.f32 0.044715, %v2229_v17  ;;  %v2228_v28 = vmul.f32 %v2216_v18, %v4137_v42  ;;  %v2230_v29 = vmul.f32 %v2218_v21, %v4140_v14  ;;  %v2157_v30 = vpop.f32.mrf.mxu1  ;;  %v2208_v40 = vpop.f32.mrf.mxu0 }
 0xc8f   : > { %3485 = vtanh.f32 %v2259_v25  ;;  %v2260_v31 = vmul.f32 0.7978846, %v2248_v55  ;;  %v2262_v32 = vmul.f32 0.7978846, %v2250_v58  ;;  %v4154_v33 = vadd.f32 %v2153_v37, %v1932_v39 }
 0xc90   : > { %3487 = vtanh.f32 %v2261_v51  ;;  %v2251_v36 = vadd.f32 %v2239_v26, %v4125_v1  ;;  %v2253_v41 = vadd.f32 %v2241_v27, %v4128_v2  ;;  %v2240_v45 = vmul.f32 0.044715, %v2228_v28  ;;  %v2158_v38 = vpop.f32.mrf.mxu1  ;;  %v2209_v53 = vpop.f32.mrf.mxu0 }
 0xc91   : > { %3489 = vtanh.f32 %v2260_v31  ;;  %v2242_v56 = vmul.f32 0.044715, %v2230_v29  ;;  %v2219_v60 = vmul.f32 %v4154_v33, %v4154_v33  ;;  %v4161_v61 = vadd.f32 %v2204_v44, %v4096_v48 }
 0xc92   : > { %3491 = vtanh.f32 %v2262_v32  ;;  %v2263_v10 = vmul.f32 0.7978846, %v2251_v36  ;;  %v2265_v39 = vmul.f32 0.7978846, %v2253_v41  ;;  %v2252_v8 = vadd.f32 %v2240_v45, %v4137_v42 }
 0xc93   : > { %v2254_v47 = vadd.f32 %v2242_v56, %v4140_v14  ;;  %v2231_v19 = vmul.f32 %v2219_v60, %v4154_v33  ;;  %v2221_v62 = vmul.f32 %v4161_v61, %v4161_v61  ;;  %v4169_v63 = vadd.f32 %v2155_v23, %v4100_v52 }
 0xc94   : > { %3493 = vtanh.f32 %v2263_v10  ;;  %v2264_v0 = vmul.f32 0.7978846, %v2252_v8  ;;  %v4172_v48 = vadd.f32 %v2206_v24, %v4102_v20 }
 0xc95   : > { %3495 = vtanh.f32 %v2265_v39  ;;  %v2266_v46 = vmul.f32 0.7978846, %v2254_v47  ;;  %v2243_v3 = vmul.f32 0.044715, %v2231_v19  ;;  %v2233_v4 = vmul.f32 %v2221_v62, %v4161_v61 }
 0xc96   : > { %3497 = vtanh.f32 %v2264_v0  ;;  %v2220_v5 = vmul.f32 %v4169_v63, %v4169_v63  ;;  %v2222_v6 = vmul.f32 %v4172_v48, %v4172_v48 }
 0xc97   : > { %3499 = vtanh.f32 %v2266_v46  ;;  %v2255_v52 = vadd.f32 %v2243_v3, %v4154_v33  ;;  %v2245_v11 = vmul.f32 0.044715, %v2233_v4 }
 0xc98   : > { %v2232_v9 = vmul.f32 %v2220_v5, %v4169_v63  ;;  %v2234_v20 = vmul.f32 %v2222_v6, %v4172_v48 }
 0xc99   : > { %v2267_v12 = vmul.f32 0.7978846, %v2255_v52  ;;  %v2257_v13 = vadd.f32 %v2245_v11, %v4161_v61 }
 0xc9a   : > { %v2244_v37 = vmul.f32 0.044715, %v2232_v9  ;;  %v2246_v44 = vmul.f32 0.044715, %v2234_v20 }
 0xc9b   : > { %3501 = vtanh.f32 %v2267_v12  ;;  %v2269_v15 = vmul.f32 0.7978846, %v2257_v13 }
 0xc9c   : > { %v3486_v43 = vpop.eup %3485  ;;  %v2256_v34 = vadd.f32 %v2244_v37, %v4169_v63  ;;  %v2258_v49 = vadd.f32 %v2246_v44, %v4172_v48 }
 0xc9d   : > { %v3488_v16 = vpop.eup %3487  ;;  %3503 = vtanh.f32 %v2269_v15  ;;  %v2283_v51 = vadd.f32 1.0, %v3486_v43 }
 0xc9e   : > { %v3490_v17 = vpop.eup %3489  ;;  %v2268_v18 = vmul.f32 0.7978846, %v2256_v34  ;;  %v2270_v21 = vmul.f32 0.7978846, %v2258_v49  ;;  %v2285_v26 = vadd.f32 1.0, %v3488_v16 }
 0xc9f   : > { %v3492_v23 = vpop.eup %3491  ;;  %v2284_v24 = vadd.f32 1.0, %v3490_v17  ;;  %v2295_v36 = vmul.f32 0.5, %v2283_v51 }
 0xca0   : > { %3505 = vtanh.f32 %v2268_v18  ;;  %v2286_v55 = vadd.f32 1.0, %v3492_v23  ;;  %v2297_v53 = vmul.f32 0.5, %v2285_v26 }
 0xca1   : > { %v3494_v25 = vpop.eup %3493  ;;  %3507 = vtanh.f32 %v2270_v21  ;;  %v2296_v32 = vmul.f32 0.5, %v2284_v24  ;;  %v2307_v62 = vmul.f32 %v2295_v36, %v4104_v57 }
 0xca2   : > { %v3496_v58 = vpop.eup %3495  ;;  %v2287_v27 = vadd.f32 1.0, %v3494_v25  ;;  %v2298_v38 = vmul.f32 0.5, %v2286_v55  ;;  %v2309_v5 = vmul.f32 %v2297_v53, %v4107_v50 }
 0xca3   : > { %v3498_v28 = vpop.eup %3497  ;;  %v2289_v29 = vadd.f32 1.0, %v3496_v58  ;;  %v2308_v47 = vmul.f32 %v2296_v32, %v4114_v7 }
 0xca4   : > { %v3500_v30 = vpop.eup %3499  ;;  %v2299_v40 = vmul.f32 0.5, %v2287_v27  ;;  %v2288_v31 = vadd.f32 1.0, %v3498_v28  ;;  %v2310_v0 = vmul.f32 %v2298_v38, %v4117_v22 }
 0xca5   : > { %v2301_v41 = vmul.f32 0.5, %v2289_v29  ;;  %v2290_v45 = vadd.f32 1.0, %v3500_v30 }
 0xca6   : > { %v2300_v56 = vmul.f32 0.5, %v2288_v31  ;;  %v2311_v60 = vmul.f32 %v2299_v40, %v4125_v1 }
 0xca7   : > { %v2302_v10 = vmul.f32 0.5, %v2290_v45  ;;  %v2313_v8 = vmul.f32 %v2301_v41, %v4128_v2 }
 0xca8   : > { %v3502_v39 = vpop.eup %3501  ;;  %v2312_v19 = vmul.f32 %v2300_v56, %v4137_v42  ;;  %v2319_v1 = vpack.c.bf16 %v2311_v60, %v2307_v62 }
 0xca9   : > { %v2314_v46 = vmul.f32 %v2302_v10, %v4140_v14  ;;  %v2291_v3 = vadd.f32 1.0, %v3502_v39  ;;  %v2321_v9 = vpack.c.bf16 %v2313_v8, %v2309_v5 }
 0xcaa   : > { %v3504_v4 = vpop.eup %3503  ;;  %v2320_v6 = vpack.c.bf16 %v2312_v19, %v2308_v47 }
 0xcab   : > { %v2322_v52 = vpack.c.bf16 %v2314_v46, %v2310_v0  ;;  %v2293_v11 = vadd.f32 1.0, %v3504_v4  ;;  %v2303_v7 = vmul.f32 0.5, %v2291_v3 }
 0xcac   : > { %2622 = vmatprep.mubr.bf16.mxu1 %v2320_v6 }
 0xcad   : > { %v3506_v2 = vpop.eup %3505  ;;  %2670 = vmatprep.mubr.bf16.mxu0 %v2322_v52  ;;  %2623 = vmatmul.mubr.bf16.vlgmr.msra.gmra.mxu1 %v2319_v1  ;;  %v2305_v22 = vmul.f32 0.5, %v2293_v11  ;;  %v2315_v50 = vmul.f32 %v2303_v7, %v4154_v33  ;;  %v2985_v33 = vld [vmem:[%s645_s30] ss:$0 sm:$0xff] }
 0xcae   : > { %v3508_v42 = vpop.eup %3507  ;;  %2671 = vmatmul.mubr.bf16.vlgmr.msra.gmra.mxu0 %v2321_v9  ;;  %v2292_v57 = vadd.f32 1.0, %v3506_v2 }
 0xcaf   : > { %v2294_v20 = vadd.f32 1.0, %v3508_v42  ;;  %v2317_v37 = vmul.f32 %v2305_v22, %v4161_v61  ;;  %v2323_v34 = vpack.c.bf16 %v2315_v50, %v2315_v50 }
 0xcb0   : > { %v2304_v14 = vmul.f32 0.5, %v2292_v57 }
 0xcb1   : > { %v2306_v12 = vmul.f32 0.5, %v2294_v20  ;;  %v2325_v49 = vpack.c.bf16 %v2317_v37, %v2317_v37 }
 0xcb2   : > { %v2316_v13 = vmul.f32 %v2304_v14, %v4169_v63 }
 0xcb3   : > { %v2318_v44 = vmul.f32 %v2306_v12, %v4172_v48 }
 0xcb4   : > { %v2324_v15 = vpack.c.bf16 %v2316_v13, %v2316_v13 }
 0xcb5   : > { %v2326_v43 = vpack.c.bf16 %v2318_v44, %v2318_v44 }
 0xcb6   : > { %2630 = vmatprep.mubr.bf16.mxu1 %v2324_v15 }
 0xcb7   : > { %2678 = vmatprep.mubr.bf16.mxu0 %v2326_v43  ;;  %2631 = vmatmul.mubr.bf16.gmra.mxu1 %v2323_v34 }
 0xcb8   : > { %2679 = vmatmul.mubr.bf16.gmra.mxu0 %v2325_v49 }
 0xd6d   : > { %v3091_v16 = vpop.f32.mrf.mxu1 }
 0xd6e   : > { %v3119_v17 = vpop.f32.mrf.mxu0 }
 0xd6f   : > { %v3092_v63 = vpop.f32.mrf.mxu1 }
 0xd70   : > { %v3093_v61 = vadd.f32 %v3092_v63, %v3091_v16  ;;  %v3120_v18 = vpop.f32.mrf.mxu0 }
 0xd71   : > { %v3094_v48 = vpop.f32.mrf.mxu1  ;;  %v3121_v23 = vadd.f32 %v3120_v18, %v3119_v17 }
 0xd72   : > { %v2625_v21 = vadd.f32 %v3093_v61, %v2985_v33  ;;  %v3122_v24 = vpop.f32.mrf.mxu0 }
 0xd73   : > { %v3095_v25 = vpop.f32.mrf.mxu1 }
 0xd74   : > { %v2673_v51 = vadd.f32 %v3121_v23, %v2625_v21  ;;  %v3096_v55 = vadd.f32 %v3095_v25, %v3094_v48  ;;  %v3123_v58 = vpop.f32.mrf.mxu0 }
 0xd75   : > { %v3124_v28 = vadd.f32 %v3123_v58, %v3122_v24 }
 0xd76   : > { %v2686_v26 = vadd.f32 %v2673_v51, %v3983_v35  ;;  %v2628_v27 = vadd.f32 %v3096_v55, %v2985_v33 }
 0xd77   : > { %v3097_v29 = vpop.f32.mrf.mxu1 }
 0xd78   : > { %2689 = vst [vmem:[%s3727_s5] sm:$0xff] %v2686_v26  ;;  %v2676_v30 = vadd.f32 %v3124_v28, %v2628_v27  ;;  %v3125_v40 = vpop.f32.mrf.mxu0 }
 0xd79   : > { %v3098_v31 = vpop.f32.mrf.mxu1 }
 0xd7a   : > { %v2687_v32 = vadd.f32 %v2676_v30, %v3990_v59  ;;  %v3099_v36 = vadd.f32 %v3098_v31, %v3097_v29  ;;  %v3126_v41 = vpop.f32.mrf.mxu0 }
 0xd7b   : > { %v3100_v45 = vpop.f32.mrf.mxu1  ;;  %v3127_v53 = vadd.f32 %v3126_v41, %v3125_v40 }
 0xd7c   : > { %2690 = vst [vmem:[%s3727_s5 + $0x8] sm:$0xff] %v2687_v32  ;;  %v2633_v38 = vadd.f32 %v3099_v36, %v2985_v33  ;;  %v3128_v56 = vpop.f32.mrf.mxu0 }
 0xd7d   : > { %v3101_v60 = vpop.f32.mrf.mxu1 }
 0xd7e   : > { %v2681_v10 = vadd.f32 %v3127_v53, %v2633_v38  ;;  %v3129_v35 = vpop.f32.mrf.mxu0 }
 0xd80   : > { %v2688_v39 = vadd.f32 %v2681_v10, %v3986_v54 }
 0xd82   : > { %2691 = vst [vmem:[%s3727_s5 + $0x10] sm:$0x1] %v2688_v39 }
 0xd83 PF: > { %s4266_s15 = sld [smem:[#allocation5_spill]] }
 0xd84   : > { %s4267_s25 = sld [smem:[#allocation3_spill]] }
 0xd85   : > { %s4268_s26 = sld [smem:[#allocation4_spill]] }
 0xd86   : > { %s4269_s27 = sld [smem:[#allocation6_spill]] }
 0xd87   : > { %s4270_s28 = sld [smem:[#allocation7_spill]] }
 0xd89   : > { %s23_s29 = sadd.s32 1, %s4266_s15  }
 0xd8a   : > { %p20_p8 = scmp.ge.s32.totalorder %s23_s29, 10  }
 0xd8c   :  { %22 = sbr.rel (!%p20_p8) target bundleno = 7 (0x7), region = 142 }

</bundles_post_ra>
